<compile_context>
chip_gen: v7x
topology: tpu7x:2x2x1
jax: 0.10.0
libtpu: 0.0.40
codegen_flags: <defaults>
</compile_context>

<pallas_src>
import functools
import jax
import jax.numpy as jnp
from jax import lax
from jax.experimental import pallas as pl
from jax.experimental.pallas import tpu as pltpu

# ----------------------------- small ViT config -----------------------------
IMG = 16          # img_size
PATCH = 4         # patch_size
IN_CH = 3         # in_chans
EMBED = 32        # embed_dim
DEPTH = 2         # depth
HEADS = 4         # num_heads
MLP_RATIO = 4
B = 2             # batch

GRIDP = IMG // PATCH
NPATCH = GRIDP * GRIDP
NTOK = NPATCH + 1           # +1 cls token
DH = EMBED // HEADS
HID = EMBED * MLP_RATIO
PATCH_K = IN_CH * PATCH * PATCH
EPS = 1e-6
SCALE = DH ** -0.5
VROWS = 8                   # rows of the packed per-block vector slab
VPAD = 128                  # lane width of the packed slab (== HID == HEADS*EMBED)


# ------------------------------ Pallas kernel -------------------------------
def _ln(x, g, b):
    # LayerNorm over the last axis, eps=1e-6 (matches nn.LayerNorm(eps=1e-06)).
    mu = jnp.mean(x, axis=-1, keepdims=True)
    var = jnp.mean((x - mu) * (x - mu), axis=-1, keepdims=True)
    return (x - mu) * lax.rsqrt(var + EPS) * g + b


def vit_fused_kernel(p_ref, pe_w_ref, tok_bias_ref,
                     wqk_ref, wvo_ref, w1_ref, w2_ref,
                     vec_ref, lnf_ref, o_ref, *, depth, heads, dh, n_img):
    emb = EMBED

    # ---- Patch embedding + cls + pos (pe bias / cls / pos folded into tok_bias).
    # The patch matrix has a zero row per image at the cls slot, so that row
    # becomes cls_token + pos[0] purely from tok_bias.
    tok = (jnp.dot(p_ref[...], pe_w_ref[...], preferred_element_type=jnp.float32)
           + tok_bias_ref[...])                               # (n_img*NTOK, EMBED)

    for d in range(depth):
        vs = vec_ref[d]                                       # (VROWS, VPAD)
        g1, b1 = vs[0:1, :emb], vs[1:2, :emb]
        g2, b2 = vs[2:3, :emb], vs[3:4, :emb]
        bqk = vs[4:5, :2 * emb]                               # scale folded into the Q half
        bo = vs[5:6, :emb]                                    # proj bias + (bv @ Wo) fold
        bf1 = vs[6:7, :]                                      # (1, HID)  (HID == VPAD)
        bf2 = vs[7:8, :emb]

        # ---------------- Attention branch ----------------
        xn = _ln(tok, g1, b1)
        qk = jnp.dot(xn, wqk_ref[d], preferred_element_type=jnp.float32) + bqk   # (R, 2E)
        vo = jnp.dot(xn, wvo_ref[d], preferred_element_type=jnp.float32)         # (R, H*E)
        q = qk[:, :emb]
        k = qk[:, emb:]

        img_outs = []
        for im in range(n_img):                               # per-image attention
            r0 = im * NTOK
            q_i = q[r0:r0 + NTOK, :]
            k_i = k[r0:r0 + NTOK, :]
            vo_i = vo[r0:r0 + NTOK, :]
            out_i = None
            for h in range(heads):
                qh = q_i[:, h * dh:(h + 1) * dh]
                kh = k_i[:, h * dh:(h + 1) * dh]
                # q @ k^T without an explicit transpose (contract on last axes).
                s = lax.dot_general(qh, kh, (((1,), (1,)), ((), ())),
                                    preferred_element_type=jnp.float32)          # (NTOK, NTOK)
                s = s - jnp.max(s, axis=-1, keepdims=True)
                e = jnp.exp(s)
                aw = e * pl.reciprocal(jnp.sum(e, axis=-1, keepdims=True),
                                       approx=True)
                # Head context already projected into EMBED (Wvo fold), K=NTOK.
                ctx = jnp.dot(aw, vo_i[:, h * emb:(h + 1) * emb],
                              preferred_element_type=jnp.float32)                # (NTOK, E)
                out_i = ctx if out_i is None else out_i + ctx
            img_outs.append(out_i)
        attn = img_outs[0] if n_img == 1 else jnp.concatenate(img_outs, axis=0)
        tok = tok + attn + bo                                 # bo broadcast once per block

        # ---------------- MLP branch ----------------
        xn2 = _ln(tok, g2, b2)
        hid = jnp.dot(xn2, w1_ref[d], preferred_element_type=jnp.float32) + bf1
        hid = jax.nn.gelu(hid, approximate=True)              # tanh-GELU -> EUP slot
        tok = tok + jnp.dot(hid, w2_ref[d], preferred_element_type=jnp.float32) + bf2

    # ---- Final LayerNorm on the cls rows only; emit (n_img, EMBED).
    if n_img == 1:
        cls = tok[0:1, :]
    else:
        cls = jnp.concatenate([tok[im * NTOK:im * NTOK + 1, :] for im in range(n_img)],
                              axis=0)
    o_ref[...] = _ln(cls, lnf_ref[0:1, :], lnf_ref[1:2, :])


# ------------------------------ pallas_call glue -----------------------------
def _full(shape):
    nd = len(shape)
    return pl.BlockSpec(shape, lambda i, _nd=nd: (0,) * _nd)


def _images_per_step():
    # Dual-TensorCore chips (v7x, and v4/v5p megacore): keep one image per grid
    # step so the cores split the batch.  Single-TC chips (v5e/v6e) or unknown:
    # fold the whole batch into one grid step (sublane-stacked activations).
    try:
        kind = jax.devices()[0].device_kind.lower()
    except Exception:
        return B
    if any(t in kind for t in ("v7", "7x", "v4", "v5p")):
        return 1
    return B


def extract_patches(x):
    # x: (B, C, H, W) NCHW -> (B, NPATCH, C*PATCH*PATCH), channel-major per patch
    # to match torch Conv2d weight flattening (out, in, kh, kw).
    xb = x.reshape(B, IN_CH, GRIDP, PATCH, GRIDP, PATCH)
    xb = xb.transpose(0, 2, 4, 1, 3, 5)                       # (B, gh, gw, C, ph, pw)
    return xb.reshape(B, NPATCH, PATCH_K)


def vit_forward_pallas(x, kp, images_per_step=None):
    ips = images_per_step if images_per_step is not None else _images_per_step()
    ips = max(1, min(ips, B))
    if B % ips:
        ips = 1
    steps = B // ips
    rows = ips * NTOK

    patches = extract_patches(x)                              # (B, NPATCH, PATCH_K)
    # Zero row at token 0 of every image (the cls slot).
    patches = jnp.pad(patches, ((0, 0), (1, 0), (0, 0)))      # (B, NTOK, PATCH_K)
    patches = patches.reshape(steps, rows, PATCH_K)           # fold ips images per step

    tok_bias = jnp.tile(kp["tok_bias"], (ips, 1))             # (rows, EMBED)

    kern = functools.partial(vit_fused_kernel, depth=DEPTH, heads=HEADS, dh=DH,
                             n_img=ips)
    out = pl.pallas_call(
        kern,
        out_shape=jax.ShapeDtypeStruct((steps, ips, EMBED), jnp.float32),
        grid=(steps,),
        in_specs=[
            pl.BlockSpec((None, rows, PATCH_K), lambda i: (i, 0, 0)),
            _full(kp["pe_w"].shape),
            _full(tok_bias.shape),
            _full(kp["wqk"].shape),
            _full(kp["wvo"].shape),
            _full(kp["w1"].shape),
            _full(kp["w2"].shape),
            _full(kp["vec"].shape),
            _full(kp["lnf"].shape),
        ],
        out_specs=pl.BlockSpec((None, ips, EMBED), lambda i: (i, 0, 0)),
        compiler_params=pltpu.CompilerParams(dimension_semantics=("parallel",)),
    )(patches, kp["pe_w"], tok_bias, kp["wqk"], kp["wvo"],
      kp["w1"], kp["w2"], kp["vec"], kp["lnf"])
    return out.reshape(B, EMBED)


# ------------------------------ parameter init -------------------------------
def init_params(key):
    ks = iter(jax.random.split(key, 64))

    def nrm(shape, std=0.02):
        return (std * jax.random.normal(next(ks), shape)).astype(jnp.float32)

    p = {}
    # PatchEmbed: Conv2d weight (EMBED, IN_CH, PATCH, PATCH) -> matmul (K, EMBED)
    conv_w = nrm((EMBED, IN_CH, PATCH, PATCH))
    p["pe_w"] = conv_w.reshape(EMBED, PATCH_K).T              # (PATCH_K, EMBED)
    p["pe_b"] = jnp.zeros((1, EMBED), jnp.float32)
    p["cls"] = nrm((1, 1, EMBED))                             # cls_token
    p["pos"] = nrm((1, NTOK, EMBED))                          # pos_embed

    blocks = []
    for _ in range(DEPTH):
        qkv_w = nrm((3 * EMBED, EMBED))                       # torch qkv.weight layout
        qkv_b = nrm((3 * EMBED,), std=0.02)                   # qkv_bias=True
        blk = {
            "g1": jnp.ones((1, EMBED), jnp.float32),
            "b1": jnp.zeros((1, EMBED), jnp.float32),
            "wq": qkv_w[0 * EMBED:1 * EMBED].T,
            "wk": qkv_w[1 * EMBED:2 * EMBED].T,
            "wv": qkv_w[2 * EMBED:3 * EMBED].T,
            "bq": qkv_b[0 * EMBED:1 * EMBED].reshape(1, EMBED),
            "bk": qkv_b[1 * EMBED:2 * EMBED].reshape(1, EMBED),
            "bv": qkv_b[2 * EMBED:3 * EMBED].reshape(1, EMBED),
            "wo": nrm((EMBED, EMBED)).T,
            "bo": jnp.zeros((1, EMBED), jnp.float32),
            "g2": jnp.ones((1, EMBED), jnp.float32),
            "b2": jnp.zeros((1, EMBED), jnp.float32),
            "w1": nrm((HID, EMBED)).T,                        # fc1: (EMBED, HID)
            "bf1": jnp.zeros((1, HID), jnp.float32),
            "w2": nrm((EMBED, HID)).T,                        # fc2: (HID, EMBED)
            "bf2": jnp.zeros((1, EMBED), jnp.float32),
        }
        blocks.append(blk)
    p["blocks"] = blocks
    p["gn"] = jnp.ones((1, EMBED), jnp.float32)               # final norm
    p["bn"] = jnp.zeros((1, EMBED), jnp.float32)
    return p


def pack_params(p):
    """Pack per-block params into stacked / folded slab form for the fused kernel."""
    def padw(a, width=VPAD):
        return jnp.pad(a, ((0, 0), (0, width - a.shape[-1])))

    blocks = p["blocks"]
    wqk_l, wvo_l, w1_l, w2_l, vec_l = [], [], [], [], []
    for blk in blocks:
        # Fused Q|K weights, attention scale folded into the Q half.
        wqk_l.append(jnp.concatenate([blk["wq"] * SCALE, blk["wk"]], axis=1))   # (E, 2E)
        # Wv_h @ Wo_h folded per head into one lane-dense (E, HEADS*E) slab.
        wvo_h = [blk["wv"][:, h * DH:(h + 1) * DH] @ blk["wo"][h * DH:(h + 1) * DH, :]
                 for h in range(HEADS)]
        wvo_l.append(jnp.concatenate(wvo_h, axis=1))                            # (E, H*E)
        w1_l.append(blk["w1"])                                                  # (E, HID)
        w2_l.append(blk["w2"])                                                  # (HID, E)

        bqk = jnp.concatenate([blk["bq"] * SCALE, blk["bk"]], axis=1)           # (1, 2E)
        # Softmax rows sum to 1 => value-bias contribution reduces to bv @ Wo;
        # fold it into the output-projection bias.
        bo_eff = blk["bo"] + blk["bv"] @ blk["wo"]                              # (1, E)
        slab = jnp.concatenate([
            padw(blk["g1"]), padw(blk["b1"]), padw(blk["g2"]), padw(blk["b2"]),
            padw(bqk), padw(bo_eff), padw(blk["bf1"]), padw(blk["bf2"]),
        ], axis=0)                                                              # (8, 128)
        vec_l.append(slab)

    wqk = jnp.stack(wqk_l)                                                      # (D, E, 2E)
    wvo = jnp.stack(wvo_l)                                                      # (D, E, H*E)
    w1 = jnp.stack(w1_l)                                                        # (D, E, HID)
    w2 = jnp.stack(w2_l)                                                        # (D, HID, E)
    vec = jnp.stack(vec_l)                                                      # (D, 8, 128)

    # tok_bias[0]  = cls + pos[0]
    # tok_bias[1:] = pe_b + pos[1:]
    tok_bias = p["pos"][0] + jnp.concatenate(
        [p["cls"][0], jnp.broadcast_to(p["pe_b"], (NPATCH, EMBED))], axis=0)    # (NTOK, E)

    lnf = jnp.concatenate([p["gn"], p["bn"]], axis=0)                           # (2, E)

    return {"pe_w": p["pe_w"], "tok_bias": tok_bias, "wqk": wqk, "wvo": wvo,
            "w1": w1, "w2": w2, "vec": vec, "lnf": lnf}


# ------------------------------ reference (jnp) -------------------------------
def ref_forward(x, p):
    def ln(z, g, b):
        mu = jnp.mean(z, axis=-1, keepdims=True)
        var = jnp.mean((z - mu) ** 2, axis=-1, keepdims=True)
        return (z - mu) / jnp.sqrt(var + EPS) * g[0] + b[0]

    tok = extract_patches(x) @ p["pe_w"] + p["pe_b"][0]
    cls = jnp.broadcast_to(p["cls"], (B, 1, EMBED))
    tok = jnp.concatenate([cls, tok], axis=1) + p["pos"]
    for blk in p["blocks"]:
        xn = ln(tok, blk["g1"], blk["b1"])
        q = (xn @ blk["wq"] + blk["bq"][0]).reshape(B, NTOK, HEADS, DH).transpose(0, 2, 1, 3)
        k = (xn @ blk["wk"] + blk["bk"][0]).reshape(B, NTOK, HEADS, DH).transpose(0, 2, 1, 3)
        v = (xn @ blk["wv"] + blk["bv"][0]).reshape(B, NTOK, HEADS, DH).transpose(0, 2, 1, 3)
        a = jax.nn.softmax(jnp.einsum("bhqd,bhkd->bhqk", q, k) * SCALE, axis=-1)
        o = jnp.einsum("bhqk,bhkd->bhqd", a, v).transpose(0, 2, 1, 3).reshape(B, NTOK, EMBED)
        tok = tok + (o @ blk["wo"] + blk["bo"][0])
        xn2 = ln(tok, blk["g2"], blk["b2"])
        h = jax.nn.gelu(xn2 @ blk["w1"] + blk["bf1"][0], approximate=False)
        tok = tok + (h @ blk["w2"] + blk["bf2"][0])
    tok = ln(tok, p["gn"], p["bn"])
    return tok[:, 0]


# ------------------------------------ main ------------------------------------
if __name__ == "__main__":
    key = jax.random.PRNGKey(0)
    kx, kp_key = jax.random.split(key)
    x = jax.random.normal(kx, (B, IN_CH, IMG, IMG), dtype=jnp.float32)
    params = init_params(kp_key)
    kparams = pack_params(params)

    out = jax.block_until_ready(vit_forward_pallas(x, kparams))
    ref = jax.block_until_ready(ref_forward(x, params))

    assert out.shape == (B, EMBED), out.shape
    assert jnp.allclose(out, ref, rtol=1e-3, atol=2e-3), float(jnp.max(jnp.abs(out - ref)))
    print("KERNEL_OK")
</pallas_src>

<mosaic_0001>
module attributes {stable_mosaic.version = 11 : i64} {
  func.func @vit_fused_kernel(%arg0: i32, %arg1: memref<1x34x48xf32, #tpu.memory_space<vmem>>, %arg2: memref<48x32xf32, #tpu.memory_space<vmem>>, %arg3: memref<34x32xf32, #tpu.memory_space<vmem>>, %arg4: memref<2x32x64xf32, #tpu.memory_space<vmem>>, %arg5: memref<2x32x128xf32, #tpu.memory_space<vmem>>, %arg6: memref<2x32x128xf32, #tpu.memory_space<vmem>>, %arg7: memref<2x128x32xf32, #tpu.memory_space<vmem>>, %arg8: memref<2x8x128xf32, #tpu.memory_space<vmem>>, %arg9: memref<2x32xf32, #tpu.memory_space<vmem>>, %arg10: memref<1x2x32xf32, #tpu.memory_space<vmem>>) attributes {dimension_semantics = [#tpu.dimension_semantics<parallel>], iteration_bounds = array<i64: 1>, scalar_prefetch = 0 : i64, scratch_operands = 0 : i64, tpu.core_type = #tpu.core_type<tc>, window_params = [{transform_indices = @transform_0, window_bounds = array<i64: 1, 34, 48>}, {pipeline_mode = #tpu.pipeline_mode<synchronous>, transform_indices = @transform_1, window_bounds = array<i64: 48, 32>}, {pipeline_mode = #tpu.pipeline_mode<synchronous>, transform_indices = @transform_2, window_bounds = array<i64: 34, 32>}, {pipeline_mode = #tpu.pipeline_mode<synchronous>, transform_indices = @transform_3, window_bounds = array<i64: 2, 32, 64>}, {pipeline_mode = #tpu.pipeline_mode<synchronous>, transform_indices = @transform_4, window_bounds = array<i64: 2, 32, 128>}, {pipeline_mode = #tpu.pipeline_mode<synchronous>, transform_indices = @transform_5, window_bounds = array<i64: 2, 32, 128>}, {pipeline_mode = #tpu.pipeline_mode<synchronous>, transform_indices = @transform_6, window_bounds = array<i64: 2, 128, 32>}, {pipeline_mode = #tpu.pipeline_mode<synchronous>, transform_indices = @transform_7, window_bounds = array<i64: 2, 8, 128>}, {pipeline_mode = #tpu.pipeline_mode<synchronous>, transform_indices = @transform_8, window_bounds = array<i64: 2, 32>}, {transform_indices = @transform_9, window_bounds = array<i64: 1, 2, 32>}]} {
    %c0 = arith.constant 0 : index
    %c0_0 = arith.constant 0 : index
    %c0_1 = arith.constant 0 : index
    %0 = vector.load %arg1[%c0, %c0_0, %c0_1] : memref<1x34x48xf32, #tpu.memory_space<vmem>>, vector<1x34x48xf32>
    %1 = vector.shape_cast %0 : vector<1x34x48xf32> to vector<34x48xf32>
    %c0_2 = arith.constant 0 : index
    %c0_3 = arith.constant 0 : index
    %2 = vector.load %arg2[%c0_2, %c0_3] : memref<48x32xf32, #tpu.memory_space<vmem>>, vector<48x32xf32>
    %cst = arith.constant dense<0.000000e+00> : vector<34x32xf32>
    %3 = tpu.matmul %1, %2, %cst {dimension_numbers = #tpu.dot_dimension_numbers<[1], [0], [0], [1], [0, 0, 1, 1], [], []>} : vector<34x48xf32>, vector<48x32xf32>, vector<34x32xf32> -> vector<34x32xf32>
    %c0_4 = arith.constant 0 : index
    %c0_5 = arith.constant 0 : index
    %4 = vector.load %arg3[%c0_4, %c0_5] : memref<34x32xf32, #tpu.memory_space<vmem>>, vector<34x32xf32>
    %5 = arith.addf %3, %4 : vector<34x32xf32>
    %c0_6 = arith.constant 0 : index
    %c0_7 = arith.constant 0 : index
    %c0_8 = arith.constant 0 : index
    %6 = vector.load %arg8[%c0_6, %c0_7, %c0_8] : memref<2x8x128xf32, #tpu.memory_space<vmem>>, vector<1x8x128xf32>
    %7 = vector.shape_cast %6 : vector<1x8x128xf32> to vector<8x128xf32>
    %8 = vector.extract_strided_slice %7 {offsets = [0, 0], sizes = [1, 32], strides = [1, 1]} : vector<8x128xf32> to vector<1x32xf32>
    %9 = vector.extract_strided_slice %7 {offsets = [1, 0], sizes = [1, 32], strides = [1, 1]} : vector<8x128xf32> to vector<1x32xf32>
    %10 = vector.extract_strided_slice %7 {offsets = [2, 0], sizes = [1, 32], strides = [1, 1]} : vector<8x128xf32> to vector<1x32xf32>
    %11 = vector.extract_strided_slice %7 {offsets = [3, 0], sizes = [1, 32], strides = [1, 1]} : vector<8x128xf32> to vector<1x32xf32>
    %12 = vector.extract_strided_slice %7 {offsets = [4, 0], sizes = [1, 64], strides = [1, 1]} : vector<8x128xf32> to vector<1x64xf32>
    %13 = vector.extract_strided_slice %7 {offsets = [5, 0], sizes = [1, 32], strides = [1, 1]} : vector<8x128xf32> to vector<1x32xf32>
    %14 = vector.extract_strided_slice %7 {offsets = [6, 0], sizes = [1, 128], strides = [1, 1]} : vector<8x128xf32> to vector<1x128xf32>
    %15 = vector.extract_strided_slice %7 {offsets = [7, 0], sizes = [1, 32], strides = [1, 1]} : vector<8x128xf32> to vector<1x32xf32>
    %cst_9 = arith.constant dense<0.000000e+00> : vector<34xf32>
    %16 = vector.multi_reduction <add>, %5, %cst_9 [1] : vector<34x32xf32> to vector<34xf32>
    %17 = vector.shape_cast %16 : vector<34xf32> to vector<34x1xf32>
    %cst_10 = arith.constant 3.200000e+01 : f32
    %18 = vector.broadcast %cst_10 : f32 to vector<34x1xf32>
    %19 = arith.divf %17, %18 : vector<34x1xf32>
    %20 = vector.broadcast %19 : vector<34x1xf32> to vector<34x32xf32>
    %21 = arith.subf %5, %20 : vector<34x32xf32>
    %22 = vector.broadcast %19 : vector<34x1xf32> to vector<34x32xf32>
    %23 = arith.subf %5, %22 : vector<34x32xf32>
    %24 = arith.mulf %21, %23 : vector<34x32xf32>
    %cst_11 = arith.constant dense<0.000000e+00> : vector<34xf32>
    %25 = vector.multi_reduction <add>, %24, %cst_11 [1] : vector<34x32xf32> to vector<34xf32>
    %26 = vector.shape_cast %25 : vector<34xf32> to vector<34x1xf32>
    %cst_12 = arith.constant 3.200000e+01 : f32
    %27 = vector.broadcast %cst_12 : f32 to vector<34x1xf32>
    %28 = arith.divf %26, %27 : vector<34x1xf32>
    %29 = vector.broadcast %19 : vector<34x1xf32> to vector<34x32xf32>
    %30 = arith.subf %5, %29 : vector<34x32xf32>
    %cst_13 = arith.constant 9.99999997E-7 : f32
    %31 = vector.broadcast %cst_13 : f32 to vector<34x1xf32>
    %32 = arith.addf %28, %31 : vector<34x1xf32>
    %33 = math.rsqrt %32 : vector<34x1xf32>
    %34 = vector.broadcast %33 : vector<34x1xf32> to vector<34x32xf32>
    %35 = arith.mulf %30, %34 : vector<34x32xf32>
    %36 = vector.broadcast %8 : vector<1x32xf32> to vector<34x32xf32>
    %37 = arith.mulf %35, %36 : vector<34x32xf32>
    %38 = vector.broadcast %9 : vector<1x32xf32> to vector<34x32xf32>
    %39 = arith.addf %37, %38 : vector<34x32xf32>
    %c0_14 = arith.constant 0 : index
    %c0_15 = arith.constant 0 : index
    %c0_16 = arith.constant 0 : index
    %40 = vector.load %arg4[%c0_14, %c0_15, %c0_16] : memref<2x32x64xf32, #tpu.memory_space<vmem>>, vector<1x32x64xf32>
    %41 = vector.shape_cast %40 : vector<1x32x64xf32> to vector<32x64xf32>
    %cst_17 = arith.constant dense<0.000000e+00> : vector<34x64xf32>
    %42 = tpu.matmul %39, %41, %cst_17 {dimension_numbers = #tpu.dot_dimension_numbers<[1], [0], [0], [1], [0, 0, 1, 1], [], []>} : vector<34x32xf32>, vector<32x64xf32>, vector<34x64xf32> -> vector<34x64xf32>
    %43 = vector.broadcast %12 : vector<1x64xf32> to vector<34x64xf32>
    %44 = arith.addf %42, %43 : vector<34x64xf32>
    %c0_18 = arith.constant 0 : index
    %c0_19 = arith.constant 0 : index
    %c0_20 = arith.constant 0 : index
    %45 = vector.load %arg5[%c0_18, %c0_19, %c0_20] : memref<2x32x128xf32, #tpu.memory_space<vmem>>, vector<1x32x128xf32>
    %46 = vector.shape_cast %45 : vector<1x32x128xf32> to vector<32x128xf32>
    %cst_21 = arith.constant dense<0.000000e+00> : vector<34x128xf32>
    %47 = tpu.matmul %39, %46, %cst_21 {dimension_numbers = #tpu.dot_dimension_numbers<[1], [0], [0], [1], [0, 0, 1, 1], [], []>} : vector<34x32xf32>, vector<32x128xf32>, vector<34x128xf32> -> vector<34x128xf32>
    %48 = vector.extract_strided_slice %44 {offsets = [0, 0], sizes = [34, 32], strides = [1, 1]} : vector<34x64xf32> to vector<34x32xf32>
    %49 = vector.extract_strided_slice %44 {offsets = [0, 32], sizes = [34, 32], strides = [1, 1]} : vector<34x64xf32> to vector<34x32xf32>
    %50 = vector.extract_strided_slice %48 {offsets = [0, 0], sizes = [17, 32], strides = [1, 1]} : vector<34x32xf32> to vector<17x32xf32>
    %51 = vector.extract_strided_slice %49 {offsets = [0, 0], sizes = [17, 32], strides = [1, 1]} : vector<34x32xf32> to vector<17x32xf32>
    %52 = vector.extract_strided_slice %47 {offsets = [0, 0], sizes = [17, 128], strides = [1, 1]} : vector<34x128xf32> to vector<17x128xf32>
    %53 = vector.extract_strided_slice %50 {offsets = [0, 0], sizes = [17, 8], strides = [1, 1]} : vector<17x32xf32> to vector<17x8xf32>
    %54 = vector.extract_strided_slice %51 {offsets = [0, 0], sizes = [17, 8], strides = [1, 1]} : vector<17x32xf32> to vector<17x8xf32>
    %cst_22 = arith.constant dense<0.000000e+00> : vector<17x17xf32>
    %55 = tpu.matmul %53, %54, %cst_22 {dimension_numbers = #tpu.dot_dimension_numbers<[1], [1], [0], [0], [0, 0, 1, 0], [], []>} : vector<17x8xf32>, vector<17x8xf32>, vector<17x17xf32> -> vector<17x17xf32>
    %cst_23 = arith.constant dense<0xFF800000> : vector<17xf32>
    %56 = vector.multi_reduction <maximumf>, %55, %cst_23 [1] : vector<17x17xf32> to vector<17xf32>
    %57 = vector.shape_cast %56 : vector<17xf32> to vector<17x1xf32>
    %58 = vector.broadcast %57 : vector<17x1xf32> to vector<17x17xf32>
    %59 = arith.subf %55, %58 : vector<17x17xf32>
    %60 = math.exp %59 : vector<17x17xf32>
    %cst_24 = arith.constant dense<0.000000e+00> : vector<17xf32>
    %61 = vector.multi_reduction <add>, %60, %cst_24 [1] : vector<17x17xf32> to vector<17xf32>
    %62 = vector.shape_cast %61 : vector<17xf32> to vector<17x1xf32>
    %63 = tpu.reciprocal %62 {approx = true} : vector<17x1xf32> -> vector<17x1xf32>
    %64 = vector.broadcast %63 : vector<17x1xf32> to vector<17x17xf32>
    %65 = arith.mulf %60, %64 : vector<17x17xf32>
    %66 = vector.extract_strided_slice %52 {offsets = [0, 0], sizes = [17, 32], strides = [1, 1]} : vector<17x128xf32> to vector<17x32xf32>
    %cst_25 = arith.constant dense<0.000000e+00> : vector<17x32xf32>
    %67 = tpu.matmul %65, %66, %cst_25 {dimension_numbers = #tpu.dot_dimension_numbers<[1], [0], [0], [1], [0, 0, 1, 1], [], []>} : vector<17x17xf32>, vector<17x32xf32>, vector<17x32xf32> -> vector<17x32xf32>
    %68 = vector.extract_strided_slice %50 {offsets = [0, 8], sizes = [17, 8], strides = [1, 1]} : vector<17x32xf32> to vector<17x8xf32>
    %69 = vector.extract_strided_slice %51 {offsets = [0, 8], sizes = [17, 8], strides = [1, 1]} : vector<17x32xf32> to vector<17x8xf32>
    %cst_26 = arith.constant dense<0.000000e+00> : vector<17x17xf32>
    %70 = tpu.matmul %68, %69, %cst_26 {dimension_numbers = #tpu.dot_dimension_numbers<[1], [1], [0], [0], [0, 0, 1, 0], [], []>} : vector<17x8xf32>, vector<17x8xf32>, vector<17x17xf32> -> vector<17x17xf32>
    %cst_27 = arith.constant dense<0xFF800000> : vector<17xf32>
    %71 = vector.multi_reduction <maximumf>, %70, %cst_27 [1] : vector<17x17xf32> to vector<17xf32>
    %72 = vector.shape_cast %71 : vector<17xf32> to vector<17x1xf32>
    %73 = vector.broadcast %72 : vector<17x1xf32> to vector<17x17xf32>
    %74 = arith.subf %70, %73 : vector<17x17xf32>
    %75 = math.exp %74 : vector<17x17xf32>
    %cst_28 = arith.constant dense<0.000000e+00> : vector<17xf32>
    %76 = vector.multi_reduction <add>, %75, %cst_28 [1] : vector<17x17xf32> to vector<17xf32>
    %77 = vector.shape_cast %76 : vector<17xf32> to vector<17x1xf32>
    %78 = tpu.reciprocal %77 {approx = true} : vector<17x1xf32> -> vector<17x1xf32>
    %79 = vector.broadcast %78 : vector<17x1xf32> to vector<17x17xf32>
    %80 = arith.mulf %75, %79 : vector<17x17xf32>
    %81 = vector.extract_strided_slice %52 {offsets = [0, 32], sizes = [17, 32], strides = [1, 1]} : vector<17x128xf32> to vector<17x32xf32>
    %cst_29 = arith.constant dense<0.000000e+00> : vector<17x32xf32>
    %82 = tpu.matmul %80, %81, %cst_29 {dimension_numbers = #tpu.dot_dimension_numbers<[1], [0], [0], [1], [0, 0, 1, 1], [], []>} : vector<17x17xf32>, vector<17x32xf32>, vector<17x32xf32> -> vector<17x32xf32>
    %83 = arith.addf %67, %82 : vector<17x32xf32>
    %84 = vector.extract_strided_slice %50 {offsets = [0, 16], sizes = [17, 8], strides = [1, 1]} : vector<17x32xf32> to vector<17x8xf32>
    %85 = vector.extract_strided_slice %51 {offsets = [0, 16], sizes = [17, 8], strides = [1, 1]} : vector<17x32xf32> to vector<17x8xf32>
    %cst_30 = arith.constant dense<0.000000e+00> : vector<17x17xf32>
    %86 = tpu.matmul %84, %85, %cst_30 {dimension_numbers = #tpu.dot_dimension_numbers<[1], [1], [0], [0], [0, 0, 1, 0], [], []>} : vector<17x8xf32>, vector<17x8xf32>, vector<17x17xf32> -> vector<17x17xf32>
    %cst_31 = arith.constant dense<0xFF800000> : vector<17xf32>
    %87 = vector.multi_reduction <maximumf>, %86, %cst_31 [1] : vector<17x17xf32> to vector<17xf32>
    %88 = vector.shape_cast %87 : vector<17xf32> to vector<17x1xf32>
    %89 = vector.broadcast %88 : vector<17x1xf32> to vector<17x17xf32>
    %90 = arith.subf %86, %89 : vector<17x17xf32>
    %91 = math.exp %90 : vector<17x17xf32>
    %cst_32 = arith.constant dense<0.000000e+00> : vector<17xf32>
    %92 = vector.multi_reduction <add>, %91, %cst_32 [1] : vector<17x17xf32> to vector<17xf32>
    %93 = vector.shape_cast %92 : vector<17xf32> to vector<17x1xf32>
    %94 = tpu.reciprocal %93 {approx = true} : vector<17x1xf32> -> vector<17x1xf32>
    %95 = vector.broadcast %94 : vector<17x1xf32> to vector<17x17xf32>
    %96 = arith.mulf %91, %95 : vector<17x17xf32>
    %97 = vector.extract_strided_slice %52 {offsets = [0, 64], sizes = [17, 32], strides = [1, 1]} : vector<17x128xf32> to vector<17x32xf32>
    %cst_33 = arith.constant dense<0.000000e+00> : vector<17x32xf32>
    %98 = tpu.matmul %96, %97, %cst_33 {dimension_numbers = #tpu.dot_dimension_numbers<[1], [0], [0], [1], [0, 0, 1, 1], [], []>} : vector<17x17xf32>, vector<17x32xf32>, vector<17x32xf32> -> vector<17x32xf32>
    %99 = arith.addf %83, %98 : vector<17x32xf32>
    %100 = vector.extract_strided_slice %50 {offsets = [0, 24], sizes = [17, 8], strides = [1, 1]} : vector<17x32xf32> to vector<17x8xf32>
    %101 = vector.extract_strided_slice %51 {offsets = [0, 24], sizes = [17, 8], strides = [1, 1]} : vector<17x32xf32> to vector<17x8xf32>
    %cst_34 = arith.constant dense<0.000000e+00> : vector<17x17xf32>
    %102 = tpu.matmul %100, %101, %cst_34 {dimension_numbers = #tpu.dot_dimension_numbers<[1], [1], [0], [0], [0, 0, 1, 0], [], []>} : vector<17x8xf32>, vector<17x8xf32>, vector<17x17xf32> -> vector<17x17xf32>
    %cst_35 = arith.constant dense<0xFF800000> : vector<17xf32>
    %103 = vector.multi_reduction <maximumf>, %102, %cst_35 [1] : vector<17x17xf32> to vector<17xf32>
    %104 = vector.shape_cast %103 : vector<17xf32> to vector<17x1xf32>
    %105 = vector.broadcast %104 : vector<17x1xf32> to vector<17x17xf32>
    %106 = arith.subf %102, %105 : vector<17x17xf32>
    %107 = math.exp %106 : vector<17x17xf32>
    %cst_36 = arith.constant dense<0.000000e+00> : vector<17xf32>
    %108 = vector.multi_reduction <add>, %107, %cst_36 [1] : vector<17x17xf32> to vector<17xf32>
    %109 = vector.shape_cast %108 : vector<17xf32> to vector<17x1xf32>
    %110 = tpu.reciprocal %109 {approx = true} : vector<17x1xf32> -> vector<17x1xf32>
    %111 = vector.broadcast %110 : vector<17x1xf32> to vector<17x17xf32>
    %112 = arith.mulf %107, %111 : vector<17x17xf32>
    %113 = vector.extract_strided_slice %52 {offsets = [0, 96], sizes = [17, 32], strides = [1, 1]} : vector<17x128xf32> to vector<17x32xf32>
    %cst_37 = arith.constant dense<0.000000e+00> : vector<17x32xf32>
    %114 = tpu.matmul %112, %113, %cst_37 {dimension_numbers = #tpu.dot_dimension_numbers<[1], [0], [0], [1], [0, 0, 1, 1], [], []>} : vector<17x17xf32>, vector<17x32xf32>, vector<17x32xf32> -> vector<17x32xf32>
    %115 = arith.addf %99, %114 : vector<17x32xf32>
    %116 = vector.extract_strided_slice %48 {offsets = [17, 0], sizes = [17, 32], strides = [1, 1]} : vector<34x32xf32> to vector<17x32xf32>
    %117 = vector.extract_strided_slice %49 {offsets = [17, 0], sizes = [17, 32], strides = [1, 1]} : vector<34x32xf32> to vector<17x32xf32>
    %118 = vector.extract_strided_slice %47 {offsets = [17, 0], sizes = [17, 128], strides = [1, 1]} : vector<34x128xf32> to vector<17x128xf32>
    %119 = vector.extract_strided_slice %116 {offsets = [0, 0], sizes = [17, 8], strides = [1, 1]} : vector<17x32xf32> to vector<17x8xf32>
    %120 = vector.extract_strided_slice %117 {offsets = [0, 0], sizes = [17, 8], strides = [1, 1]} : vector<17x32xf32> to vector<17x8xf32>
    %cst_38 = arith.constant dense<0.000000e+00> : vector<17x17xf32>
    %121 = tpu.matmul %119, %120, %cst_38 {dimension_numbers = #tpu.dot_dimension_numbers<[1], [1], [0], [0], [0, 0, 1, 0], [], []>} : vector<17x8xf32>, vector<17x8xf32>, vector<17x17xf32> -> vector<17x17xf32>
    %cst_39 = arith.constant dense<0xFF800000> : vector<17xf32>
    %122 = vector.multi_reduction <maximumf>, %121, %cst_39 [1] : vector<17x17xf32> to vector<17xf32>
    %123 = vector.shape_cast %122 : vector<17xf32> to vector<17x1xf32>
    %124 = vector.broadcast %123 : vector<17x1xf32> to vector<17x17xf32>
    %125 = arith.subf %121, %124 : vector<17x17xf32>
    %126 = math.exp %125 : vector<17x17xf32>
    %cst_40 = arith.constant dense<0.000000e+00> : vector<17xf32>
    %127 = vector.multi_reduction <add>, %126, %cst_40 [1] : vector<17x17xf32> to vector<17xf32>
    %128 = vector.shape_cast %127 : vector<17xf32> to vector<17x1xf32>
    %129 = tpu.reciprocal %128 {approx = true} : vector<17x1xf32> -> vector<17x1xf32>
    %130 = vector.broadcast %129 : vector<17x1xf32> to vector<17x17xf32>
    %131 = arith.mulf %126, %130 : vector<17x17xf32>
    %132 = vector.extract_strided_slice %118 {offsets = [0, 0], sizes = [17, 32], strides = [1, 1]} : vector<17x128xf32> to vector<17x32xf32>
    %cst_41 = arith.constant dense<0.000000e+00> : vector<17x32xf32>
    %133 = tpu.matmul %131, %132, %cst_41 {dimension_numbers = #tpu.dot_dimension_numbers<[1], [0], [0], [1], [0, 0, 1, 1], [], []>} : vector<17x17xf32>, vector<17x32xf32>, vector<17x32xf32> -> vector<17x32xf32>
    %134 = vector.extract_strided_slice %116 {offsets = [0, 8], sizes = [17, 8], strides = [1, 1]} : vector<17x32xf32> to vector<17x8xf32>
    %135 = vector.extract_strided_slice %117 {offsets = [0, 8], sizes = [17, 8], strides = [1, 1]} : vector<17x32xf32> to vector<17x8xf32>
    %cst_42 = arith.constant dense<0.000000e+00> : vector<17x17xf32>
    %136 = tpu.matmul %134, %135, %cst_42 {dimension_numbers = #tpu.dot_dimension_numbers<[1], [1], [0], [0], [0, 0, 1, 0], [], []>} : vector<17x8xf32>, vector<17x8xf32>, vector<17x17xf32> -> vector<17x17xf32>
    %cst_43 = arith.constant dense<0xFF800000> : vector<17xf32>
    %137 = vector.multi_reduction <maximumf>, %136, %cst_43 [1] : vector<17x17xf32> to vector<17xf32>
    %138 = vector.shape_cast %137 : vector<17xf32> to vector<17x1xf32>
    %139 = vector.broadcast %138 : vector<17x1xf32> to vector<17x17xf32>
    %140 = arith.subf %136, %139 : vector<17x17xf32>
    %141 = math.exp %140 : vector<17x17xf32>
    %cst_44 = arith.constant dense<0.000000e+00> : vector<17xf32>
    %142 = vector.multi_reduction <add>, %141, %cst_44 [1] : vector<17x17xf32> to vector<17xf32>
    %143 = vector.shape_cast %142 : vector<17xf32> to vector<17x1xf32>
    %144 = tpu.reciprocal %143 {approx = true} : vector<17x1xf32> -> vector<17x1xf32>
    %145 = vector.broadcast %144 : vector<17x1xf32> to vector<17x17xf32>
    %146 = arith.mulf %141, %145 : vector<17x17xf32>
    %147 = vector.extract_strided_slice %118 {offsets = [0, 32], sizes = [17, 32], strides = [1, 1]} : vector<17x128xf32> to vector<17x32xf32>
    %cst_45 = arith.constant dense<0.000000e+00> : vector<17x32xf32>
    %148 = tpu.matmul %146, %147, %cst_45 {dimension_numbers = #tpu.dot_dimension_numbers<[1], [0], [0], [1], [0, 0, 1, 1], [], []>} : vector<17x17xf32>, vector<17x32xf32>, vector<17x32xf32> -> vector<17x32xf32>
    %149 = arith.addf %133, %148 : vector<17x32xf32>
    %150 = vector.extract_strided_slice %116 {offsets = [0, 16], sizes = [17, 8], strides = [1, 1]} : vector<17x32xf32> to vector<17x8xf32>
    %151 = vector.extract_strided_slice %117 {offsets = [0, 16], sizes = [17, 8], strides = [1, 1]} : vector<17x32xf32> to vector<17x8xf32>
    %cst_46 = arith.constant dense<0.000000e+00> : vector<17x17xf32>
    %152 = tpu.matmul %150, %151, %cst_46 {dimension_numbers = #tpu.dot_dimension_numbers<[1], [1], [0], [0], [0, 0, 1, 0], [], []>} : vector<17x8xf32>, vector<17x8xf32>, vector<17x17xf32> -> vector<17x17xf32>
    %cst_47 = arith.constant dense<0xFF800000> : vector<17xf32>
    %153 = vector.multi_reduction <maximumf>, %152, %cst_47 [1] : vector<17x17xf32> to vector<17xf32>
    %154 = vector.shape_cast %153 : vector<17xf32> to vector<17x1xf32>
    %155 = vector.broadcast %154 : vector<17x1xf32> to vector<17x17xf32>
    %156 = arith.subf %152, %155 : vector<17x17xf32>
    %157 = math.exp %156 : vector<17x17xf32>
    %cst_48 = arith.constant dense<0.000000e+00> : vector<17xf32>
    %158 = vector.multi_reduction <add>, %157, %cst_48 [1] : vector<17x17xf32> to vector<17xf32>
    %159 = vector.shape_cast %158 : vector<17xf32> to vector<17x1xf32>
    %160 = tpu.reciprocal %159 {approx = true} : vector<17x1xf32> -> vector<17x1xf32>
    %161 = vector.broadcast %160 : vector<17x1xf32> to vector<17x17xf32>
    %162 = arith.mulf %157, %161 : vector<17x17xf32>
    %163 = vector.extract_strided_slice %118 {offsets = [0, 64], sizes = [17, 32], strides = [1, 1]} : vector<17x128xf32> to vector<17x32xf32>
    %cst_49 = arith.constant dense<0.000000e+00> : vector<17x32xf32>
    %164 = tpu.matmul %162, %163, %cst_49 {dimension_numbers = #tpu.dot_dimension_numbers<[1], [0], [0], [1], [0, 0, 1, 1], [], []>} : vector<17x17xf32>, vector<17x32xf32>, vector<17x32xf32> -> vector<17x32xf32>
    %165 = arith.addf %149, %164 : vector<17x32xf32>
    %166 = vector.extract_strided_slice %116 {offsets = [0, 24], sizes = [17, 8], strides = [1, 1]} : vector<17x32xf32> to vector<17x8xf32>
    %167 = vector.extract_strided_slice %117 {offsets = [0, 24], sizes = [17, 8], strides = [1, 1]} : vector<17x32xf32> to vector<17x8xf32>
    %cst_50 = arith.constant dense<0.000000e+00> : vector<17x17xf32>
    %168 = tpu.matmul %166, %167, %cst_50 {dimension_numbers = #tpu.dot_dimension_numbers<[1], [1], [0], [0], [0, 0, 1, 0], [], []>} : vector<17x8xf32>, vector<17x8xf32>, vector<17x17xf32> -> vector<17x17xf32>
    %cst_51 = arith.constant dense<0xFF800000> : vector<17xf32>
    %169 = vector.multi_reduction <maximumf>, %168, %cst_51 [1] : vector<17x17xf32> to vector<17xf32>
    %170 = vector.shape_cast %169 : vector<17xf32> to vector<17x1xf32>
    %171 = vector.broadcast %170 : vector<17x1xf32> to vector<17x17xf32>
    %172 = arith.subf %168, %171 : vector<17x17xf32>
    %173 = math.exp %172 : vector<17x17xf32>
    %cst_52 = arith.constant dense<0.000000e+00> : vector<17xf32>
    %174 = vector.multi_reduction <add>, %173, %cst_52 [1] : vector<17x17xf32> to vector<17xf32>
    %175 = vector.shape_cast %174 : vector<17xf32> to vector<17x1xf32>
    %176 = tpu.reciprocal %175 {approx = true} : vector<17x1xf32> -> vector<17x1xf32>
    %177 = vector.broadcast %176 : vector<17x1xf32> to vector<17x17xf32>
    %178 = arith.mulf %173, %177 : vector<17x17xf32>
    %179 = vector.extract_strided_slice %118 {offsets = [0, 96], sizes = [17, 32], strides = [1, 1]} : vector<17x128xf32> to vector<17x32xf32>
    %cst_53 = arith.constant dense<0.000000e+00> : vector<17x32xf32>
    %180 = tpu.matmul %178, %179, %cst_53 {dimension_numbers = #tpu.dot_dimension_numbers<[1], [0], [0], [1], [0, 0, 1, 1], [], []>} : vector<17x17xf32>, vector<17x32xf32>, vector<17x32xf32> -> vector<17x32xf32>
    %181 = arith.addf %165, %180 : vector<17x32xf32>
    %182 = tpu.concatenate %115, %181 in 0 : vector<17x32xf32>, vector<17x32xf32> -> vector<34x32xf32>
    %183 = arith.addf %5, %182 : vector<34x32xf32>
    %184 = vector.broadcast %13 : vector<1x32xf32> to vector<34x32xf32>
    %185 = arith.addf %183, %184 : vector<34x32xf32>
    %cst_54 = arith.constant dense<0.000000e+00> : vector<34xf32>
    %186 = vector.multi_reduction <add>, %185, %cst_54 [1] : vector<34x32xf32> to vector<34xf32>
    %187 = vector.shape_cast %186 : vector<34xf32> to vector<34x1xf32>
    %cst_55 = arith.constant 3.200000e+01 : f32
    %188 = vector.broadcast %cst_55 : f32 to vector<34x1xf32>
    %189 = arith.divf %187, %188 : vector<34x1xf32>
    %190 = vector.broadcast %189 : vector<34x1xf32> to vector<34x32xf32>
    %191 = arith.subf %185, %190 : vector<34x32xf32>
    %192 = vector.broadcast %189 : vector<34x1xf32> to vector<34x32xf32>
    %193 = arith.subf %185, %192 : vector<34x32xf32>
    %194 = arith.mulf %191, %193 : vector<34x32xf32>
    %cst_56 = arith.constant dense<0.000000e+00> : vector<34xf32>
    %195 = vector.multi_reduction <add>, %194, %cst_56 [1] : vector<34x32xf32> to vector<34xf32>
    %196 = vector.shape_cast %195 : vector<34xf32> to vector<34x1xf32>
    %cst_57 = arith.constant 3.200000e+01 : f32
    %197 = vector.broadcast %cst_57 : f32 to vector<34x1xf32>
    %198 = arith.divf %196, %197 : vector<34x1xf32>
    %199 = vector.broadcast %189 : vector<34x1xf32> to vector<34x32xf32>
    %200 = arith.subf %185, %199 : vector<34x32xf32>
    %cst_58 = arith.constant 9.99999997E-7 : f32
    %201 = vector.broadcast %cst_58 : f32 to vector<34x1xf32>
    %202 = arith.addf %198, %201 : vector<34x1xf32>
    %203 = math.rsqrt %202 : vector<34x1xf32>
    %204 = vector.broadcast %203 : vector<34x1xf32> to vector<34x32xf32>
    %205 = arith.mulf %200, %204 : vector<34x32xf32>
    %206 = vector.broadcast %10 : vector<1x32xf32> to vector<34x32xf32>
    %207 = arith.mulf %205, %206 : vector<34x32xf32>
    %208 = vector.broadcast %11 : vector<1x32xf32> to vector<34x32xf32>
    %209 = arith.addf %207, %208 : vector<34x32xf32>
    %c0_59 = arith.constant 0 : index
    %c0_60 = arith.constant 0 : index
    %c0_61 = arith.constant 0 : index
    %210 = vector.load %arg6[%c0_59, %c0_60, %c0_61] : memref<2x32x128xf32, #tpu.memory_space<vmem>>, vector<1x32x128xf32>
    %211 = vector.shape_cast %210 : vector<1x32x128xf32> to vector<32x128xf32>
    %cst_62 = arith.constant dense<0.000000e+00> : vector<34x128xf32>
    %212 = tpu.matmul %209, %211, %cst_62 {dimension_numbers = #tpu.dot_dimension_numbers<[1], [0], [0], [1], [0, 0, 1, 1], [], []>} : vector<34x32xf32>, vector<32x128xf32>, vector<34x128xf32> -> vector<34x128xf32>
    %213 = vector.broadcast %14 : vector<1x128xf32> to vector<34x128xf32>
    %214 = arith.addf %212, %213 : vector<34x128xf32>
    %215 = arith.mulf %214, %214 : vector<34x128xf32>
    %216 = arith.mulf %214, %215 : vector<34x128xf32>
    %cst_63 = arith.constant 4.471500e-02 : f32
    %217 = vector.broadcast %cst_63 : f32 to vector<34x128xf32>
    %218 = arith.mulf %217, %216 : vector<34x128xf32>
    %219 = arith.addf %214, %218 : vector<34x128xf32>
    %cst_64 = arith.constant 0.797884583 : f32
    %220 = vector.broadcast %cst_64 : f32 to vector<34x128xf32>
    %221 = arith.mulf %220, %219 : vector<34x128xf32>
    %222 = math.tanh %221 : vector<34x128xf32>
    %cst_65 = arith.constant 1.000000e+00 : f32
    %223 = vector.broadcast %cst_65 : f32 to vector<34x128xf32>
    %224 = arith.addf %223, %222 : vector<34x128xf32>
    %cst_66 = arith.constant 5.000000e-01 : f32
    %225 = vector.broadcast %cst_66 : f32 to vector<34x128xf32>
    %226 = arith.mulf %225, %224 : vector<34x128xf32>
    %227 = arith.mulf %214, %226 : vector<34x128xf32>
    %c0_67 = arith.constant 0 : index
    %c0_68 = arith.constant 0 : index
    %c0_69 = arith.constant 0 : index
    %228 = vector.load %arg7[%c0_67, %c0_68, %c0_69] : memref<2x128x32xf32, #tpu.memory_space<vmem>>, vector<1x128x32xf32>
    %229 = vector.shape_cast %228 : vector<1x128x32xf32> to vector<128x32xf32>
    %cst_70 = arith.constant dense<0.000000e+00> : vector<34x32xf32>
    %230 = tpu.matmul %227, %229, %cst_70 {dimension_numbers = #tpu.dot_dimension_numbers<[1], [0], [0], [1], [0, 0, 1, 1], [], []>} : vector<34x128xf32>, vector<128x32xf32>, vector<34x32xf32> -> vector<34x32xf32>
    %231 = arith.addf %185, %230 : vector<34x32xf32>
    %232 = vector.broadcast %15 : vector<1x32xf32> to vector<34x32xf32>
    %233 = arith.addf %231, %232 : vector<34x32xf32>
    %c1 = arith.constant 1 : index
    %c0_71 = arith.constant 0 : index
    %c0_72 = arith.constant 0 : index
    %234 = vector.load %arg8[%c1, %c0_71, %c0_72] : memref<2x8x128xf32, #tpu.memory_space<vmem>>, vector<1x8x128xf32>
    %235 = vector.shape_cast %234 : vector<1x8x128xf32> to vector<8x128xf32>
    %236 = vector.extract_strided_slice %235 {offsets = [0, 0], sizes = [1, 32], strides = [1, 1]} : vector<8x128xf32> to vector<1x32xf32>
    %237 = vector.extract_strided_slice %235 {offsets = [1, 0], sizes = [1, 32], strides = [1, 1]} : vector<8x128xf32> to vector<1x32xf32>
    %238 = vector.extract_strided_slice %235 {offsets = [2, 0], sizes = [1, 32], strides = [1, 1]} : vector<8x128xf32> to vector<1x32xf32>
    %239 = vector.extract_strided_slice %235 {offsets = [3, 0], sizes = [1, 32], strides = [1, 1]} : vector<8x128xf32> to vector<1x32xf32>
    %240 = vector.extract_strided_slice %235 {offsets = [4, 0], sizes = [1, 64], strides = [1, 1]} : vector<8x128xf32> to vector<1x64xf32>
    %241 = vector.extract_strided_slice %235 {offsets = [5, 0], sizes = [1, 32], strides = [1, 1]} : vector<8x128xf32> to vector<1x32xf32>
    %242 = vector.extract_strided_slice %235 {offsets = [6, 0], sizes = [1, 128], strides = [1, 1]} : vector<8x128xf32> to vector<1x128xf32>
    %243 = vector.extract_strided_slice %235 {offsets = [7, 0], sizes = [1, 32], strides = [1, 1]} : vector<8x128xf32> to vector<1x32xf32>
    %cst_73 = arith.constant dense<0.000000e+00> : vector<34xf32>
    %244 = vector.multi_reduction <add>, %233, %cst_73 [1] : vector<34x32xf32> to vector<34xf32>
    %245 = vector.shape_cast %244 : vector<34xf32> to vector<34x1xf32>
    %cst_74 = arith.constant 3.200000e+01 : f32
    %246 = vector.broadcast %cst_74 : f32 to vector<34x1xf32>
    %247 = arith.divf %245, %246 : vector<34x1xf32>
    %248 = vector.broadcast %247 : vector<34x1xf32> to vector<34x32xf32>
    %249 = arith.subf %233, %248 : vector<34x32xf32>
    %250 = vector.broadcast %247 : vector<34x1xf32> to vector<34x32xf32>
    %251 = arith.subf %233, %250 : vector<34x32xf32>
    %252 = arith.mulf %249, %251 : vector<34x32xf32>
    %cst_75 = arith.constant dense<0.000000e+00> : vector<34xf32>
    %253 = vector.multi_reduction <add>, %252, %cst_75 [1] : vector<34x32xf32> to vector<34xf32>
    %254 = vector.shape_cast %253 : vector<34xf32> to vector<34x1xf32>
    %cst_76 = arith.constant 3.200000e+01 : f32
    %255 = vector.broadcast %cst_76 : f32 to vector<34x1xf32>
    %256 = arith.divf %254, %255 : vector<34x1xf32>
    %257 = vector.broadcast %247 : vector<34x1xf32> to vector<34x32xf32>
    %258 = arith.subf %233, %257 : vector<34x32xf32>
    %cst_77 = arith.constant 9.99999997E-7 : f32
    %259 = vector.broadcast %cst_77 : f32 to vector<34x1xf32>
    %260 = arith.addf %256, %259 : vector<34x1xf32>
    %261 = math.rsqrt %260 : vector<34x1xf32>
    %262 = vector.broadcast %261 : vector<34x1xf32> to vector<34x32xf32>
    %263 = arith.mulf %258, %262 : vector<34x32xf32>
    %264 = vector.broadcast %236 : vector<1x32xf32> to vector<34x32xf32>
    %265 = arith.mulf %263, %264 : vector<34x32xf32>
    %266 = vector.broadcast %237 : vector<1x32xf32> to vector<34x32xf32>
    %267 = arith.addf %265, %266 : vector<34x32xf32>
    %c1_78 = arith.constant 1 : index
    %c0_79 = arith.constant 0 : index
    %c0_80 = arith.constant 0 : index
    %268 = vector.load %arg4[%c1_78, %c0_79, %c0_80] : memref<2x32x64xf32, #tpu.memory_space<vmem>>, vector<1x32x64xf32>
    %269 = vector.shape_cast %268 : vector<1x32x64xf32> to vector<32x64xf32>
    %cst_81 = arith.constant dense<0.000000e+00> : vector<34x64xf32>
    %270 = tpu.matmul %267, %269, %cst_81 {dimension_numbers = #tpu.dot_dimension_numbers<[1], [0], [0], [1], [0, 0, 1, 1], [], []>} : vector<34x32xf32>, vector<32x64xf32>, vector<34x64xf32> -> vector<34x64xf32>
    %271 = vector.broadcast %240 : vector<1x64xf32> to vector<34x64xf32>
    %272 = arith.addf %270, %271 : vector<34x64xf32>
    %c1_82 = arith.constant 1 : index
    %c0_83 = arith.constant 0 : index
    %c0_84 = arith.constant 0 : index
    %273 = vector.load %arg5[%c1_82, %c0_83, %c0_84] : memref<2x32x128xf32, #tpu.memory_space<vmem>>, vector<1x32x128xf32>
    %274 = vector.shape_cast %273 : vector<1x32x128xf32> to vector<32x128xf32>
    %cst_85 = arith.constant dense<0.000000e+00> : vector<34x128xf32>
    %275 = tpu.matmul %267, %274, %cst_85 {dimension_numbers = #tpu.dot_dimension_numbers<[1], [0], [0], [1], [0, 0, 1, 1], [], []>} : vector<34x32xf32>, vector<32x128xf32>, vector<34x128xf32> -> vector<34x128xf32>
    %276 = vector.extract_strided_slice %272 {offsets = [0, 0], sizes = [34, 32], strides = [1, 1]} : vector<34x64xf32> to vector<34x32xf32>
    %277 = vector.extract_strided_slice %272 {offsets = [0, 32], sizes = [34, 32], strides = [1, 1]} : vector<34x64xf32> to vector<34x32xf32>
    %278 = vector.extract_strided_slice %276 {offsets = [0, 0], sizes = [17, 32], strides = [1, 1]} : vector<34x32xf32> to vector<17x32xf32>
    %279 = vector.extract_strided_slice %277 {offsets = [0, 0], sizes = [17, 32], strides = [1, 1]} : vector<34x32xf32> to vector<17x32xf32>
    %280 = vector.extract_strided_slice %275 {offsets = [0, 0], sizes = [17, 128], strides = [1, 1]} : vector<34x128xf32> to vector<17x128xf32>
    %281 = vector.extract_strided_slice %278 {offsets = [0, 0], sizes = [17, 8], strides = [1, 1]} : vector<17x32xf32> to vector<17x8xf32>
    %282 = vector.extract_strided_slice %279 {offsets = [0, 0], sizes = [17, 8], strides = [1, 1]} : vector<17x32xf32> to vector<17x8xf32>
    %cst_86 = arith.constant dense<0.000000e+00> : vector<17x17xf32>
    %283 = tpu.matmul %281, %282, %cst_86 {dimension_numbers = #tpu.dot_dimension_numbers<[1], [1], [0], [0], [0, 0, 1, 0], [], []>} : vector<17x8xf32>, vector<17x8xf32>, vector<17x17xf32> -> vector<17x17xf32>
    %cst_87 = arith.constant dense<0xFF800000> : vector<17xf32>
    %284 = vector.multi_reduction <maximumf>, %283, %cst_87 [1] : vector<17x17xf32> to vector<17xf32>
    %285 = vector.shape_cast %284 : vector<17xf32> to vector<17x1xf32>
    %286 = vector.broadcast %285 : vector<17x1xf32> to vector<17x17xf32>
    %287 = arith.subf %283, %286 : vector<17x17xf32>
    %288 = math.exp %287 : vector<17x17xf32>
    %cst_88 = arith.constant dense<0.000000e+00> : vector<17xf32>
    %289 = vector.multi_reduction <add>, %288, %cst_88 [1] : vector<17x17xf32> to vector<17xf32>
    %290 = vector.shape_cast %289 : vector<17xf32> to vector<17x1xf32>
    %291 = tpu.reciprocal %290 {approx = true} : vector<17x1xf32> -> vector<17x1xf32>
    %292 = vector.broadcast %291 : vector<17x1xf32> to vector<17x17xf32>
    %293 = arith.mulf %288, %292 : vector<17x17xf32>
    %294 = vector.extract_strided_slice %280 {offsets = [0, 0], sizes = [17, 32], strides = [1, 1]} : vector<17x128xf32> to vector<17x32xf32>
    %cst_89 = arith.constant dense<0.000000e+00> : vector<17x32xf32>
    %295 = tpu.matmul %293, %294, %cst_89 {dimension_numbers = #tpu.dot_dimension_numbers<[1], [0], [0], [1], [0, 0, 1, 1], [], []>} : vector<17x17xf32>, vector<17x32xf32>, vector<17x32xf32> -> vector<17x32xf32>
    %296 = vector.extract_strided_slice %278 {offsets = [0, 8], sizes = [17, 8], strides = [1, 1]} : vector<17x32xf32> to vector<17x8xf32>
    %297 = vector.extract_strided_slice %279 {offsets = [0, 8], sizes = [17, 8], strides = [1, 1]} : vector<17x32xf32> to vector<17x8xf32>
    %cst_90 = arith.constant dense<0.000000e+00> : vector<17x17xf32>
    %298 = tpu.matmul %296, %297, %cst_90 {dimension_numbers = #tpu.dot_dimension_numbers<[1], [1], [0], [0], [0, 0, 1, 0], [], []>} : vector<17x8xf32>, vector<17x8xf32>, vector<17x17xf32> -> vector<17x17xf32>
    %cst_91 = arith.constant dense<0xFF800000> : vector<17xf32>
    %299 = vector.multi_reduction <maximumf>, %298, %cst_91 [1] : vector<17x17xf32> to vector<17xf32>
    %300 = vector.shape_cast %299 : vector<17xf32> to vector<17x1xf32>
    %301 = vector.broadcast %300 : vector<17x1xf32> to vector<17x17xf32>
    %302 = arith.subf %298, %301 : vector<17x17xf32>
    %303 = math.exp %302 : vector<17x17xf32>
    %cst_92 = arith.constant dense<0.000000e+00> : vector<17xf32>
    %304 = vector.multi_reduction <add>, %303, %cst_92 [1] : vector<17x17xf32> to vector<17xf32>
    %305 = vector.shape_cast %304 : vector<17xf32> to vector<17x1xf32>
    %306 = tpu.reciprocal %305 {approx = true} : vector<17x1xf32> -> vector<17x1xf32>
    %307 = vector.broadcast %306 : vector<17x1xf32> to vector<17x17xf32>
    %308 = arith.mulf %303, %307 : vector<17x17xf32>
    %309 = vector.extract_strided_slice %280 {offsets = [0, 32], sizes = [17, 32], strides = [1, 1]} : vector<17x128xf32> to vector<17x32xf32>
    %cst_93 = arith.constant dense<0.000000e+00> : vector<17x32xf32>
    %310 = tpu.matmul %308, %309, %cst_93 {dimension_numbers = #tpu.dot_dimension_numbers<[1], [0], [0], [1], [0, 0, 1, 1], [], []>} : vector<17x17xf32>, vector<17x32xf32>, vector<17x32xf32> -> vector<17x32xf32>
    %311 = arith.addf %295, %310 : vector<17x32xf32>
    %312 = vector.extract_strided_slice %278 {offsets = [0, 16], sizes = [17, 8], strides = [1, 1]} : vector<17x32xf32> to vector<17x8xf32>
    %313 = vector.extract_strided_slice %279 {offsets = [0, 16], sizes = [17, 8], strides = [1, 1]} : vector<17x32xf32> to vector<17x8xf32>
    %cst_94 = arith.constant dense<0.000000e+00> : vector<17x17xf32>
    %314 = tpu.matmul %312, %313, %cst_94 {dimension_numbers = #tpu.dot_dimension_numbers<[1], [1], [0], [0], [0, 0, 1, 0], [], []>} : vector<17x8xf32>, vector<17x8xf32>, vector<17x17xf32> -> vector<17x17xf32>
    %cst_95 = arith.constant dense<0xFF800000> : vector<17xf32>
    %315 = vector.multi_reduction <maximumf>, %314, %cst_95 [1] : vector<17x17xf32> to vector<17xf32>
    %316 = vector.shape_cast %315 : vector<17xf32> to vector<17x1xf32>
    %317 = vector.broadcast %316 : vector<17x1xf32> to vector<17x17xf32>
    %318 = arith.subf %314, %317 : vector<17x17xf32>
    %319 = math.exp %318 : vector<17x17xf32>
    %cst_96 = arith.constant dense<0.000000e+00> : vector<17xf32>
    %320 = vector.multi_reduction <add>, %319, %cst_96 [1] : vector<17x17xf32> to vector<17xf32>
    %321 = vector.shape_cast %320 : vector<17xf32> to vector<17x1xf32>
    %322 = tpu.reciprocal %321 {approx = true} : vector<17x1xf32> -> vector<17x1xf32>
    %323 = vector.broadcast %322 : vector<17x1xf32> to vector<17x17xf32>
    %324 = arith.mulf %319, %323 : vector<17x17xf32>
    %325 = vector.extract_strided_slice %280 {offsets = [0, 64], sizes = [17, 32], strides = [1, 1]} : vector<17x128xf32> to vector<17x32xf32>
    %cst_97 = arith.constant dense<0.000000e+00> : vector<17x32xf32>
    %326 = tpu.matmul %324, %325, %cst_97 {dimension_numbers = #tpu.dot_dimension_numbers<[1], [0], [0], [1], [0, 0, 1, 1], [], []>} : vector<17x17xf32>, vector<17x32xf32>, vector<17x32xf32> -> vector<17x32xf32>
    %327 = arith.addf %311, %326 : vector<17x32xf32>
    %328 = vector.extract_strided_slice %278 {offsets = [0, 24], sizes = [17, 8], strides = [1, 1]} : vector<17x32xf32> to vector<17x8xf32>
    %329 = vector.extract_strided_slice %279 {offsets = [0, 24], sizes = [17, 8], strides = [1, 1]} : vector<17x32xf32> to vector<17x8xf32>
    %cst_98 = arith.constant dense<0.000000e+00> : vector<17x17xf32>
    %330 = tpu.matmul %328, %329, %cst_98 {dimension_numbers = #tpu.dot_dimension_numbers<[1], [1], [0], [0], [0, 0, 1, 0], [], []>} : vector<17x8xf32>, vector<17x8xf32>, vector<17x17xf32> -> vector<17x17xf32>
    %cst_99 = arith.constant dense<0xFF800000> : vector<17xf32>
    %331 = vector.multi_reduction <maximumf>, %330, %cst_99 [1] : vector<17x17xf32> to vector<17xf32>
    %332 = vector.shape_cast %331 : vector<17xf32> to vector<17x1xf32>
    %333 = vector.broadcast %332 : vector<17x1xf32> to vector<17x17xf32>
    %334 = arith.subf %330, %333 : vector<17x17xf32>
    %335 = math.exp %334 : vector<17x17xf32>
    %cst_100 = arith.constant dense<0.000000e+00> : vector<17xf32>
    %336 = vector.multi_reduction <add>, %335, %cst_100 [1] : vector<17x17xf32> to vector<17xf32>
    %337 = vector.shape_cast %336 : vector<17xf32> to vector<17x1xf32>
    %338 = tpu.reciprocal %337 {approx = true} : vector<17x1xf32> -> vector<17x1xf32>
    %339 = vector.broadcast %338 : vector<17x1xf32> to vector<17x17xf32>
    %340 = arith.mulf %335, %339 : vector<17x17xf32>
    %341 = vector.extract_strided_slice %280 {offsets = [0, 96], sizes = [17, 32], strides = [1, 1]} : vector<17x128xf32> to vector<17x32xf32>
    %cst_101 = arith.constant dense<0.000000e+00> : vector<17x32xf32>
    %342 = tpu.matmul %340, %341, %cst_101 {dimension_numbers = #tpu.dot_dimension_numbers<[1], [0], [0], [1], [0, 0, 1, 1], [], []>} : vector<17x17xf32>, vector<17x32xf32>, vector<17x32xf32> -> vector<17x32xf32>
    %343 = arith.addf %327, %342 : vector<17x32xf32>
    %344 = vector.extract_strided_slice %276 {offsets = [17, 0], sizes = [17, 32], strides = [1, 1]} : vector<34x32xf32> to vector<17x32xf32>
    %345 = vector.extract_strided_slice %277 {offsets = [17, 0], sizes = [17, 32], strides = [1, 1]} : vector<34x32xf32> to vector<17x32xf32>
    %346 = vector.extract_strided_slice %275 {offsets = [17, 0], sizes = [17, 128], strides = [1, 1]} : vector<34x128xf32> to vector<17x128xf32>
    %347 = vector.extract_strided_slice %344 {offsets = [0, 0], sizes = [17, 8], strides = [1, 1]} : vector<17x32xf32> to vector<17x8xf32>
    %348 = vector.extract_strided_slice %345 {offsets = [0, 0], sizes = [17, 8], strides = [1, 1]} : vector<17x32xf32> to vector<17x8xf32>
    %cst_102 = arith.constant dense<0.000000e+00> : vector<17x17xf32>
    %349 = tpu.matmul %347, %348, %cst_102 {dimension_numbers = #tpu.dot_dimension_numbers<[1], [1], [0], [0], [0, 0, 1, 0], [], []>} : vector<17x8xf32>, vector<17x8xf32>, vector<17x17xf32> -> vector<17x17xf32>
    %cst_103 = arith.constant dense<0xFF800000> : vector<17xf32>
    %350 = vector.multi_reduction <maximumf>, %349, %cst_103 [1] : vector<17x17xf32> to vector<17xf32>
    %351 = vector.shape_cast %350 : vector<17xf32> to vector<17x1xf32>
    %352 = vector.broadcast %351 : vector<17x1xf32> to vector<17x17xf32>
    %353 = arith.subf %349, %352 : vector<17x17xf32>
    %354 = math.exp %353 : vector<17x17xf32>
    %cst_104 = arith.constant dense<0.000000e+00> : vector<17xf32>
    %355 = vector.multi_reduction <add>, %354, %cst_104 [1] : vector<17x17xf32> to vector<17xf32>
    %356 = vector.shape_cast %355 : vector<17xf32> to vector<17x1xf32>
    %357 = tpu.reciprocal %356 {approx = true} : vector<17x1xf32> -> vector<17x1xf32>
    %358 = vector.broadcast %357 : vector<17x1xf32> to vector<17x17xf32>
    %359 = arith.mulf %354, %358 : vector<17x17xf32>
    %360 = vector.extract_strided_slice %346 {offsets = [0, 0], sizes = [17, 32], strides = [1, 1]} : vector<17x128xf32> to vector<17x32xf32>
    %cst_105 = arith.constant dense<0.000000e+00> : vector<17x32xf32>
    %361 = tpu.matmul %359, %360, %cst_105 {dimension_numbers = #tpu.dot_dimension_numbers<[1], [0], [0], [1], [0, 0, 1, 1], [], []>} : vector<17x17xf32>, vector<17x32xf32>, vector<17x32xf32> -> vector<17x32xf32>
    %362 = vector.extract_strided_slice %344 {offsets = [0, 8], sizes = [17, 8], strides = [1, 1]} : vector<17x32xf32> to vector<17x8xf32>
    %363 = vector.extract_strided_slice %345 {offsets = [0, 8], sizes = [17, 8], strides = [1, 1]} : vector<17x32xf32> to vector<17x8xf32>
    %cst_106 = arith.constant dense<0.000000e+00> : vector<17x17xf32>
    %364 = tpu.matmul %362, %363, %cst_106 {dimension_numbers = #tpu.dot_dimension_numbers<[1], [1], [0], [0], [0, 0, 1, 0], [], []>} : vector<17x8xf32>, vector<17x8xf32>, vector<17x17xf32> -> vector<17x17xf32>
    %cst_107 = arith.constant dense<0xFF800000> : vector<17xf32>
    %365 = vector.multi_reduction <maximumf>, %364, %cst_107 [1] : vector<17x17xf32> to vector<17xf32>
    %366 = vector.shape_cast %365 : vector<17xf32> to vector<17x1xf32>
    %367 = vector.broadcast %366 : vector<17x1xf32> to vector<17x17xf32>
    %368 = arith.subf %364, %367 : vector<17x17xf32>
    %369 = math.exp %368 : vector<17x17xf32>
    %cst_108 = arith.constant dense<0.000000e+00> : vector<17xf32>
    %370 = vector.multi_reduction <add>, %369, %cst_108 [1] : vector<17x17xf32> to vector<17xf32>
    %371 = vector.shape_cast %370 : vector<17xf32> to vector<17x1xf32>
    %372 = tpu.reciprocal %371 {approx = true} : vector<17x1xf32> -> vector<17x1xf32>
    %373 = vector.broadcast %372 : vector<17x1xf32> to vector<17x17xf32>
    %374 = arith.mulf %369, %373 : vector<17x17xf32>
    %375 = vector.extract_strided_slice %346 {offsets = [0, 32], sizes = [17, 32], strides = [1, 1]} : vector<17x128xf32> to vector<17x32xf32>
    %cst_109 = arith.constant dense<0.000000e+00> : vector<17x32xf32>
    %376 = tpu.matmul %374, %375, %cst_109 {dimension_numbers = #tpu.dot_dimension_numbers<[1], [0], [0], [1], [0, 0, 1, 1], [], []>} : vector<17x17xf32>, vector<17x32xf32>, vector<17x32xf32> -> vector<17x32xf32>
    %377 = arith.addf %361, %376 : vector<17x32xf32>
    %378 = vector.extract_strided_slice %344 {offsets = [0, 16], sizes = [17, 8], strides = [1, 1]} : vector<17x32xf32> to vector<17x8xf32>
    %379 = vector.extract_strided_slice %345 {offsets = [0, 16], sizes = [17, 8], strides = [1, 1]} : vector<17x32xf32> to vector<17x8xf32>
    %cst_110 = arith.constant dense<0.000000e+00> : vector<17x17xf32>
    %380 = tpu.matmul %378, %379, %cst_110 {dimension_numbers = #tpu.dot_dimension_numbers<[1], [1], [0], [0], [0, 0, 1, 0], [], []>} : vector<17x8xf32>, vector<17x8xf32>, vector<17x17xf32> -> vector<17x17xf32>
    %cst_111 = arith.constant dense<0xFF800000> : vector<17xf32>
    %381 = vector.multi_reduction <maximumf>, %380, %cst_111 [1] : vector<17x17xf32> to vector<17xf32>
    %382 = vector.shape_cast %381 : vector<17xf32> to vector<17x1xf32>
    %383 = vector.broadcast %382 : vector<17x1xf32> to vector<17x17xf32>
    %384 = arith.subf %380, %383 : vector<17x17xf32>
    %385 = math.exp %384 : vector<17x17xf32>
    %cst_112 = arith.constant dense<0.000000e+00> : vector<17xf32>
    %386 = vector.multi_reduction <add>, %385, %cst_112 [1] : vector<17x17xf32> to vector<17xf32>
    %387 = vector.shape_cast %386 : vector<17xf32> to vector<17x1xf32>
    %388 = tpu.reciprocal %387 {approx = true} : vector<17x1xf32> -> vector<17x1xf32>
    %389 = vector.broadcast %388 : vector<17x1xf32> to vector<17x17xf32>
    %390 = arith.mulf %385, %389 : vector<17x17xf32>
    %391 = vector.extract_strided_slice %346 {offsets = [0, 64], sizes = [17, 32], strides = [1, 1]} : vector<17x128xf32> to vector<17x32xf32>
    %cst_113 = arith.constant dense<0.000000e+00> : vector<17x32xf32>
    %392 = tpu.matmul %390, %391, %cst_113 {dimension_numbers = #tpu.dot_dimension_numbers<[1], [0], [0], [1], [0, 0, 1, 1], [], []>} : vector<17x17xf32>, vector<17x32xf32>, vector<17x32xf32> -> vector<17x32xf32>
    %393 = arith.addf %377, %392 : vector<17x32xf32>
    %394 = vector.extract_strided_slice %344 {offsets = [0, 24], sizes = [17, 8], strides = [1, 1]} : vector<17x32xf32> to vector<17x8xf32>
    %395 = vector.extract_strided_slice %345 {offsets = [0, 24], sizes = [17, 8], strides = [1, 1]} : vector<17x32xf32> to vector<17x8xf32>
    %cst_114 = arith.constant dense<0.000000e+00> : vector<17x17xf32>
    %396 = tpu.matmul %394, %395, %cst_114 {dimension_numbers = #tpu.dot_dimension_numbers<[1], [1], [0], [0], [0, 0, 1, 0], [], []>} : vector<17x8xf32>, vector<17x8xf32>, vector<17x17xf32> -> vector<17x17xf32>
    %cst_115 = arith.constant dense<0xFF800000> : vector<17xf32>
    %397 = vector.multi_reduction <maximumf>, %396, %cst_115 [1] : vector<17x17xf32> to vector<17xf32>
    %398 = vector.shape_cast %397 : vector<17xf32> to vector<17x1xf32>
    %399 = vector.broadcast %398 : vector<17x1xf32> to vector<17x17xf32>
    %400 = arith.subf %396, %399 : vector<17x17xf32>
    %401 = math.exp %400 : vector<17x17xf32>
    %cst_116 = arith.constant dense<0.000000e+00> : vector<17xf32>
    %402 = vector.multi_reduction <add>, %401, %cst_116 [1] : vector<17x17xf32> to vector<17xf32>
    %403 = vector.shape_cast %402 : vector<17xf32> to vector<17x1xf32>
    %404 = tpu.reciprocal %403 {approx = true} : vector<17x1xf32> -> vector<17x1xf32>
    %405 = vector.broadcast %404 : vector<17x1xf32> to vector<17x17xf32>
    %406 = arith.mulf %401, %405 : vector<17x17xf32>
    %407 = vector.extract_strided_slice %346 {offsets = [0, 96], sizes = [17, 32], strides = [1, 1]} : vector<17x128xf32> to vector<17x32xf32>
    %cst_117 = arith.constant dense<0.000000e+00> : vector<17x32xf32>
    %408 = tpu.matmul %406, %407, %cst_117 {dimension_numbers = #tpu.dot_dimension_numbers<[1], [0], [0], [1], [0, 0, 1, 1], [], []>} : vector<17x17xf32>, vector<17x32xf32>, vector<17x32xf32> -> vector<17x32xf32>
    %409 = arith.addf %393, %408 : vector<17x32xf32>
    %410 = tpu.concatenate %343, %409 in 0 : vector<17x32xf32>, vector<17x32xf32> -> vector<34x32xf32>
    %411 = arith.addf %233, %410 : vector<34x32xf32>
    %412 = vector.broadcast %241 : vector<1x32xf32> to vector<34x32xf32>
    %413 = arith.addf %411, %412 : vector<34x32xf32>
    %cst_118 = arith.constant dense<0.000000e+00> : vector<34xf32>
    %414 = vector.multi_reduction <add>, %413, %cst_118 [1] : vector<34x32xf32> to vector<34xf32>
    %415 = vector.shape_cast %414 : vector<34xf32> to vector<34x1xf32>
    %cst_119 = arith.constant 3.200000e+01 : f32
    %416 = vector.broadcast %cst_119 : f32 to vector<34x1xf32>
    %417 = arith.divf %415, %416 : vector<34x1xf32>
    %418 = vector.broadcast %417 : vector<34x1xf32> to vector<34x32xf32>
    %419 = arith.subf %413, %418 : vector<34x32xf32>
    %420 = vector.broadcast %417 : vector<34x1xf32> to vector<34x32xf32>
    %421 = arith.subf %413, %420 : vector<34x32xf32>
    %422 = arith.mulf %419, %421 : vector<34x32xf32>
    %cst_120 = arith.constant dense<0.000000e+00> : vector<34xf32>
    %423 = vector.multi_reduction <add>, %422, %cst_120 [1] : vector<34x32xf32> to vector<34xf32>
    %424 = vector.shape_cast %423 : vector<34xf32> to vector<34x1xf32>
    %cst_121 = arith.constant 3.200000e+01 : f32
    %425 = vector.broadcast %cst_121 : f32 to vector<34x1xf32>
    %426 = arith.divf %424, %425 : vector<34x1xf32>
    %427 = vector.broadcast %417 : vector<34x1xf32> to vector<34x32xf32>
    %428 = arith.subf %413, %427 : vector<34x32xf32>
    %cst_122 = arith.constant 9.99999997E-7 : f32
    %429 = vector.broadcast %cst_122 : f32 to vector<34x1xf32>
    %430 = arith.addf %426, %429 : vector<34x1xf32>
    %431 = math.rsqrt %430 : vector<34x1xf32>
    %432 = vector.broadcast %431 : vector<34x1xf32> to vector<34x32xf32>
    %433 = arith.mulf %428, %432 : vector<34x32xf32>
    %434 = vector.broadcast %238 : vector<1x32xf32> to vector<34x32xf32>
    %435 = arith.mulf %433, %434 : vector<34x32xf32>
    %436 = vector.broadcast %239 : vector<1x32xf32> to vector<34x32xf32>
    %437 = arith.addf %435, %436 : vector<34x32xf32>
    %c1_123 = arith.constant 1 : index
    %c0_124 = arith.constant 0 : index
    %c0_125 = arith.constant 0 : index
    %438 = vector.load %arg6[%c1_123, %c0_124, %c0_125] : memref<2x32x128xf32, #tpu.memory_space<vmem>>, vector<1x32x128xf32>
    %439 = vector.shape_cast %438 : vector<1x32x128xf32> to vector<32x128xf32>
    %cst_126 = arith.constant dense<0.000000e+00> : vector<34x128xf32>
    %440 = tpu.matmul %437, %439, %cst_126 {dimension_numbers = #tpu.dot_dimension_numbers<[1], [0], [0], [1], [0, 0, 1, 1], [], []>} : vector<34x32xf32>, vector<32x128xf32>, vector<34x128xf32> -> vector<34x128xf32>
    %441 = vector.broadcast %242 : vector<1x128xf32> to vector<34x128xf32>
    %442 = arith.addf %440, %441 : vector<34x128xf32>
    %443 = arith.mulf %442, %442 : vector<34x128xf32>
    %444 = arith.mulf %442, %443 : vector<34x128xf32>
    %cst_127 = arith.constant 4.471500e-02 : f32
    %445 = vector.broadcast %cst_127 : f32 to vector<34x128xf32>
    %446 = arith.mulf %445, %444 : vector<34x128xf32>
    %447 = arith.addf %442, %446 : vector<34x128xf32>
    %cst_128 = arith.constant 0.797884583 : f32
    %448 = vector.broadcast %cst_128 : f32 to vector<34x128xf32>
    %449 = arith.mulf %448, %447 : vector<34x128xf32>
    %450 = math.tanh %449 : vector<34x128xf32>
    %cst_129 = arith.constant 1.000000e+00 : f32
    %451 = vector.broadcast %cst_129 : f32 to vector<34x128xf32>
    %452 = arith.addf %451, %450 : vector<34x128xf32>
    %cst_130 = arith.constant 5.000000e-01 : f32
    %453 = vector.broadcast %cst_130 : f32 to vector<34x128xf32>
    %454 = arith.mulf %453, %452 : vector<34x128xf32>
    %455 = arith.mulf %442, %454 : vector<34x128xf32>
    %c1_131 = arith.constant 1 : index
    %c0_132 = arith.constant 0 : index
    %c0_133 = arith.constant 0 : index
    %456 = vector.load %arg7[%c1_131, %c0_132, %c0_133] : memref<2x128x32xf32, #tpu.memory_space<vmem>>, vector<1x128x32xf32>
    %457 = vector.shape_cast %456 : vector<1x128x32xf32> to vector<128x32xf32>
    %cst_134 = arith.constant dense<0.000000e+00> : vector<34x32xf32>
    %458 = tpu.matmul %455, %457, %cst_134 {dimension_numbers = #tpu.dot_dimension_numbers<[1], [0], [0], [1], [0, 0, 1, 1], [], []>} : vector<34x128xf32>, vector<128x32xf32>, vector<34x32xf32> -> vector<34x32xf32>
    %459 = arith.addf %413, %458 : vector<34x32xf32>
    %460 = vector.broadcast %243 : vector<1x32xf32> to vector<34x32xf32>
    %461 = arith.addf %459, %460 : vector<34x32xf32>
    %462 = vector.extract_strided_slice %461 {offsets = [0, 0], sizes = [1, 32], strides = [1, 1]} : vector<34x32xf32> to vector<1x32xf32>
    %463 = vector.extract_strided_slice %461 {offsets = [17, 0], sizes = [1, 32], strides = [1, 1]} : vector<34x32xf32> to vector<1x32xf32>
    %464 = tpu.concatenate %462, %463 in 0 : vector<1x32xf32>, vector<1x32xf32> -> vector<2x32xf32>
    %c0_135 = arith.constant 0 : index
    %c0_136 = arith.constant 0 : index
    %465 = vector.load %arg9[%c0_135, %c0_136] : memref<2x32xf32, #tpu.memory_space<vmem>>, vector<1x32xf32>
    %c1_137 = arith.constant 1 : index
    %c0_138 = arith.constant 0 : index
    %466 = vector.load %arg9[%c1_137, %c0_138] : memref<2x32xf32, #tpu.memory_space<vmem>>, vector<1x32xf32>
    %cst_139 = arith.constant dense<0.000000e+00> : vector<2xf32>
    %467 = vector.multi_reduction <add>, %464, %cst_139 [1] : vector<2x32xf32> to vector<2xf32>
    %468 = vector.shape_cast %467 : vector<2xf32> to vector<2x1xf32>
    %cst_140 = arith.constant 3.200000e+01 : f32
    %469 = vector.broadcast %cst_140 : f32 to vector<2x1xf32>
    %470 = arith.divf %468, %469 : vector<2x1xf32>
    %471 = vector.broadcast %470 : vector<2x1xf32> to vector<2x32xf32>
    %472 = arith.subf %464, %471 : vector<2x32xf32>
    %473 = vector.broadcast %470 : vector<2x1xf32> to vector<2x32xf32>
    %474 = arith.subf %464, %473 : vector<2x32xf32>
    %475 = arith.mulf %472, %474 : vector<2x32xf32>
    %cst_141 = arith.constant dense<0.000000e+00> : vector<2xf32>
    %476 = vector.multi_reduction <add>, %475, %cst_141 [1] : vector<2x32xf32> to vector<2xf32>
    %477 = vector.shape_cast %476 : vector<2xf32> to vector<2x1xf32>
    %cst_142 = arith.constant 3.200000e+01 : f32
    %478 = vector.broadcast %cst_142 : f32 to vector<2x1xf32>
    %479 = arith.divf %477, %478 : vector<2x1xf32>
    %480 = vector.broadcast %470 : vector<2x1xf32> to vector<2x32xf32>
    %481 = arith.subf %464, %480 : vector<2x32xf32>
    %cst_143 = arith.constant 9.99999997E-7 : f32
    %482 = vector.broadcast %cst_143 : f32 to vector<2x1xf32>
    %483 = arith.addf %479, %482 : vector<2x1xf32>
    %484 = math.rsqrt %483 : vector<2x1xf32>
    %485 = vector.broadcast %484 : vector<2x1xf32> to vector<2x32xf32>
    %486 = arith.mulf %481, %485 : vector<2x32xf32>
    %487 = vector.broadcast %465 : vector<1x32xf32> to vector<2x32xf32>
    %488 = arith.mulf %486, %487 : vector<2x32xf32>
    %489 = vector.broadcast %466 : vector<1x32xf32> to vector<2x32xf32>
    %490 = arith.addf %488, %489 : vector<2x32xf32>
    %c0_144 = arith.constant 0 : index
    %c0_145 = arith.constant 0 : index
    %c0_146 = arith.constant 0 : index
    %491 = vector.load %arg10[%c0_144, %c0_145, %c0_146] : memref<1x2x32xf32, #tpu.memory_space<vmem>>, vector<1x2x32xf32>
    %492 = vector.shape_cast %491 : vector<1x2x32xf32> to vector<2x32xf32>
    %493 = vector.shape_cast %490 : vector<2x32xf32> to vector<1x2x32xf32>
    tpu.vector_store %arg10[%c0_144, %c0_145, %c0_146], %493 {strides = array<i32>} : memref<1x2x32xf32, #tpu.memory_space<vmem>>, vector<1x2x32xf32>,
    return
  }
  func.func @transform_0(%arg0: i32) -> (i32, i32, i32) {
    %c0_i32 = arith.constant 0 : i32
    %c0_i32_0 = arith.constant 0 : i32
    %c0_i32_1 = arith.constant 0 : i32
    return %arg0, %c0_i32, %c0_i32_0 : i32, i32, i32
  }
  func.func @transform_1(%arg0: i32) -> (i32, i32) {
    %c0_i32 = arith.constant 0 : i32
    %c0_i32_0 = arith.constant 0 : i32
    %c0_i32_1 = arith.constant 0 : i32
    return %c0_i32, %c0_i32_0 : i32, i32
  }
  func.func @transform_2(%arg0: i32) -> (i32, i32) {
    %c0_i32 = arith.constant 0 : i32
    %c0_i32_0 = arith.constant 0 : i32
    %c0_i32_1 = arith.constant 0 : i32
    return %c0_i32, %c0_i32_0 : i32, i32
  }
  func.func @transform_3(%arg0: i32) -> (i32, i32, i32) {
    %c0_i32 = arith.constant 0 : i32
    %c0_i32_0 = arith.constant 0 : i32
    %c0_i32_1 = arith.constant 0 : i32
    %c0_i32_2 = arith.constant 0 : i32
    return %c0_i32, %c0_i32_0, %c0_i32_1 : i32, i32, i32
  }
  func.func @transform_4(%arg0: i32) -> (i32, i32, i32) {
    %c0_i32 = arith.constant 0 : i32
    %c0_i32_0 = arith.constant 0 : i32
    %c0_i32_1 = arith.constant 0 : i32
    %c0_i32_2 = arith.constant 0 : i32
    return %c0_i32, %c0_i32_0, %c0_i32_1 : i32, i32, i32
  }
  func.func @transform_5(%arg0: i32) -> (i32, i32, i32) {
    %c0_i32 = arith.constant 0 : i32
    %c0_i32_0 = arith.constant 0 : i32
    %c0_i32_1 = arith.constant 0 : i32
    %c0_i32_2 = arith.constant 0 : i32
    return %c0_i32, %c0_i32_0, %c0_i32_1 : i32, i32, i32
  }
  func.func @transform_6(%arg0: i32) -> (i32, i32, i32) {
    %c0_i32 = arith.constant 0 : i32
    %c0_i32_0 = arith.constant 0 : i32
    %c0_i32_1 = arith.constant 0 : i32
    %c0_i32_2 = arith.constant 0 : i32
    return %c0_i32, %c0_i32_0, %c0_i32_1 : i32, i32, i32
  }
  func.func @transform_7(%arg0: i32) -> (i32, i32, i32) {
    %c0_i32 = arith.constant 0 : i32
    %c0_i32_0 = arith.constant 0 : i32
    %c0_i32_1 = arith.constant 0 : i32
    %c0_i32_2 = arith.constant 0 : i32
    return %c0_i32, %c0_i32_0, %c0_i32_1 : i32, i32, i32
  }
  func.func @transform_8(%arg0: i32) -> (i32, i32) {
    %c0_i32 = arith.constant 0 : i32
    %c0_i32_0 = arith.constant 0 : i32
    %c0_i32_1 = arith.constant 0 : i32
    return %c0_i32, %c0_i32_0 : i32, i32
  }
  func.func @transform_9(%arg0: i32) -> (i32, i32, i32) {
    %c0_i32 = arith.constant 0 : i32
    %c0_i32_0 = arith.constant 0 : i32
    %c0_i32_1 = arith.constant 0 : i32
    return %arg0, %c0_i32, %c0_i32_0 : i32, i32, i32
  }
}

</mosaic_0001>

<bundles_post_ra>
// kernel: tpu_custom_call.1
= control target key start
LH: loop header
LB: loop body
LE: loop exit
PB: predicated region body
PF: predicated region fallthrough
CT: control target
= control target key end

     0   :  { %v7298_v3 = vmov 0.0|0.0   ;;  %vm7299_vm0 = vmmov 0   ;;  %v7300_v6 = vmov 0.0   ;;  %s9289_s0 = inlined_call_operand.vmem [shape: f32[1,34,48], index: 0, kind: input, shape index: {}]   ;;  %s9290_s1 = inlined_call_operand.vmem [shape: f32[48,32], index: 1, kind: input, shape index: {}]   ;;  %s9291_s2 = inlined_call_operand.vmem [shape: f32[34,32], index: 2, kind: input, shape index: {}]   ;;  %s9292_s3 = inlined_call_operand.vmem [shape: f32[2,32,64], index: 3, kind: input, shape index: {}]   ;;  %s9293_s4 = inlined_call_operand.vmem [shape: f32[2,32,128], index: 4, kind: input, shape index: {}]   ;;  %s9294_s5 = inlined_call_operand.vmem [shape: f32[2,32,128], index: 5, kind: input, shape index: {}]   ;;  %s9295_s6 = inlined_call_operand.vmem [shape: f32[2,128,32], index: 6, kind: input, shape index: {}]   ;;  %s9296_s7 = inlined_call_operand.vmem [shape: f32[2,8,128], index: 7, kind: input, shape index: {}]   ;;  %s9297_s8 = inlined_call_operand.vmem [shape: f32[2,32], index: 8, kind: input, shape index: {}]   ;;  %s9298_s9 = inlined_call_operand.hbm [shape: f32[1,2,32], index: 9, kind: output, shape index: {}]  }
   0x1   :  { %v38_v0 = vld [vmem:[%s9290_s1] sm:$0xff]  ;;  %v39_v1 = vld [vmem:[%s9290_s1 + $0x8] sm:$0xff]  ;;  %v40_v2 = vld [vmem:[%s9290_s1 + $0x10] sm:$0xff]  ;;  %6608 = vmatprep.subr.bf16.mxu0 %v7298_v3  ;;  %5881 = vmatprep.mubr.msk.f32.mxu0 %vm7299_vm0, %v7300_v6 }
   0x2   :  { %v6609_v4 = vpack.c.bf16 %v39_v1, %v38_v0  ;;  %v41_v5 = vld [vmem:[%s9290_s1 + $0x18] sm:$0xff]  ;;  %6623 = vmatprep.subr.bf16.mxu1 %v7298_v3  ;;  %5927 = vmatprep.mubr.msk.f32.mxu1 %vm7299_vm0, %v7300_v6  ;;  %v42_v8 = vld [vmem:[%s9290_s1 + $0x20] sm:$0xff]  ;;  %v43_v9 = vld [vmem:[%s9290_s1 + $0x28] sm:$0xff] }
   0x3   :  { %v6612_v7 = vpack.c.bf16 %v41_v5, %v40_v2 }
   0x4   :  { %6610 = vmatpush3.bf16.msra.mxu0 %v6609_v4 }
   0x5   :  { %6611 = vmatprep.subr.bf16.mxu0 %v7298_v3 }
   0x6   :  { %14 = vsyncpa [#allocation3], 0  ;;  %v6615_v10 = vpack.c.bf16 %v43_v9, %v42_v8  ;;  %v33_v11 = vld [vmem:[%s9289_s0] sm:$0xff]  ;;  %vm49_vm1 = vcmask 392192   ;;  %v34_v12 = vld [vmem:[%s9289_s0 + $0x8] sm:$0xff]  ;;  %vm156_vm2 = vcmask 261120  }
   0x7   :  { %v35_v13 = vld [vmem:[%s9289_s0 + $0x10] sm:$0xff]  ;;  %v36_v14 = vld [vmem:[%s9289_s0 + $0x18] sm:$0xff]  ;;  %v37_v15 = vld [vmem:[%s9289_s0 + $0x20] sm:$0x3]  ;;  %vm169_vm3 = vcmask 254976   ;;  %s7301_s0 = smov 96  }
   0x8   :  { %6613 = vmatpush3.bf16.msra.mxu0 %v6612_v7  ;;  %v44_v16 = vld [vmem:[%s9291_s2] sm:$0xff]  ;;  %v45_v20 = vld [vmem:[%s9291_s2 + $0x8] sm:$0xff]  ;;  %v46_v25 = vld [vmem:[%s9291_s2 + $0x10] sm:$0xff]  ;;  %vm1397_vm4 = vcmask 1046528   ;;  %s7302_s13 = smov 80   ;;  %s7303_s14 = smov 88  }
   0x9   :  { %6614 = vmatprep.subr.bf16.mxu0 %v7298_v3  ;;  %v47_v30 = vld [vmem:[%s9291_s2 + $0x18] sm:$0xff]  ;;  %v48_v35 = vld [vmem:[%s9291_s2 + $0x20] sm:$0x3]  ;;  %v243_v4 = vld [vmem:[%s9292_s3 + $0x8] sm:$0xff]  ;;  %s7304_s15 = smov 120   ;;  %s7305_s16 = smov 112  }
   0xa   :  { %v242_v2 = vld [vmem:[%s9292_s3] sm:$0xff]  ;;  %v356_v8 = vld [vmem:[%s9293_s4 + $0x8] sm:$0xff]  ;;  %s7306_s17 = smov 72   ;;  %s7307_s2 = smov 104   ;;  %vm458_vm5 = vcmask 64512   ;;  %vm743_vm7 = vcmask 1040384  }
   0xb   :  { %v355_v5 = vld [vmem:[%s9293_s4] sm:$0xff]  ;;  %v6618_v7 = vpack.c.bf16 %v243_v4, %v242_v2  ;;  %s7308_s18 = smov 64   ;;  %vm7669_vm6 = vmpackc.low %vm458_vm5, %vm458_vm5  ;;  %vm551_vm8 = vcmask 138240   ;;  %vm558_vm9 = vcmask 131072   ;;  %s7309_s19 = smov 32  }
   0xc   :  { %6616 = vmatpush3.bf16.msra.mxu0 %v6615_v10  ;;  %v6624_v9 = vpack.c.bf16 %v356_v8, %v355_v5  ;;  %v244_v10 = vld [vmem:[%s9292_s3 + $0x10] sm:$0xff]  ;;  %s7310_s24 = smov [#allocation2]  }
   0xd   :  { %6617 = vmatprep.subr.bf16.mxu0 %v7298_v3 }
   0xe   :  { %6625 = vmatpush3.bf16.msra.mxu1 %v6624_v9 }
   0xf   :  { %5882 = vmatmul.mubr.msk.f32.vlgmr.msra.gmra.mrb[0].mxu0 %vm49_vm1, %v33_v11  ;;  %v245_v11 = vld [vmem:[%s9292_s3 + $0x18] sm:$0xff]  ;;  %6626 = vmatprep.subr.bf16.mxu1 %v7298_v3 }
  0x10   :  { %5884 = vmatprep.mubr.msk.f32.mxu0 %vm7299_vm0, %v7300_v6  ;;  %6619 = vmatpush3.bf16.msra.mxu0 %v6618_v7 }
  0x11   :  { %6620 = vmatprep.subr.bf16.mxu0 %v7298_v3 }
  0x13   :  { %5885 = vmatmul.mubr.msk.f32.gmra.mrb[2].mxu0 %vm49_vm1, %v34_v12  ;;  %v357_v12 = vld [vmem:[%s9293_s4 + $0x10] sm:$0xff] }
  0x14   :  { %5887 = vmatprep.mubr.msk.f32.mxu0 %vm7299_vm0, %v7300_v6 }
  0x17   :  { %5888 = vmatmul.mubr.msk.f32.gmra.mrb[4].mxu0 %vm49_vm1, %v35_v13  ;;  %v6621_v13 = vpack.c.bf16 %v245_v11, %v244_v10 }
  0x18   :  { %5890 = vmatprep.mubr.msk.f32.mxu0 %vm7299_vm0, %v7300_v6 }
  0x19   :  { %6622 = vmatpush3.bf16.msra.mxu0 %v6621_v13 }
  0x1a   :  { %6629 = vmatprep.subr.bf16.mxu0 %v7298_v3 }
  0x1b   :  { %5891 = vmatmul.mubr.msk.f32.gmra.mrb[6].mxu0 %vm49_vm1, %v36_v14  ;;  %v358_v14 = vld [vmem:[%s9293_s4 + $0x18] sm:$0xff] }
  0x1c   :  { %5893 = vmatprep.mubr.msk.f32.mxu0 %vm7299_vm0, %v7300_v6 }
  0x1f   :  { %5894 = vmatmul.mubr.msk.f32.gmra.mrb[8].mxu0 %vm49_vm1, %v37_v15  ;;  %v6627_v15 = vpack.c.bf16 %v358_v14, %v357_v12 }
  0x20   :  { %5904 = vmatprep.mubr.msk.f32.mxu0 %vm7299_vm0, %v7300_v6 }
  0x21   :  { %6628 = vmatpush3.bf16.msra.mxu1 %v6627_v15 }
  0x22   :  { %6637 = vmatprep.subr.bf16.mxu1 %v7298_v3 }
  0xe2   :  { %v131_v17 = vpop.f32.mrb[0].mxu0 }
  0xe3   :  { %v7416_v18 = vadd.f32 %v131_v17, %v44_v16  ;;  %v5883_v19 = vpop.f32.mrb[1].mxu0 }
  0xe4   :  { %v224_v19 = vlaneseq }
  0xe5   :  { %v157_v21 = vsel %vm156_vm2, %v7416_v18, 0.0 }
  0xe6   :  { %158 = vadd.xlane.f32.xlu0 %v157_v21  ;;  %v136_v22 = vpop.f32.mrb[2].mxu0 }
  0xe7   :  { %v7423_v23 = vadd.f32 %v136_v22, %v45_v20  ;;  %v5886_v24 = vpop.f32.mrb[3].mxu0 }
  0xe8   :  { %v7506_v24 = vshrl.u32 %v224_v19, 7 }
  0xe9   :  { %v160_v26 = vsel %vm156_vm2, %v7423_v23, 0.0 }
  0xea   :  { %161 = vadd.xlane.f32.xlu0 %v160_v26  ;;  %v141_v27 = vpop.f32.mrb[4].mxu0 }
  0xeb   :  { %v7430_v28 = vadd.f32 %v141_v27, %v46_v25  ;;  %v5889_v29 = vpop.f32.mrb[5].mxu0 }
  0xec   :  { %v9301_v29 = vsub.s32 0, %v7506_v24 }
  0xed   :  { %v163_v31 = vsel %vm156_vm2, %v7430_v28, 0.0 }
  0xee   :  { %164 = vadd.xlane.f32.xlu1 %v163_v31  ;;  %v146_v32 = vpop.f32.mrb[6].mxu0 }
  0xef   :  { %v7437_v33 = vadd.f32 %v146_v32, %v47_v30  ;;  %v5892_v34 = vpop.f32.mrb[7].mxu0  ;;  %v155_v30 = vld [vmem:[%s9296_s7] sm:$0xff] }
  0xf0   :  { %v9300_v34 = vsub.s32 1, %v7506_v24 }
  0xf1   :  { %v166_v36 = vsel %vm156_vm2, %v7437_v33, 0.0 }
  0xf2   :  { %167 = vadd.xlane.f32.xlu1 %v166_v36  ;;  %v151_v37 = vpop.f32.mrb[8].mxu0  ;;  %v227_v36 = vrot.slane %v155_v30, %v9301_v29 }
  0xf3   :  { %v7444_v38 = vadd.f32 %v151_v37, %v48_v35  ;;  %v5895_v39 = vpop.f32.mrb[9].mxu0 }
  0xf5   :  { %v170_v40 = vsel %vm169_vm3, %v7444_v38, 0.0 }
  0xf6   :  { %171 = vadd.xlane.f32.xlu0 %v170_v40 }
 0x173   :  { %v159_v41 = vpop.xlane.xlu0 %158 }
 0x174   :  { %v174_v42 = vmul.f32 0.03125, %v159_v41 }
 0x176   :  { %v7449_v43 = vsub.f32 %v7416_v18, %v174_v42  ;;  %v236_v42 = vrot.slane %v155_v30, %v9300_v34 }
 0x177   :  { %v162_v44 = vpop.xlane.xlu0 %161 }
 0x178   :  { %v175_v45 = vmul.f32 0.03125, %v162_v44  ;;  %v184_v46 = vmul.f32 %v7449_v43, %v7449_v43 }
 0x17a   :  { %v7454_v47 = vsub.f32 %v7423_v23, %v175_v45  ;;  %v189_v48 = vsel %vm156_vm2, %v184_v46, 0.0 }
 0x17b   :  { %v165_v49 = vpop.xlane.xlu1 %164  ;;  %190 = vadd.xlane.f32.xlu1 %v189_v48 }
 0x17c   :  { %v176_v50 = vmul.f32 0.03125, %v165_v49  ;;  %v185_v51 = vmul.f32 %v7454_v47, %v7454_v47 }
 0x17e   :  { %v7460_v52 = vsub.f32 %v7430_v28, %v176_v50  ;;  %v192_v53 = vsel %vm156_vm2, %v185_v51, 0.0 }
 0x17f   :  { %v168_v54 = vpop.xlane.xlu1 %167  ;;  %193 = vadd.xlane.f32.xlu0 %v192_v53 }
 0x180   :  { %v177_v55 = vmul.f32 0.03125, %v168_v54  ;;  %v186_v56 = vmul.f32 %v7460_v52, %v7460_v52 }
 0x182   :  { %v7466_v57 = vsub.f32 %v7437_v33, %v177_v55  ;;  %v195_v58 = vsel %vm156_vm2, %v186_v56, 0.0 }
 0x183   :  { %196 = vadd.xlane.f32.xlu1 %v195_v58  ;;  %v172_v59 = vpop.xlane.xlu0 %171 }
 0x184   :  { %v178_v60 = vmul.f32 0.03125, %v172_v59  ;;  %v187_v61 = vmul.f32 %v7466_v57, %v7466_v57 }
 0x186   :  { %v7472_v62 = vsub.f32 %v7444_v38, %v178_v60  ;;  %v198_v63 = vsel %vm156_vm2, %v187_v61, 0.0 }
 0x187   :  { %199 = vadd.xlane.f32.xlu0 %v198_v63 }
 0x188   :  { %v188_v0 = vmul.f32 %v7472_v62, %v7472_v62 }
 0x18a   :  { %v201_v1 = vsel %vm169_vm3, %v188_v0, 0.0 }
 0x18b   :  { %202 = vadd.xlane.f32.xlu1 %v201_v1 }
 0x208   :  { %v191_v16 = vpop.xlane.xlu1 %190 }
 0x209   :  { %v204_v17 = vmul.f32 0.03125, %v191_v16 }
 0x20b   :  { %v209_v20 = vadd.f32 1e-06, %v204_v17 }
 0x20c   :  { %v194_v21 = vpop.xlane.xlu0 %193 }
 0x20d   :  { %7018 = vrsqrt.f32 %v209_v20  ;;  %v205_v22 = vmul.f32 0.03125, %v194_v21 }
 0x20f   :  { %v210_v25 = vadd.f32 1e-06, %v205_v22 }
 0x210   :  { %v197_v26 = vpop.xlane.xlu1 %196 }
 0x211   :  { %7020 = vrsqrt.f32 %v210_v25  ;;  %v206_v27 = vmul.f32 0.03125, %v197_v26 }
 0x213   :  { %v211_v31 = vadd.f32 1e-06, %v206_v27 }
 0x214   :  { %v200_v32 = vpop.xlane.xlu0 %199 }
 0x215   :  { %7022 = vrsqrt.f32 %v211_v31  ;;  %v207_v35 = vmul.f32 0.03125, %v200_v32 }
 0x217   :  { %v7019_v37 = vpop.eup %7018  ;;  %v212_v39 = vadd.f32 1e-06, %v207_v35 }
 0x218   :  { %v219_v40 = vmul.f32 %v7019_v37, %v7449_v43  ;;  %v203_v41 = vpop.xlane.xlu1 %202 }
 0x219   :  { %7024 = vrsqrt.f32 %v212_v39  ;;  %v208_v44 = vmul.f32 0.03125, %v203_v41 }
 0x21a   :  { %v228_v45 = vmul.f32 %v227_v36, %v219_v40 }
 0x21b   :  { %v7021_v46 = vpop.eup %7020  ;;  %v213_v48 = vadd.f32 1e-06, %v208_v44 }
 0x21c   :  { %v237_v49 = vadd.f32 %v236_v42, %v228_v45  ;;  %v220_v50 = vmul.f32 %v7021_v46, %v7454_v47 }
 0x21d   :  { %7026 = vrsqrt.f32 %v213_v48 }
 0x21e   :  { %5905 = vmatmul.mubr.msk.f32.vlgmr.msra.gmra.mrb[10].mxu0 %vm156_vm2, %v237_v49  ;;  %5928 = vmatmul.mubr.msk.f32.vlgmr.msra.gmra.mrb[0].mxu1 %vm156_vm2, %v237_v49  ;;  %v229_v51 = vmul.f32 %v227_v36, %v220_v50 }
 0x21f   :  { %v7023_v53 = vpop.eup %7022  ;;  %5907 = vmatprep.mubr.msk.f32.mxu0 %vm7299_vm0, %v7300_v6  ;;  %5930 = vmatprep.mubr.msk.f32.mxu1 %vm7299_vm0, %v7300_v6 }
 0x220   :  { %v238_v43 = vadd.f32 %v236_v42, %v229_v51  ;;  %v221_v54 = vmul.f32 %v7023_v53, %v7460_v52 }
 0x222   :  { %5908 = vmatmul.mubr.msk.f32.gmra.mrb[12].mxu0 %vm156_vm2, %v238_v43  ;;  %5931 = vmatmul.mubr.msk.f32.gmra.mrb[2].mxu1 %vm156_vm2, %v238_v43  ;;  %v230_v47 = vmul.f32 %v227_v36, %v221_v54 }
 0x223   :  { %v7025_v55 = vpop.eup %7024  ;;  %5910 = vmatprep.mubr.msk.f32.mxu0 %vm7299_vm0, %v7300_v6  ;;  %5933 = vmatprep.mubr.msk.f32.mxu1 %vm7299_vm0, %v7300_v6 }
 0x224   :  { %v239_v56 = vadd.f32 %v236_v42, %v230_v47  ;;  %v222_v58 = vmul.f32 %v7025_v55, %v7466_v57 }
 0x226   :  { %5911 = vmatmul.mubr.msk.f32.gmra.mrb[14].mxu0 %vm156_vm2, %v239_v56  ;;  %5934 = vmatmul.mubr.msk.f32.gmra.mrb[4].mxu1 %vm156_vm2, %v239_v56  ;;  %v231_v52 = vmul.f32 %v227_v36, %v222_v58 }
 0x227   :  { %v7027_v59 = vpop.eup %7026  ;;  %5913 = vmatprep.mubr.msk.f32.mxu0 %vm7299_vm0, %v7300_v6  ;;  %5936 = vmatprep.mubr.msk.f32.mxu1 %vm7299_vm0, %v7300_v6 }
 0x228   :  { %v240_v60 = vadd.f32 %v236_v42, %v231_v52  ;;  %v223_v61 = vmul.f32 %v7027_v59, %v7472_v62  ;;  %v9299_v62 = vsub.s32 4, %v7506_v24 }
 0x22a   :  { %5914 = vmatmul.mubr.msk.f32.gmra.mrb[16].mxu0 %vm156_vm2, %v240_v60  ;;  %5937 = vmatmul.mubr.msk.f32.gmra.mrb[6].mxu1 %vm156_vm2, %v240_v60  ;;  %v232_v57 = vmul.f32 %v227_v36, %v223_v61  ;;  %v249_v0 = vrot.slane %v155_v30, %v9299_v62 }
 0x22b   :  { %5916 = vmatprep.mubr.msk.f32.mxu0 %vm7299_vm0, %v7300_v6  ;;  %5939 = vmatprep.mubr.msk.f32.mxu1 %vm7299_vm0, %v7300_v6 }
 0x22c   :  { %v241_v63 = vadd.f32 %v236_v42, %v232_v57 }
 0x22e   :  { %5917 = vmatmul.mubr.msk.f32.gmra.mrb[18].mxu0 %vm156_vm2, %v241_v63  ;;  %5940 = vmatmul.mubr.msk.f32.gmra.mrb[8].mxu1 %vm156_vm2, %v241_v63 }
 0x22f   :  { %5948 = vmatprep.mubr.msk.f32.mxu0 %vm7299_vm0, %v7300_v6  ;;  %5978 = vmatprep.mubr.msk.f32.mxu1 %vm7299_vm0, %v7300_v6 }
 0x2f1   :  { %v331_v1 = vpop.f32.mrb[10].mxu0  ;;  %v7555_v2 = vpop.f32.mrb[0].mxu1 }
 0x2f2   :  { %v5906_v4 = vpop.f32.mrb[11].mxu0  ;;  %v5929_v5 = vpop.f32.mrb[1].mxu1  ;;  %v7557_v7 = vadd.f32 %v331_v1, %v249_v0 }
 0x2f5   :  { %v336_v8 = vpop.f32.mrb[12].mxu0  ;;  %v7559_v9 = vpop.f32.mrb[2].mxu1 }
 0x2f6   :  { %v7561_v10 = vadd.f32 %v336_v8, %v249_v0  ;;  %v6641_v11 = vpack.c.bf16 %v7559_v9, %v7555_v2  ;;  %v5909_v12 = vpop.f32.mrb[13].mxu0  ;;  %v5932_v13 = vpop.f32.mrb[3].mxu1  ;;  %v7567_v14 = vpack.i.bf16 %v7559_v9, %v7555_v2 }
 0x2f8   :  { %v6878_v15 = vpack.i.bf16 %v7561_v10, %v7557_v7 }
 0x2f9   :  { %v341_v16 = vpop.f32.mrb[14].mxu0  ;;  %v7571_v17 = vpop.f32.mrb[4].mxu1 }
 0x2fa   :  { %v7573_v19 = vadd.f32 %v341_v16, %v249_v0  ;;  %v5935_v20 = vpop.f32.mrb[5].mxu1  ;;  %6879 = vrot.lane.b32.xlu0 %v6878_v15, %s7301_s0  ;;  %v5912_v21 = vpop.f32.mrb[15].mxu0  ;;  %v1673_v26 = vrot.slane %v7571_v17, 1 }
 0x2fc   :  { %456 = vrot.lane.b32.xlu1 %v7573_v19, %s7301_s0  ;;  %v1398_v50 = vrot.slane %v7573_v19, 1 }
 0x2fd   :  { %v346_v22 = vpop.f32.mrb[16].mxu0  ;;  %v440_v25 = vpop.f32.mrb[6].mxu1 }
 0x2fe   :  { %v1674_v27 = vrot.slane %v440_v25, 1  ;;  %v5938_v30 = vpop.f32.mrb[7].mxu1  ;;  %6889 = vrot.lane.b32.xlu0 %v6878_v15, %s7302_s13  ;;  %v5915_v31 = vpop.f32.mrb[17].mxu0  ;;  %v347_v46 = vadd.f32 %v346_v22, %v249_v0 }
 0x300   :  { %v7581_v32 = vsel %vm1397_vm4, %v1673_v26, %v1674_v27  ;;  %6884 = vrot.lane.b32.xlu1 %v6878_v15, %s7303_s14  ;;  %v1399_v49 = vrot.slane %v347_v46, 1 }
 0x301   :  { %v351_v35 = vpop.f32.mrb[18].mxu0  ;;  %v445_v36 = vpop.f32.mrb[8].mxu1 }
 0x302   :  { %v7584_v37 = vrot.slane %v445_v36, 1  ;;  %v5941_v39 = vpop.f32.mrb[9].mxu1  ;;  %588 = vrot.lane.b32.xlu0 %v7561_v10, %s7304_s15  ;;  %v5918_v40 = vpop.f32.mrb[19].mxu0  ;;  %v352_v41 = vadd.f32 %v351_v35, %v249_v0  ;;  %v7618_v53 = vsel %vm1397_vm4, %v1398_v50, %v1399_v49 }
 0x304   :  { %596 = vrot.lane.b32.xlu1 %v7573_v19, %s7303_s14  ;;  %v7592_v42 = vsel %vm1397_vm4, %v1674_v27, %v7584_v37  ;;  %v7604_v48 = vrot.slane %v352_v41, 1 }
 0x305   :  { %v7596_v44 = vpack.i.bf16 %v7592_v42, %v7581_v32  ;;  %v6669_v45 = vpack.c.bf16 %v7592_v42, %v7581_v32 }
 0x306   :  { %927 = vrot.lane.b32.xlu0 %v7573_v19, %s7302_s13  ;;  %v7613_v51 = vsel %vm1397_vm4, %v1399_v49, %v7604_v48 }
 0x307   :  { %v7623_v43 = vpack.i.bf16 %v7613_v51, %v7618_v53 }
 0x308   :  { %586 = vrot.lane.b32.xlu1 %v7557_v7, %s7304_s15 }
 0x30a   :  { %917 = vrot.lane.b32.xlu0 %v7557_v7, %s7305_s16 }
 0x30c   :  { %590 = vrot.lane.b32.xlu1 %v7573_v19, %s7304_s15 }
 0x30e   :  { %921 = vrot.lane.b32.xlu0 %v7573_v19, %s7305_s16 }
 0x310   :  { %6894 = vrot.lane.b32.xlu1 %v6878_v15, %s7306_s17 }
 0x312   :  { %6899 = vrot.lane.b32.xlu0 %v7623_v43, %s7301_s0 }
 0x314   :  { %919 = vrot.lane.b32.xlu1 %v7561_v10, %s7305_s16 }
 0x316   :  { %1158 = vrot.lane.b32.xlu0 %v7561_v10, %s7307_s2 }
 0x318   :  { %1166 = vrot.lane.b32.xlu1 %v7573_v19, %s7306_s17 }
 0x31a   :  { %1407 = vrot.lane.b32.xlu0 %v7604_v48, %s7301_s0 }
 0x31c   :  { %1156 = vrot.lane.b32.xlu1 %v7557_v7, %s7307_s2 }
 0x31e   :  { %1544 = vrot.lane.b32.xlu0 %v7604_v48, %s7303_s14 }
 0x320   :  { %1160 = vrot.lane.b32.xlu1 %v7573_v19, %s7307_s2 }
 0x322   :  { %1536 = vrot.lane.b32.xlu0 %v7613_v51, %s7304_s15 }
 0x324   :  { %6904 = vrot.lane.b32.xlu1 %v7623_v43, %s7303_s14 }
 0x326   :  { %6909 = vrot.lane.b32.xlu0 %v7623_v43, %s7302_s13 }
 0x328   :  { %1534 = vrot.lane.b32.xlu1 %v7618_v53, %s7304_s15 }
 0x32a   :  { %1870 = vrot.lane.b32.xlu0 %v7618_v53, %s7305_s16 }
 0x32c   :  { %1538 = vrot.lane.b32.xlu1 %v7604_v48, %s7304_s15 }
 0x32e   :  { %1874 = vrot.lane.b32.xlu0 %v7604_v48, %s7305_s16 }
 0x330   :  { %1880 = vrot.lane.b32.xlu1 %v7604_v48, %s7302_s13 }
 0x332   :  { %6914 = vrot.lane.b32.xlu0 %v7567_v14, %s7301_s0 }
 0x334   :  { %1872 = vrot.lane.b32.xlu1 %v7613_v51, %s7305_s16 }
 0x336   :  { %1058 = vrot.lane.b32.xlu0 %v7571_v17, %s7308_s18 }
 0x338   :  { %730 = vrot.lane.b32.xlu1 %v7571_v17, %s7301_s0 }
 0x33c   :  { %6919 = vrot.lane.b32.xlu1 %v7567_v14, %s7308_s18 }
 0x36c   :  { %v6880_v54 = vpop.permute.xlu0 %6879 }
 0x36d   :  { %v6882_v47 = vunpack.i.h.bf16 %v6880_v54  ;;  %v6881_v55 = vunpack.i.l.bf16 %v6880_v54 }
 0x36e   :  { %v457_v56 = vpop.permute.xlu1 %456 }
 0x36f   :  { %v6630_v52 = vpack.c.bf16 %v6882_v47, %v6881_v55 }
 0x370   :  { %v6890_v59 = vpop.permute.xlu0 %6889 }
 0x371   :  { %6632 = vmatpush3.bf16.xpose.msk.msra.mxu0 %vm7669_vm6, %v6630_v52  ;;  %v6892_v16 = vunpack.i.h.bf16 %v6890_v59  ;;  %v6891_v20 = vunpack.i.l.bf16 %v6890_v59 }
 0x372   :  { %v6885_v60 = vpop.permute.xlu1 %6884  ;;  %5946 = vmatprep.subr.mxu0 %v7300_v6 }
 0x373   :  { %v6887_v63 = vunpack.i.h.bf16 %v6885_v60  ;;  %v6886_v0 = vunpack.i.l.bf16 %v6885_v60  ;;  %v6644_v22 = vpack.c.bf16 %v6892_v16, %v6891_v20 }
 0x374   :  { %v589_v61 = vpop.permute.xlu0 %588 }
 0x375   :  { %v6634_v5 = vpack.c.bf16 %v6887_v63, %v6886_v0 }
 0x376   :  { %v597_v57 = vpop.permute.xlu1 %596 }
 0x378   :  { %v928_v1 = vpop.permute.xlu0 %927 }
 0x379   :  { %5947 = vmatpush3.xpose.msk.msra.mxu0 %vm458_vm5, %v457_v56 }
 0x37a   :  { %v587_v4 = vpop.permute.xlu1 %586  ;;  %6633 = vmatprep.subr.bf16.mxu0 %v7298_v3 }
 0x37c   :  { %v918_v8 = vpop.permute.xlu0 %917  ;;  %5949 = vmatmul.mubr.msk.f32.vlgmr.msra.gmra.mrb[20].mxu0 %vm458_vm5, %v7557_v7 }
 0x37d   :  { %6636 = vmatpush3.bf16.xpose.msk.msra.mxu0 %vm7669_vm6, %v6634_v5  ;;  %5951 = vmatprep.mubr.msk.f32.mxu0 %vm7299_vm0, %v7300_v6 }
 0x37e   :  { %v591_v12 = vpop.permute.xlu1 %590  ;;  %5961 = vmatprep.subr.mxu0 %v7300_v6 }
 0x380   :  { %v922_v13 = vpop.permute.xlu0 %921  ;;  %5952 = vmatmul.mubr.msk.f32.gmra.mrb[22].mxu0 %vm458_vm5, %v7561_v10 }
 0x381   :  { %5954 = vmatprep.mubr.msk.f32.mxu0 %vm7299_vm0, %v7300_v6 }
 0x382   :  { %v6895_v15 = vpop.permute.xlu1 %6894 }
 0x383   :  { %v6897_v27 = vunpack.i.h.bf16 %v6895_v15  ;;  %v6896_v30 = vunpack.i.l.bf16 %v6895_v15 }
 0x384   :  { %5955 = vmatmul.mubr.msk.f32.gmra.mrb[24].mxu0 %vm458_vm5, %v7573_v19  ;;  %v6900_v7 = vpop.permute.xlu0 %6899 }
 0x385   :  { %5962 = vmatpush3.xpose.msk.msra.mxu0 %vm458_vm5, %v597_v57  ;;  %5963 = vmatprep.mubr.msk.f32.mxu0 %vm7299_vm0, %v7300_v6  ;;  %v6651_v36 = vpack.c.bf16 %v6897_v27, %v6896_v30  ;;  %v6902_v49 = vunpack.i.h.bf16 %v6900_v7  ;;  %v6901_v50 = vunpack.i.l.bf16 %v6900_v7 }
 0x386   :  { %v920_v21 = vpop.permute.xlu1 %919  ;;  %6643 = vmatprep.subr.bf16.mxu0 %v7298_v3 }
 0x387   :  { %v6658_v55 = vpack.c.bf16 %v6902_v49, %v6901_v50 }
 0x388   :  { %5964 = vmatmul.mubr.msk.f32.vlgmr.msra.gmra.mrb[26].mxu0 %vm458_vm5, %v587_v4  ;;  %v1159_v10 = vpop.permute.xlu0 %1158 }
 0x389   :  { %6646 = vmatpush3.bf16.xpose.msk.msra.mxu0 %vm7669_vm6, %v6644_v22  ;;  %5966 = vmatprep.mubr.msk.f32.mxu0 %vm7299_vm0, %v7300_v6 }
 0x38a   :  { %v1167_v19 = vpop.permute.xlu1 %1166  ;;  %6006 = vmatprep.subr.mxu0 %v7300_v6 }
 0x38c   :  { %5967 = vmatmul.mubr.msk.f32.gmra.mrb[28].mxu0 %vm458_vm5, %v589_v61  ;;  %v1408_v25 = vpop.permute.xlu0 %1407 }
 0x38d   :  { %5969 = vmatprep.mubr.msk.f32.mxu0 %vm7299_vm0, %v7300_v6 }
 0x38e   :  { %v1157_v26 = vpop.permute.xlu1 %1156 }
 0x390   :  { %5970 = vmatmul.mubr.msk.f32.gmra.mrb[30].mxu0 %vm458_vm5, %v591_v12  ;;  %v1545_v31 = vpop.permute.xlu0 %1544 }
 0x391   :  { %6007 = vmatpush3.xpose.msk.msra.mxu0 %vm458_vm5, %v928_v1  ;;  %6008 = vmatprep.mubr.msk.f32.mxu0 %vm7299_vm0, %v7300_v6 }
 0x392   :  { %v1161_v35 = vpop.permute.xlu1 %1160  ;;  %6650 = vmatprep.subr.bf16.mxu0 %v7298_v3 }
 0x394   :  { %6009 = vmatmul.mubr.msk.f32.vlgmr.msra.gmra.mrb[32].mxu0 %vm458_vm5, %v918_v8  ;;  %v1537_v39 = vpop.permute.xlu0 %1536 }
 0x395   :  { %6653 = vmatpush3.bf16.xpose.msk.msra.mxu0 %vm7669_vm6, %v6651_v36  ;;  %6011 = vmatprep.mubr.msk.f32.mxu0 %vm7299_vm0, %v7300_v6 }
 0x396   :  { %v6905_v40 = vpop.permute.xlu1 %6904  ;;  %6036 = vmatprep.subr.mxu0 %v7300_v6 }
 0x397   :  { %v6907_v63 = vunpack.i.h.bf16 %v6905_v40  ;;  %v6906_v0 = vunpack.i.l.bf16 %v6905_v40 }
 0x398   :  { %6012 = vmatmul.mubr.msk.f32.gmra.mrb[34].mxu0 %vm458_vm5, %v920_v21  ;;  %v6910_v41 = vpop.permute.xlu0 %6909 }
 0x399   :  { %6014 = vmatprep.mubr.msk.f32.mxu0 %vm7299_vm0, %v7300_v6  ;;  %v6662_v4 = vpack.c.bf16 %v6907_v63, %v6906_v0  ;;  %v6912_v8 = vunpack.i.h.bf16 %v6910_v41  ;;  %v6911_v12 = vunpack.i.l.bf16 %v6910_v41 }
 0x39a   :  { %v1535_v46 = vpop.permute.xlu1 %1534 }
 0x39c   :  { %6015 = vmatmul.mubr.msk.f32.gmra.mrb[36].mxu0 %vm458_vm5, %v922_v13  ;;  %v1871_v54 = vpop.permute.xlu0 %1870  ;;  %v6672_v13 = vpack.c.bf16 %v6912_v8, %v6911_v12 }
 0x39d   :  { %6037 = vmatpush3.xpose.msk.msra.mxu0 %vm458_vm5, %v1167_v19  ;;  %6038 = vmatprep.mubr.msk.f32.mxu0 %vm7299_vm0, %v7300_v6 }
 0x39e   :  { %v1539_v47 = vpop.permute.xlu1 %1538  ;;  %6657 = vmatprep.subr.bf16.mxu0 %v7298_v3 }
 0x3a0   :  { %6039 = vmatmul.mubr.msk.f32.vlgmr.msra.gmra.mrb[38].mxu0 %vm458_vm5, %v1157_v26  ;;  %v1875_v56 = vpop.permute.xlu0 %1874 }
 0x3a1   :  { %6660 = vmatpush3.bf16.xpose.msk.msra.mxu0 %vm7669_vm6, %v6658_v55  ;;  %6041 = vmatprep.mubr.msk.f32.mxu0 %vm7299_vm0, %v7300_v6 }
 0x3a2   :  { %v1881_v52 = vpop.permute.xlu1 %1880  ;;  %6066 = vmatprep.subr.mxu0 %v7300_v6 }
 0x3a4   :  { %6042 = vmatmul.mubr.msk.f32.gmra.mrb[40].mxu0 %vm458_vm5, %v1159_v10  ;;  %v6915_v59 = vpop.permute.xlu0 %6914 }
 0x3a5   :  { %v6917_v60 = vunpack.i.h.bf16 %v6915_v59  ;;  %v6916_v61 = vunpack.i.l.bf16 %v6915_v59  ;;  %6044 = vmatprep.mubr.msk.f32.mxu0 %vm7299_vm0, %v7300_v6 }
 0x3a6   :  { %v1873_v57 = vpop.permute.xlu1 %1872 }
 0x3a7   :  { %v6638_v1 = vpack.c.bf16 %v6917_v60, %v6916_v61 }
 0x3a8   :  { %6045 = vmatmul.mubr.msk.f32.gmra.mrb[42].mxu0 %vm458_vm5, %v1161_v35 }
 0x3a9   :  { %6639 = vmatpush3.bf16.msra.mxu1 %v6638_v1  ;;  %6067 = vmatpush3.xpose.msk.msra.mxu0 %vm458_vm5, %v1408_v25 }
 0x3aa   :  { %6068 = vmatprep.mubr.msk.f32.mxu0 %vm7299_vm0, %v7300_v6  ;;  %5976 = vmatprep.subr.mxu1 %v7300_v6  ;;  %v731_v5 = vpop.permute.xlu1 %730 }
 0x3ab   :  { %6661 = vmatprep.subr.bf16.mxu0 %v7298_v3 }
 0x3ac   :  { %6069 = vmatmul.mubr.msk.f32.vlgmr.msra.gmra.mrb[44].mxu0 %vm458_vm5, %v7618_v53 }
 0x3ad   :  { %5977 = vmatpush3.msk.msra.mxu1 %vm743_vm7, %v731_v5  ;;  %6664 = vmatpush3.bf16.xpose.msk.msra.mxu0 %vm7669_vm6, %v6662_v4 }
 0x3ae   :  { %6071 = vmatprep.mubr.msk.f32.mxu0 %vm7299_vm0, %v7300_v6  ;;  %6081 = vmatprep.subr.mxu0 %v7300_v6 }
 0x3af   :  { %6640 = vmatprep.subr.bf16.mxu1 %v7298_v3 }
 0x3b0   :  { %6072 = vmatmul.mubr.msk.f32.gmra.mrb[46].mxu0 %vm458_vm5, %v7613_v51 }
 0x3b1   :  { %6074 = vmatprep.mubr.msk.f32.mxu0 %vm7299_vm0, %v7300_v6 }
 0x3b4   :  { %6075 = vmatmul.mubr.msk.f32.gmra.mrb[48].mxu0 %vm458_vm5, %v7604_v48 }
 0x3b5   :  { %6082 = vmatpush3.xpose.msk.msra.mxu0 %vm458_vm5, %v1545_v31  ;;  %6083 = vmatprep.mubr.msk.f32.mxu0 %vm7299_vm0, %v7300_v6 }
 0x3b6   :  { %6671 = vmatprep.subr.bf16.mxu0 %v7298_v3 }
 0x3b8   :  { %6084 = vmatmul.mubr.msk.f32.vlgmr.msra.gmra.mrb[50].mxu0 %vm458_vm5, %v1535_v46 }
 0x3b9   :  { %6674 = vmatpush3.bf16.xpose.msk.msra.mxu0 %vm7669_vm6, %v6672_v13  ;;  %6086 = vmatprep.mubr.msk.f32.mxu0 %vm7299_vm0, %v7300_v6 }
 0x3ba   :  { %6126 = vmatprep.subr.mxu0 %v7300_v6 }
 0x3bc   :  { %6087 = vmatmul.mubr.msk.f32.gmra.mrb[52].mxu0 %vm458_vm5, %v1537_v39 }
 0x3bd   :  { %6089 = vmatprep.mubr.msk.f32.mxu0 %vm7299_vm0, %v7300_v6 }
 0x3c0   :  { %6090 = vmatmul.mubr.msk.f32.gmra.mrb[54].mxu0 %vm458_vm5, %v1539_v47 }
 0x3c1   :  { %6127 = vmatpush3.xpose.msk.msra.mxu0 %vm458_vm5, %v1881_v52  ;;  %6128 = vmatprep.mubr.msk.f32.mxu0 %vm7299_vm0, %v7300_v6 }
 0x3c2   :  { %6678 = vmatprep.subr.bf16.mxu0 %v7298_v3 }
 0x3c4   :  { %6129 = vmatmul.mubr.msk.f32.vlgmr.msra.gmra.mrb[56].mxu0 %vm458_vm5, %v1871_v54 }
 0x3c5   :  { %6131 = vmatprep.mubr.msk.f32.mxu0 %vm7299_vm0, %v7300_v6 }
 0x3c8   :  { %6132 = vmatmul.mubr.msk.f32.gmra.mrb[58].mxu0 %vm458_vm5, %v1873_v57 }
 0x3c9   :  { %6134 = vmatprep.mubr.msk.f32.mxu0 %vm7299_vm0, %v7300_v6 }
 0x3cc   :  { %6135 = vmatmul.mubr.msk.f32.gmra.mrb[60].mxu0 %vm458_vm5, %v1875_v56 }
 0x3cd   :  { %6158 = vmatprep.mubr.msk.f32.mxu0 %vm7299_vm0, %v7300_v6 }
 0x44f   :  { %v7780_v15 = vpop.f32.mrb[20].mxu0 }
 0x450   :  { %v5950_v16 = vpop.f32.mrb[21].mxu0  ;;  %v552_v20 = vsel %vm551_vm8, %v7780_v15, -inf }
 0x451   :  { %553 = vmax.xlane.f32.xlu0 %v552_v20 }
 0x453   :  { %v7784_v7 = vpop.f32.mrb[22].mxu0 }
 0x454   :  { %v5953_v21 = vpop.f32.mrb[23].mxu0  ;;  %v555_v22 = vsel %vm551_vm8, %v7784_v7, -inf }
 0x455   :  { %556 = vmax.xlane.f32.xlu1 %v555_v22 }
 0x457   :  { %v7788_v10 = vpop.f32.mrb[24].mxu0 }
 0x458   :  { %v5956_v19 = vpop.f32.mrb[25].mxu0  ;;  %v559_v25 = vsel %vm558_vm9, %v7788_v10, -inf }
 0x459   :  { %560 = vmax.xlane.f32.xlu0 %v559_v25 }
 0x45b   :  { %v7792_v26 = vpop.f32.mrb[26].mxu0 }
 0x45c   :  { %v5965_v27 = vpop.f32.mrb[27].mxu0  ;;  %v690_v30 = vsel %vm551_vm8, %v7792_v26, -inf }
 0x45d   :  { %691 = vmax.xlane.f32.xlu1 %v690_v30 }
 0x45f   :  { %v7796_v31 = vpop.f32.mrb[28].mxu0 }
 0x460   :  { %v5968_v35 = vpop.f32.mrb[29].mxu0  ;;  %v693_v36 = vsel %vm551_vm8, %v7796_v31, -inf }
 0x461   :  { %694 = vmax.xlane.f32.xlu0 %v693_v36 }
 0x463   :  { %v7800_v39 = vpop.f32.mrb[30].mxu0 }
 0x464   :  { %v5971_v40 = vpop.f32.mrb[31].mxu0  ;;  %v696_v41 = vsel %vm558_vm9, %v7800_v39, -inf }
 0x465   :  { %697 = vmax.xlane.f32.xlu0 %v696_v41 }
 0x467   :  { %v7804_v46 = vpop.f32.mrb[32].mxu0 }
 0x468   :  { %v6010_v49 = vpop.f32.mrb[33].mxu0  ;;  %v1021_v22 = vsel %vm551_vm8, %v7804_v46, -inf }
 0x46b   :  { %v7806_v50 = vpop.f32.mrb[34].mxu0 }
 0x46c   :  { %v6013_v54 = vpop.f32.mrb[35].mxu0  ;;  %v1024_v27 = vsel %vm551_vm8, %v7806_v50, -inf }
 0x46e   :  { %1297 = vrot.lane.b32.xlu1 %v7571_v17, %s7309_s19 }
 0x46f   :  { %v7810_v47 = vpop.f32.mrb[36].mxu0 }
 0x470   :  { %v6016_v55 = vpop.f32.mrb[37].mxu0  ;;  %v1027_v30 = vsel %vm558_vm9, %v7810_v47, -inf }
 0x472   :  { %6929 = vrot.lane.b32.xlu1 %v7596_v44, %s7301_s0 }
 0x473   :  { %v7814_v56 = vpop.f32.mrb[38].mxu0 }
 0x474   :  { %v6040_v52 = vpop.f32.mrb[39].mxu0  ;;  %v1260_v40 = vsel %vm551_vm8, %v7814_v56, -inf }
 0x477   :  { %v7816_v59 = vpop.f32.mrb[40].mxu0 }
 0x478   :  { %v6043_v60 = vpop.f32.mrb[41].mxu0 }
 0x47b   :  { %6924 = vrot.lane.b32.xlu0 %v7567_v14, %s7309_s19  ;;  %v7820_v61 = vpop.f32.mrb[42].mxu0 }
 0x47c   :  { %v6046_v57 = vpop.f32.mrb[43].mxu0  ;;  %v1266_v54 = vsel %vm558_vm9, %v7820_v61, -inf }
 0x47f   :  { %v7822_v63 = vpop.f32.mrb[44].mxu0 }
 0x480   :  { %v6070_v0 = vpop.f32.mrb[45].mxu0  ;;  %v1501_v55 = vsel %vm551_vm8, %v7822_v63, -inf }
 0x481   :  { %v1263_v0 = vsel %vm551_vm8, %v7816_v59, -inf }
 0x483   :  { %v7824_v1 = vpop.f32.mrb[46].mxu0 }
 0x484   :  { %v6073_v4 = vpop.f32.mrb[47].mxu0 }
 0x485   :  { %v1504_v4 = vsel %vm551_vm8, %v7824_v1, -inf }
 0x487   :  { %v7826_v5 = vpop.f32.mrb[48].mxu0 }
 0x488   :  { %v6076_v8 = vpop.f32.mrb[49].mxu0  ;;  %v1507_v52 = vsel %vm558_vm9, %v7826_v5, -inf }
 0x48b   :  { %v7828_v12 = vpop.f32.mrb[50].mxu0 }
 0x48c   :  { %v6085_v13 = vpop.f32.mrb[51].mxu0  ;;  %v1638_v8 = vsel %vm551_vm8, %v7828_v12, -inf }
 0x48d   :  { %v7866_v13 = vpop.permute.xlu0 %1058 }
 0x48f   :  { %v7830_v16 = vpop.f32.mrb[52].mxu0 }
 0x490   :  { %v6088_v20 = vpop.f32.mrb[53].mxu0  ;;  %v1641_v60 = vsel %vm551_vm8, %v7830_v16, -inf }
 0x493   :  { %v7832_v21 = vpop.f32.mrb[54].mxu0 }
 0x494   :  { %v6091_v14 = vpop.f32.mrb[55].mxu0  ;;  %v1644_v20 = vsel %vm558_vm9, %v7832_v21, -inf }
 0x495   :  { %v7870_v14 = vpop.permute.xlu1 %6919 }
 0x496   :  { %1022 = vmax.xlane.f32.xlu1 %v1021_v22 }
 0x497   :  { %v7836_v19 = vpop.f32.mrb[56].mxu0 }
 0x498   :  { %v6130_v25 = vpop.f32.mrb[57].mxu0 }
 0x499   :  { %v1974_v25 = vsel %vm551_vm8, %v7836_v19, -inf }
 0x49a   :  { %1025 = vmax.xlane.f32.xlu0 %v1024_v27  ;;  %1028 = vmax.xlane.f32.xlu1 %v1027_v30 }
 0x49b   :  { %v7842_v35 = vpop.f32.mrb[58].mxu0 }
 0x49c   :  { %v6133_v36 = vpop.f32.mrb[59].mxu0  ;;  %v1977_v57 = vsel %vm551_vm8, %v7842_v35, -inf }
 0x49e   :  { %1261 = vmax.xlane.f32.xlu0 %v1260_v40 }
 0x49f   :  { %v7846_v41 = vpop.f32.mrb[60].mxu0 }
 0x4a0   :  { %v6136_v49 = vpop.f32.mrb[61].mxu0  ;;  %v1980_v40 = vsel %vm558_vm9, %v7846_v41, -inf }
 0x4a2   :  { %1267 = vmax.xlane.f32.xlu0 %v1266_v54 }
 0x4a6   :  { %1502 = vmax.xlane.f32.xlu0 %v1501_v55 }
 0x4aa   :  { %1508 = vmax.xlane.f32.xlu0 %v1507_v52 }
 0x4ab   :  { %1682 = vrot.lane.b32.xlu1 %v7584_v37, %s7301_s0 }
 0x4ae   :  { %1642 = vmax.xlane.f32.xlu0 %v1641_v60 }
 0x4b2   :  { %1978 = vmax.xlane.f32.xlu0 %v1977_v57 }
 0x4cf   :  { %1264 = vmax.xlane.f32.xlu1 %v1263_v0 }
 0x4d3   :  { %1505 = vmax.xlane.f32.xlu1 %v1504_v4 }
 0x4d7   :  { %1639 = vmax.xlane.f32.xlu1 %v1638_v8 }
 0x4db   :  { %1645 = vmax.xlane.f32.xlu1 %v1644_v20 }
 0x4de   :  { %v554_v22 = vpop.xlane.xlu0 %553 }
 0x4df   :  { %v562_v27 = vsub.f32 %v7780_v15, %v554_v22  ;;  %1975 = vmax.xlane.f32.xlu1 %v1974_v25 }
 0x4e1   :  { %v565_v30 = vmul.f32 1.442695, %v562_v27 }
 0x4e2   :  { %v557_v36 = vpop.xlane.xlu1 %556 }
 0x4e3   :  { %7028 = vpow2.f32 %v565_v30  ;;  %v563_v49 = vsub.f32 %v7784_v7, %v557_v36  ;;  %1981 = vmax.xlane.f32.xlu1 %v1980_v40 }
 0x4e5   :  { %v567_v54 = vmul.f32 1.442695, %v563_v49 }
 0x4e6   :  { %v561_v55 = vpop.xlane.xlu0 %560 }
 0x4e7   :  { %7030 = vpow2.f32 %v567_v54  ;;  %v564_v52 = vsub.f32 %v7788_v10, %v561_v55 }
 0x4e9   :  { %v569_v60 = vmul.f32 1.442695, %v564_v52 }
 0x4ea   :  { %v692_v57 = vpop.xlane.xlu1 %691 }
 0x4eb   :  { %7032 = vpow2.f32 %v569_v60  ;;  %v699_v15 = vsub.f32 %v7792_v26, %v692_v57 }
 0x4ed   :  { %v7880_v0 = vpop.eup %7028  ;;  %v702_v4 = vmul.f32 1.442695, %v699_v15 }
 0x4ee   :  { %v695_v8 = vpop.xlane.xlu0 %694  ;;  %v571_v20 = vsel %vm551_vm8, %v7880_v0, 0.0  ;;  %v7906_v60 = vpop.permute.xlu1 %1297 }
 0x4ef   :  { %7034 = vpow2.f32 %v702_v4  ;;  %v700_v7 = vsub.f32 %v7796_v31, %v695_v8  ;;  %572 = vadd.xlane.f32.xlu1 %v571_v20 }
 0x4f1   :  { %v7885_v22 = vpop.eup %7030  ;;  %v704_v25 = vmul.f32 1.442695, %v700_v7 }
 0x4f2   :  { %v698_v10 = vpop.xlane.xlu0 %697  ;;  %v574_v27 = vsel %vm551_vm8, %v7885_v22, 0.0  ;;  %v7910_v57 = vpop.permute.xlu1 %6929 }
 0x4f3   :  { %7036 = vpow2.f32 %v704_v25  ;;  %v701_v26 = vsub.f32 %v7800_v39, %v698_v10  ;;  %575 = vadd.xlane.f32.xlu0 %v574_v27 }
 0x4f5   :  { %v7890_v30 = vpop.eup %7032  ;;  %v706_v36 = vmul.f32 1.442695, %v701_v26 }
 0x4f6   :  { %v577_v40 = vsel %vm558_vm9, %v7890_v30, 0.0  ;;  %v7912_v15 = vpop.permute.xlu0 %6924 }
 0x4f7   :  { %7038 = vpow2.f32 %v706_v36  ;;  %578 = vadd.xlane.f32.xlu1 %v577_v40 }
 0x4f9   :  { %v7894_v31 = vpop.eup %7034 }
 0x4fa   :  { %v708_v49 = vsel %vm551_vm8, %v7894_v31, 0.0 }
 0x4fb   :  { %709 = vadd.xlane.f32.xlu0 %v708_v49 }
 0x4fd   :  { %v7898_v54 = vpop.eup %7036 }
 0x4fe   :  { %v711_v39 = vsel %vm551_vm8, %v7898_v54, 0.0 }
 0x4ff   :  { %712 = vadd.xlane.f32.xlu1 %v711_v39 }
 0x501   :  { %v7902_v55 = vpop.eup %7038 }
 0x502   :  { %v714_v52 = vsel %vm558_vm9, %v7902_v55, 0.0 }
 0x503   :  { %715 = vadd.xlane.f32.xlu0 %v714_v52 }
 0x519   :  { %6934 = vrot.lane.b32.xlu0 %v7623_v43, %s7306_s17 }
 0x523   :  { %v1023_v4 = vpop.xlane.xlu1 %1022 }
 0x524   :  { %v1030_v8 = vsub.f32 %v7804_v46, %v1023_v4 }
 0x526   :  { %v1033_v20 = vmul.f32 1.442695, %v1030_v8 }
 0x527   :  { %v1026_v7 = vpop.xlane.xlu0 %1025  ;;  %v1029_v25 = vpop.xlane.xlu1 %1028 }
 0x528   :  { %7040 = vpow2.f32 %v1033_v20  ;;  %v1031_v10 = vsub.f32 %v7806_v50, %v1026_v7  ;;  %v1032_v27 = vsub.f32 %v7810_v47, %v1029_v25 }
 0x52a   :  { %v1035_v26 = vmul.f32 1.442695, %v1031_v10  ;;  %v1037_v36 = vmul.f32 1.442695, %v1032_v27 }
 0x52b   :  { %v1262_v40 = vpop.xlane.xlu0 %1261 }
 0x52c   :  { %7042 = vpow2.f32 %v1035_v26  ;;  %v1269_v43 = vsub.f32 %v7814_v56, %v1262_v40  ;;  %v7937_v26 = vpop.permute.xlu1 %1682 }
 0x52d   :  { %7044 = vpow2.f32 %v1037_v36 }
 0x52e   :  { %v1272_v49 = vmul.f32 1.442695, %v1269_v43 }
 0x52f   :  { %v1268_v20 = vpop.xlane.xlu0 %1267 }
 0x530   :  { %7046 = vpow2.f32 %v1272_v49  ;;  %v1271_v36 = vsub.f32 %v7820_v61, %v1268_v20 }
 0x532   :  { %v7918_v39 = vpop.eup %7040 }
 0x533   :  { %v1039_v46 = vsel %vm551_vm8, %v7918_v39, 0.0  ;;  %v1503_v7 = vpop.xlane.xlu0 %1502 }
 0x534   :  { %1040 = vadd.xlane.f32.xlu1 %v1039_v46  ;;  %v1510_v27 = vsub.f32 %v7822_v63, %v1503_v7 }
 0x536   :  { %v7922_v52 = vpop.eup %7042  ;;  %v1513_v40 = vmul.f32 1.442695, %v1510_v27 }
 0x537   :  { %v7924_v50 = vpop.eup %7044  ;;  %v1042_v47 = vsel %vm551_vm8, %v7922_v52, 0.0  ;;  %v1509_v25 = vpop.xlane.xlu0 %1508 }
 0x538   :  { %v1045_v4 = vsel %vm558_vm9, %v7924_v50, 0.0  ;;  %1043 = vadd.xlane.f32.xlu1 %v1042_v47  ;;  %7048 = vpow2.f32 %v1513_v40  ;;  %v1512_v61 = vsub.f32 %v7826_v5, %v1509_v25 }
 0x539   :  { %1046 = vadd.xlane.f32.xlu0 %v1045_v4  ;;  %v1276_v4 = vmul.f32 1.442695, %v1271_v36 }
 0x53a   :  { %v7930_v56 = vpop.eup %7046 }
 0x53b   :  { %v1278_v8 = vsel %vm551_vm8, %v7930_v56, 0.0  ;;  %v1643_v10 = vpop.xlane.xlu0 %1642 }
 0x53c   :  { %v1648_v43 = vsub.f32 %v7830_v16, %v1643_v10  ;;  %v1517_v10 = vmul.f32 1.442695, %v1512_v61 }
 0x53d   :  { %1279 = vadd.xlane.f32.xlu0 %v1278_v8 }
 0x53e   :  { %v1652_v62 = vmul.f32 1.442695, %v1648_v43 }
 0x53f   :  { %v1979_v49 = vpop.xlane.xlu0 %1978 }
 0x540   :  { %v1984_v8 = vsub.f32 %v7842_v35, %v1979_v49 }
 0x542   :  { %v1988_v7 = vmul.f32 1.442695, %v1984_v8  ;;  %v7946_v27 = vpop.eup %7048 }
 0x543   :  { %v1519_v25 = vsel %vm551_vm8, %v7946_v27, 0.0 }
 0x549   :  { %2119 = vrot.lane.b32.xlu1 %v7604_v48, %s7306_s17 }
 0x55c   :  { %v1265_v46 = vpop.xlane.xlu1 %1264 }
 0x55d   :  { %v1270_v47 = vsub.f32 %v7816_v59, %v1265_v46 }
 0x55f   :  { %v1274_v34 = vmul.f32 1.442695, %v1270_v47 }
 0x560   :  { %v1506_v29 = vpop.xlane.xlu1 %1505 }
 0x561   :  { %7050 = vpow2.f32 %v1274_v34  ;;  %v1511_v63 = vsub.f32 %v7824_v1, %v1506_v29 }
 0x562   :  { %7052 = vpow2.f32 %v1276_v4 }
 0x563   :  { %7054 = vpow2.f32 %v1652_v62  ;;  %v1515_v16 = vmul.f32 1.442695, %v1511_v63 }
 0x564   :  { %v1640_v20 = vpop.xlane.xlu1 %1639  ;;  %7056 = vpow2.f32 %v1988_v7 }
 0x565   :  { %7058 = vpow2.f32 %v1515_v16  ;;  %v1647_v59 = vsub.f32 %v7828_v12, %v1640_v20 }
 0x566   :  { %7060 = vpow2.f32 %v1517_v10 }
 0x567   :  { %v1650_v34 = vmul.f32 1.442695, %v1647_v59 }
 0x568   :  { %v1646_v35 = vpop.xlane.xlu1 %1645 }
 0x569   :  { %v1649_v29 = vsub.f32 %v7832_v21, %v1646_v35  ;;  %7062 = vpow2.f32 %v1650_v34 }
 0x56b   :  { %v7948_v36 = vpop.eup %7050  ;;  %v1654_v12 = vmul.f32 1.442695, %v1649_v29 }
 0x56c   :  { %v7951_v1 = vpop.eup %7052  ;;  %v1976_v5 = vpop.xlane.xlu1 %1975  ;;  %v1281_v62 = vsel %vm551_vm8, %v7948_v36, 0.0 }
 0x56d   :  { %v7957_v40 = vpop.eup %7054  ;;  %1282 = vadd.xlane.f32.xlu0 %v1281_v62  ;;  %1520 = vadd.xlane.f32.xlu1 %v1519_v25  ;;  %v1983_v43 = vsub.f32 %v7836_v19, %v1976_v5  ;;  %v1284_v46 = vsel %vm558_vm9, %v7951_v1, 0.0  ;;  %7064 = vpow2.f32 %v1654_v12 }
 0x56e   :  { %v7960_v49 = vpop.eup %7056  ;;  %v1659_v47 = vsel %vm551_vm8, %v7957_v40, 0.0 }
 0x56f   :  { %v7966_v4 = vpop.eup %7058  ;;  %v1986_v8 = vmul.f32 1.442695, %v1983_v43  ;;  %v1995_v7 = vsel %vm551_vm8, %v7960_v49, 0.0 }
 0x570   :  { %v1982_v21 = vpop.xlane.xlu1 %1981  ;;  %v1522_v19 = vsel %vm551_vm8, %v7966_v4, 0.0  ;;  %v7973_v61 = vpop.eup %7060 }
 0x571   :  { %1285 = vadd.xlane.f32.xlu0 %v1284_v46  ;;  %1660 = vadd.xlane.f32.xlu1 %v1659_v47  ;;  %v1985_v63 = vsub.f32 %v7846_v41, %v1982_v21  ;;  %7066 = vpow2.f32 %v1986_v8  ;;  %v1525_v20 = vsel %vm558_vm9, %v7973_v61, 0.0 }
 0x573   :  { %v1990_v16 = vmul.f32 1.442695, %v1985_v63  ;;  %v7977_v10 = vpop.eup %7062 }
 0x574   :  { %v1656_v41 = vsel %vm551_vm8, %v7977_v10, 0.0 }
 0x575   :  { %1523 = vadd.xlane.f32.xlu0 %v1522_v19  ;;  %1996 = vadd.xlane.f32.xlu1 %v1995_v7  ;;  %7068 = vpow2.f32 %v1990_v16 }
 0x577   :  { %v7981_v59 = vpop.eup %7064 }
 0x578   :  { %v1662_v35 = vsel %vm558_vm9, %v7981_v59, 0.0 }
 0x579   :  { %1526 = vadd.xlane.f32.xlu0 %v1525_v20 }
 0x57b   :  { %v7985_v34 = vpop.eup %7066 }
 0x57c   :  { %v573_v29 = vpop.xlane.xlu1 %572  ;;  %v1992_v62 = vsel %vm551_vm8, %v7985_v34, 0.0 }
 0x57d   :  { %1657 = vadd.xlane.f32.xlu0 %v1656_v41 }
 0x57f   :  { %v7989_v25 = vpop.eup %7068 }
 0x580   :  { %v576_v5 = vpop.xlane.xlu0 %575  ;;  %v1998_v21 = vsel %vm558_vm9, %v7989_v25, 0.0 }
 0x581   :  { %1663 = vadd.xlane.f32.xlu0 %v1662_v35 }
 0x584   :  { %v579_v12 = vpop.xlane.xlu1 %578 }
 0x585   :  { %1993 = vadd.xlane.f32.xlu0 %v1992_v62  ;;  %v6926_v62 = vunpack.i.l.bf16 %v7912_v15 }
 0x586   :  { %2109 = vrot.lane.b32.xlu1 %v7618_v53, %s7307_s2 }
 0x588   :  { %v710_v43 = vpop.xlane.xlu0 %709 }
 0x589   :  { %7070 = vrcp.f32 %v710_v43  ;;  %1999 = vadd.xlane.f32.xlu0 %v1998_v21 }
 0x58a   :  { %2011 = vrot.lane.b32.xlu1 %v7584_v37, %s7308_s18 }
 0x58c   :  { %v713_v46 = vpop.xlane.xlu1 %712 }
 0x58d   :  { %7072 = vrcp.f32 %v713_v46 }
 0x58e   :  { %2111 = vrot.lane.b32.xlu1 %v7613_v51, %s7307_s2 }
 0x590   :  { %v716_v47 = vpop.xlane.xlu0 %715 }
 0x591   :  { %7074 = vrcp.f32 %v716_v47 }
 0x592   :  { %2113 = vrot.lane.b32.xlu1 %v7604_v48, %s7307_s2  ;;  %7076 = vrcp.f32 %v573_v29 }
 0x593   :  { %v7071_v53 = vpop.eup %7070  ;;  %7078 = vrcp.f32 %v576_v5 }
 0x594   :  { %v720_v8 = vmul.f32 %v7071_v53, %v7894_v31  ;;  %v6935_v63 = vpop.permute.xlu0 %6934  ;;  %7080 = vrcp.f32 %v579_v12  ;;  %v6921_v31 = vunpack.i.l.bf16 %v7870_v14 }
 0x595   :  { %v6937_v19 = vunpack.i.h.bf16 %v6935_v63  ;;  %v6936_v7 = vunpack.i.l.bf16 %v6935_v63  ;;  %v6931_v63 = vunpack.i.l.bf16 %v7910_v57 }
 0x596   :  { %5979 = vmatmul.mubr.msk.f32.vlgmr.msra.gmra.mrb[10].mxu1 %vm551_vm8, %v720_v8  ;;  %v6932_v8 = vunpack.i.h.bf16 %v7910_v57 }
 0x597   :  { %v7073_v16 = vpop.eup %7072  ;;  %v8003_v20 = vpack.c.bf16 %v6937_v19, %v6936_v7  ;;  %6642 = vmatpush3.bf16.msra.mxu1 %v6641_v11  ;;  %5981 = vmatprep.mubr.msk.f32.mxu1 %vm7299_vm0, %v7300_v6  ;;  %v6922_v11 = vunpack.i.h.bf16 %v7870_v14 }
 0x598   :  { %5991 = vmatprep.subr.mxu1 %v7300_v6  ;;  %v721_v48 = vmul.f32 %v7073_v16, %v7898_v54 }
 0x599   :  { %6681 = vmatpush3.bf16.xpose.msk.msra.mxu0 %vm7669_vm6, %v8003_v20  ;;  %v6648_v41 = vpack.c.bf16 %v6922_v11, %v6921_v31 }
 0x59a   :  { %5982 = vmatmul.mubr.msk.f32.gmra.mrb[12].mxu1 %vm551_vm8, %v721_v48  ;;  %6156 = vmatprep.subr.mxu0 %v7300_v6 }
 0x59b   :  { %v7075_v51 = vpop.eup %7074  ;;  %5992 = vmatpush3.msk.msra.mxu1 %vm743_vm7, %v7571_v17  ;;  %5984 = vmatprep.mubr.msk.f32.mxu1 %vm7299_vm0, %v7300_v6 }
 0x59c   :  { %v722_v2 = vmul.f32 %v7075_v51, %v7902_v55  ;;  %6647 = vmatprep.subr.bf16.mxu1 %v7298_v3  ;;  %v7077_v9 = vpop.eup %7076 }
 0x59d   :  { %v583_v17 = vmul.f32 %v7077_v9, %v7880_v0  ;;  %v7079_v54 = vpop.eup %7078 }
 0x59e   :  { %5985 = vmatmul.mubr.msk.f32.gmra.mrb[14].mxu1 %vm551_vm8, %v722_v2  ;;  %v584_v14 = vmul.f32 %v7079_v54, %v7885_v22  ;;  %v7081_v55 = vpop.eup %7080 }
 0x59f   :  { %6939 = vrot.lane.b32.xlu0 %v7596_v44, %s7308_s18  ;;  %5993 = vmatprep.mubr.msk.f32.mxu1 %vm7299_vm0, %v7300_v6  ;;  %v585_v0 = vmul.f32 %v7081_v55, %v7890_v30 }
 0x5a2   :  { %5994 = vmatmul.mubr.msk.f32.vlgmr.msra.gmra.mrb[16].mxu1 %vm551_vm8, %v583_v17 }
 0x5a3   :  { %6649 = vmatpush3.bf16.msra.mxu1 %v6648_v41  ;;  %5996 = vmatprep.mubr.msk.f32.mxu1 %vm7299_vm0, %v7300_v6 }
 0x5a4   :  { %6021 = vmatprep.subr.mxu1 %v7300_v6 }
 0x5a6   :  { %5997 = vmatmul.mubr.msk.f32.gmra.mrb[18].mxu1 %vm551_vm8, %v584_v14 }
 0x5a7   :  { %6022 = vmatpush3.msk.msra.mxu1 %vm743_vm7, %v7866_v13  ;;  %5999 = vmatprep.mubr.msk.f32.mxu1 %vm7299_vm0, %v7300_v6  ;;  %v6927_v13 = vunpack.i.h.bf16 %v7912_v15 }
 0x5a8   :  { %6654 = vmatprep.subr.bf16.mxu1 %v7298_v3 }
 0x5a9   :  { %v6655_v21 = vpack.c.bf16 %v6927_v13, %v6926_v62 }
 0x5aa   :  { %6000 = vmatmul.mubr.msk.f32.gmra.mrb[14].mxu1 %vm551_vm8, %v585_v0 }
 0x5ab   :  { %6023 = vmatprep.mubr.msk.f32.mxu1 %vm7299_vm0, %v7300_v6 }
 0x5c1   :  { %v1041_v35 = vpop.xlane.xlu1 %1040 }
 0x5c2   :  { %7082 = vrcp.f32 %v1041_v35 }
 0x5c5   :  { %v1044_v22 = vpop.xlane.xlu1 %1043 }
 0x5c6   :  { %v1047_v29 = vpop.xlane.xlu0 %1046  ;;  %7084 = vrcp.f32 %v1044_v22 }
 0x5c7   :  { %7086 = vrcp.f32 %v1047_v29 }
 0x5c9   :  { %v8046_v5 = vpop.permute.xlu1 %2119 }
 0x5ca   :  { %v1280_v30 = vpop.xlane.xlu0 %1279  ;;  %6157 = vmatpush3.xpose.msk.msra.mxu0 %vm458_vm5, %v8046_v5 }
 0x5cb   :  { %6685 = vmatprep.subr.bf16.mxu0 %v7298_v3  ;;  %7088 = vrcp.f32 %v1280_v30 }
 0x5cc   :  { %v7083_v12 = vpop.eup %7082 }
 0x5cd   :  { %v1051_v43 = vmul.f32 %v7083_v12, %v7918_v39 }
 0x5cf   :  { %6024 = vmatmul.mubr.msk.f32.vlgmr.msra.gmra.mrb[20].mxu1 %vm551_vm8, %v1051_v43 }
 0x5d0   :  { %v7085_v46 = vpop.eup %7084  ;;  %6656 = vmatpush3.bf16.msra.mxu1 %v6655_v21  ;;  %6026 = vmatprep.mubr.msk.f32.mxu1 %vm7299_vm0, %v7300_v6 }
 0x5d1   :  { %6051 = vmatprep.subr.mxu1 %v7300_v6  ;;  %v1052_v15 = vmul.f32 %v7085_v46, %v7922_v52  ;;  %v7087_v47 = vpop.eup %7086 }
 0x5d2   :  { %v1053_v39 = vmul.f32 %v7087_v47, %v7924_v50 }
 0x5d3   :  { %6027 = vmatmul.mubr.msk.f32.gmra.mrb[22].mxu1 %vm551_vm8, %v1052_v15 }
 0x5d4   :  { %6052 = vmatpush3.msk.msra.mxu1 %vm743_vm7, %v7906_v60  ;;  %6029 = vmatprep.mubr.msk.f32.mxu1 %vm7299_vm0, %v7300_v6  ;;  %v6666_v60 = vpack.c.bf16 %v6932_v8, %v6931_v63 }
 0x5d5   :  { %6665 = vmatprep.subr.bf16.mxu1 %v7298_v3  ;;  %v7089_v53 = vpop.eup %7088 }
 0x5d6   :  { %v1290_v52 = vmul.f32 %v7089_v53, %v7930_v56 }
 0x5d7   :  { %6030 = vmatmul.mubr.msk.f32.gmra.mrb[14].mxu1 %vm551_vm8, %v1053_v39 }
 0x5d8   :  { %6053 = vmatprep.mubr.msk.f32.mxu1 %vm7299_vm0, %v7300_v6 }
 0x5db   :  { %6054 = vmatmul.mubr.msk.f32.vlgmr.msra.gmra.mrb[24].mxu1 %vm551_vm8, %v1290_v52 }
 0x5dc   :  { %6667 = vmatpush3.bf16.msra.mxu1 %v6666_v60  ;;  %6056 = vmatprep.mubr.msk.f32.mxu1 %vm7299_vm0, %v7300_v6 }
 0x5dd   :  { %6096 = vmatprep.subr.mxu1 %v7300_v6 }
 0x5e0   :  { %6097 = vmatpush3.msk.msra.mxu1 %vm743_vm7, %v7937_v26 }
 0x5e1   :  { %6668 = vmatprep.subr.bf16.mxu1 %v7298_v3 }
 0x5fa   :  { %v1283_v57 = vpop.xlane.xlu0 %1282  ;;  %v1521_v50 = vpop.xlane.xlu1 %1520 }
 0x5fb   :  { %7090 = vrcp.f32 %v1283_v57 }
 0x5fe   :  { %v1286_v19 = vpop.xlane.xlu0 %1285  ;;  %v1661_v7 = vpop.xlane.xlu1 %1660 }
 0x5ff   :  { %7092 = vrcp.f32 %v1286_v19 }
 0x602   :  { %v1524_v56 = vpop.xlane.xlu0 %1523  ;;  %v1997_v16 = vpop.xlane.xlu1 %1996 }
 0x605   :  { %v7091_v48 = vpop.eup %7090 }
 0x606   :  { %v1527_v51 = vpop.xlane.xlu0 %1526  ;;  %v2110_v2 = vpop.permute.xlu1 %2109  ;;  %v1291_v9 = vmul.f32 %v7091_v48, %v7948_v36 }
 0x607   :  { %6159 = vmatmul.mubr.msk.f32.vlgmr.msra.gmra.mrb[62].mxu0 %vm458_vm5, %v2110_v2 }
 0x608   :  { %6057 = vmatmul.mubr.msk.f32.gmra.mrb[26].mxu1 %vm551_vm8, %v1291_v9  ;;  %6161 = vmatprep.mubr.msk.f32.mxu0 %vm7299_vm0, %v7300_v6 }
 0x609   :  { %v7093_v26 = vpop.eup %7092  ;;  %6059 = vmatprep.mubr.msk.f32.mxu1 %vm7299_vm0, %v7300_v6 }
 0x60a   :  { %v1658_v11 = vpop.xlane.xlu0 %1657  ;;  %v2012_v31 = vpop.permute.xlu1 %2011  ;;  %v1292_v17 = vmul.f32 %v7093_v26, %v7951_v1 }
 0x60b   :  { %7094 = vrcp.f32 %v1658_v11 }
 0x60c   :  { %6060 = vmatmul.mubr.msk.f32.gmra.mrb[14].mxu1 %vm551_vm8, %v1292_v17  ;;  %7096 = vrcp.f32 %v1661_v7 }
 0x60d   :  { %6098 = vmatprep.mubr.msk.f32.mxu1 %vm7299_vm0, %v7300_v6 }
 0x60e   :  { %v1664_v36 = vpop.xlane.xlu0 %1663  ;;  %v2112_v54 = vpop.permute.xlu1 %2111 }
 0x60f   :  { %6162 = vmatmul.mubr.msk.f32.gmra.mrb[64].mxu0 %vm458_vm5, %v2112_v54  ;;  %7098 = vrcp.f32 %v1664_v36 }
 0x610   :  { %6190 = vmatprep.mubr.msk.f32.mxu0 %vm7299_vm0, %v7300_v6  ;;  %7100 = vrcp.f32 %v1521_v50 }
 0x611   :  { %7102 = vrcp.f32 %v1524_v56 }
 0x612   :  { %v1994_v41 = vpop.xlane.xlu0 %1993  ;;  %7104 = vrcp.f32 %v1527_v51 }
 0x613   :  { %7106 = vrcp.f32 %v1994_v41 }
 0x614   :  { %7108 = vrcp.f32 %v1997_v16 }
 0x615   :  { %v7095_v14 = vpop.eup %7094 }
 0x616   :  { %v1668_v1 = vmul.f32 %v7095_v14, %v7977_v10  ;;  %v2000_v55 = vpop.xlane.xlu0 %1999  ;;  %v7097_v0 = vpop.eup %7096 }
 0x617   :  { %v1669_v35 = vmul.f32 %v7097_v0, %v7957_v40  ;;  %7110 = vrcp.f32 %v2000_v55 }
 0x618   :  { %6099 = vmatmul.mubr.msk.f32.vlgmr.msra.gmra.mrb[28].mxu1 %vm551_vm8, %v1668_v1 }
 0x619   :  { %6670 = vmatpush3.bf16.msra.mxu1 %v6669_v45  ;;  %6101 = vmatprep.mubr.msk.f32.mxu1 %vm7299_vm0, %v7300_v6  ;;  %v7099_v22 = vpop.eup %7098 }
 0x61a   :  { %6111 = vmatprep.subr.mxu1 %v7300_v6  ;;  %v6940_v29 = vpop.permute.xlu0 %6939  ;;  %v1670_v32 = vmul.f32 %v7099_v22, %v7981_v59  ;;  %v7101_v42 = vpop.eup %7100 }
 0x61b   :  { %v6942_v45 = vunpack.i.h.bf16 %v6940_v29  ;;  %v6941_v10 = vunpack.i.l.bf16 %v6940_v29  ;;  %v1531_v40 = vmul.f32 %v7101_v42, %v7946_v27  ;;  %v7103_v13 = vpop.eup %7102 }
 0x61c   :  { %6102 = vmatmul.mubr.msk.f32.gmra.mrb[30].mxu1 %vm551_vm8, %v1669_v35  ;;  %v1532_v59 = vmul.f32 %v7103_v13, %v7966_v4  ;;  %v7105_v30 = vpop.eup %7104 }
 0x61d   :  { %6112 = vmatpush3.msk.msra.mxu1 %vm743_vm7, %v7584_v37  ;;  %6104 = vmatprep.mubr.msk.f32.mxu1 %vm7299_vm0, %v7300_v6  ;;  %v6676_v62 = vpack.c.bf16 %v6942_v45, %v6941_v10  ;;  %v1533_v27 = vmul.f32 %v7105_v30, %v7973_v61  ;;  %v7107_v12 = vpop.eup %7106 }
 0x61e   :  { %6675 = vmatprep.subr.bf16.mxu1 %v7298_v3  ;;  %v2004_v4 = vmul.f32 %v7107_v12, %v7985_v34  ;;  %v7109_v43 = vpop.eup %7108  ;;  %v2367_v12 = vsub.s32 5, %v7506_v24 }
 0x61f   :  { %v2005_v61 = vmul.f32 %v7109_v43, %v7960_v49  ;;  %v2114_v49 = vpop.permute.xlu1 %2113  ;;  %v8163_v43 = vld [vmem:[%s9296_s7] sm:$0xff] }
 0x620   :  { %6105 = vmatmul.mubr.msk.f32.gmra.mrb[32].mxu1 %vm551_vm8, %v1670_v32 }
 0x621   :  { %6113 = vmatprep.mubr.msk.f32.mxu1 %vm7299_vm0, %v7300_v6  ;;  %v7111_v21 = vpop.eup %7110 }
 0x622   :  { %v2006_v34 = vmul.f32 %v7111_v21, %v7989_v25 }
 0x624   :  { %6114 = vmatmul.mubr.msk.f32.vlgmr.msra.gmra.mrb[28].mxu1 %vm551_vm8, %v1531_v40 }
 0x625   :  { %6677 = vmatpush3.bf16.msra.mxu1 %v6676_v62  ;;  %6116 = vmatprep.mubr.msk.f32.mxu1 %vm7299_vm0, %v7300_v6 }
 0x626   :  { %6141 = vmatprep.subr.mxu1 %v7300_v6 }
 0x628   :  { %6117 = vmatmul.mubr.msk.f32.gmra.mrb[30].mxu1 %vm551_vm8, %v1532_v59 }
 0x629   :  { %6142 = vmatpush3.msk.msra.mxu1 %vm743_vm7, %v2012_v31  ;;  %6119 = vmatprep.mubr.msk.f32.mxu1 %vm7299_vm0, %v7300_v6 }
 0x62a   :  { %6813 = vmatprep.subr.bf16.mxu1 %v7298_v3 }
 0x62c   :  { %6120 = vmatmul.mubr.msk.f32.gmra.mrb[32].mxu1 %vm551_vm8, %v1533_v27 }
 0x62d   :  { %6143 = vmatprep.mubr.msk.f32.mxu1 %vm7299_vm0, %v7300_v6 }
 0x630   :  { %6144 = vmatmul.mubr.msk.f32.vlgmr.msra.gmra.mrb[28].mxu1 %vm551_vm8, %v2004_v4 }
 0x631   :  { %6815 = vmatpush3.bf16.xpose.msk.msra.mxu1 %vm7669_vm6, %v8003_v20  ;;  %6146 = vmatprep.mubr.msk.f32.mxu1 %vm7299_vm0, %v7300_v6 }
 0x632   :  { %6814 = vmatprep.subr.mxu1 %v7300_v6 }
 0x634   :  { %6147 = vmatmul.mubr.msk.f32.gmra.mrb[30].mxu1 %vm551_vm8, %v2005_v61  ;;  %v8168_v61 = vrot.slane %v8163_v43, %v2367_v12 }
 0x635   :  { %6149 = vmatprep.mubr.msk.f32.mxu1 %vm7299_vm0, %v7300_v6 }
 0x638   :  { %6150 = vmatmul.mubr.msk.f32.gmra.mrb[32].mxu1 %vm551_vm8, %v2006_v34 }
 0x639   :  { %6816 = vmatpush3.xpose.msk.msra.mxu1 %vm458_vm5, %v8046_v5  ;;  %6164 = vmatprep.mubr.msk.f32.mxu1 %vm7299_vm0, %v7300_v6 }
 0x63a   :  { %6682 = vmatprep.subr.bf16.mxu1 %v7298_v3 }
 0x63c   :  { %6165 = vmatmul.mubr.msk.f32.vlgmr.msra.gmra.mrb[34].mxu1 %vm458_vm5, %v2114_v49 }
 0x63d   :  { %6173 = vmatprep.mubr.msk.f32.mxu1 %vm7299_vm0, %v7300_v6 }
 0x669   :  { %v812_v20 = vpop.f32.mrb[10].mxu1 }
 0x66a   :  { %v5980_v46 = vpop.f32.mrb[11].mxu1 }
 0x66d   :  { %v817_v15 = vpop.f32.mrb[12].mxu1 }
 0x66e   :  { %v5983_v25 = vpop.f32.mrb[13].mxu1 }
 0x675   :  { %v903_v47 = vpop.f32.mrb[16].mxu1 }
 0x676   :  { %v904_v39 = vadd.f32 %v903_v47, %v812_v20  ;;  %v5995_v53 = vpop.f32.mrb[17].mxu1 }
 0x679   :  { %v908_v8 = vpop.f32.mrb[18].mxu1 }
 0x67a   :  { %v909_v5 = vadd.f32 %v908_v8, %v817_v15  ;;  %v5998_v63 = vpop.f32.mrb[19].mxu1 }
 0x6a2   :  { %v1139_v52 = vpop.f32.mrb[20].mxu1 }
 0x6a3   :  { %v1153_v60 = vadd.f32 %v1139_v52, %v904_v39  ;;  %v6025_v57 = vpop.f32.mrb[21].mxu1 }
 0x6a6   :  { %v1144_v50 = vpop.f32.mrb[22].mxu1 }
 0x6a7   :  { %v1154_v19 = vadd.f32 %v1144_v50, %v909_v5  ;;  %v6028_v7 = vpop.f32.mrb[23].mxu1 }
 0x6ae   :  { %v1378_v56 = vpop.f32.mrb[24].mxu1 }
 0x6af   :  { %v1392_v16 = vadd.f32 %v1378_v56, %v1153_v60  ;;  %v6055_v48 = vpop.f32.mrb[25].mxu1 }
 0x6b1   :  { %v2360_v4 = vadd.f32 %v1392_v16, %v7416_v18 }
 0x6da   :  { %v2199_v51 = vpop.f32.mrb[62].mxu0 }
 0x6db   :  { %v1383_v2 = vpop.f32.mrb[26].mxu1  ;;  %v6160_v9 = vpop.f32.mrb[63].mxu0  ;;  %v2213_v26 = vsel %vm551_vm8, %v2199_v51, -inf }
 0x6dc   :  { %v1393_v11 = vadd.f32 %v1383_v2, %v1154_v19  ;;  %v6058_v31 = vpop.f32.mrb[27].mxu1  ;;  %2214 = vmax.xlane.f32.xlu1 %v2213_v26 }
 0x6de   :  { %v2361_v18 = vadd.f32 %v1393_v11, %v7423_v23 }
 0x6df   :  { %v8150_v17 = vpop.f32.mrb[14].mxu1 }
 0x6e0   :  { %v6061_v36 = vpop.f32.mrb[15].mxu1  ;;  %v8180_v20 = vadd.f32 %v8168_v61, %v2361_v18 }
 0x6e2   :  { %v2204_v54 = vpop.f32.mrb[64].mxu0  ;;  %v2377_v46 = vsel %vm156_vm2, %v8180_v20, 0.0 }
 0x6e3   :  { %v6163_v41 = vpop.f32.mrb[65].mxu0  ;;  %v2216_v14 = vsel %vm551_vm8, %v2204_v54, -inf }
 0x6e4   :  { %2217 = vmax.xlane.f32.xlu0 %v2216_v14 }
 0x70f   :  { %v2209_v1 = vpop.f32.mrb[34].mxu1 }
 0x710   :  { %v6166_v55 = vpop.f32.mrb[35].mxu1  ;;  %v2219_v0 = vsel %vm558_vm9, %v2209_v1, -inf }
 0x711   :  { %2220 = vmax.xlane.f32.xlu0 %v2219_v0 }
 0x769   :  { %v2215_v35 = vpop.xlane.xlu1 %2214 }
 0x76a   :  { %v2222_v22 = vsub.f32 %v2199_v51, %v2215_v35 }
 0x76c   :  { %v2225_v29 = vmul.f32 1.442695, %v2222_v22 }
 0x76e   :  { %7112 = vpow2.f32 %v2225_v29 }
 0x771   :  { %v2218_v32 = vpop.xlane.xlu0 %2217 }
 0x772   :  { %v2223_v42 = vsub.f32 %v2204_v54, %v2218_v32 }
 0x774   :  { %v2227_v45 = vmul.f32 1.442695, %v2223_v42 }
 0x776   :  { %7114 = vpow2.f32 %v2227_v45 }
 0x778   :  { %v7113_v10 = vpop.eup %7112 }
 0x779   :  { %v2231_v40 = vsel %vm551_vm8, %v7113_v10, 0.0 }
 0x77a   :  { %2232 = vadd.xlane.f32.xlu1 %v2231_v40 }
 0x780   :  { %v7115_v13 = vpop.eup %7114 }
 0x781   :  { %v2234_v62 = vsel %vm551_vm8, %v7115_v13, 0.0 }
 0x782   :  { %2235 = vadd.xlane.f32.xlu0 %v2234_v62  ;;  %v2457_v62 = vld [vmem:[%s9294_s5] sm:$0xff] }
 0x78b   :  { %6944 = vrot.lane.b32.xlu1 %v7596_v44, %s7309_s19  ;;  %v8171_v44 = vadd.f32 %v8168_v61, %v2360_v4  ;;  %v2460_v4 = vld [vmem:[%s9294_s5 + $0x18] sm:$0xff] }
 0x78d   :  { %v2374_v34 = vsel %vm156_vm2, %v8171_v44, 0.0 }
 0x79e   :  { %v2221_v59 = vpop.xlane.xlu0 %2220 }
 0x79f   :  { %v2224_v30 = vsub.f32 %v2209_v1, %v2221_v59  ;;  %v2458_v59 = vld [vmem:[%s9294_s5 + $0x8] sm:$0xff] }
 0x7a1   :  { %v2229_v27 = vmul.f32 1.442695, %v2224_v30  ;;  %v6686_v30 = vpack.c.bf16 %v2458_v59, %v2457_v62  ;;  %v2625_v59 = vld [vmem:[%s9295_s6 + $0x50] sm:$0xff] }
 0x7a3   :  { %7116 = vpow2.f32 %v2229_v27  ;;  %6687 = vmatpush3.bf16.msra.mxu0 %v6686_v30  ;;  %v2459_v27 = vld [vmem:[%s9294_s5 + $0x10] sm:$0xff]  ;;  %v2626_v30 = vld [vmem:[%s9295_s6 + $0x58] sm:$0xff] }
 0x7a4   :  { %6688 = vmatprep.subr.bf16.mxu0 %v7298_v3 }
 0x7ad   :  { %v7117_v21 = vpop.eup %7116 }
 0x7ae   :  { %v2237_v49 = vsel %vm558_vm9, %v7117_v21, 0.0 }
 0x7af   :  { %2375 = vadd.xlane.f32.xlu1 %v2374_v34  ;;  %2238 = vadd.xlane.f32.xlu0 %v2237_v49 }
 0x7c5   :  { %2250 = vrot.lane.b32.xlu0 %v7584_v37, %s7309_s19 }
 0x7e4   :  { %2378 = vadd.xlane.f32.xlu0 %v2377_v46 }
 0x807   :  { %v2233_v15 = vpop.xlane.xlu1 %2232 }
 0x808   :  { %7118 = vrcp.f32 %v2233_v15 }
 0x80b   :  { %v6945_v25 = vpop.permute.xlu1 %6944 }
 0x80c   :  { %v6947_v47 = vunpack.i.h.bf16 %v6945_v25  ;;  %v6946_v39 = vunpack.i.l.bf16 %v6945_v25 }
 0x80e   :  { %v6683_v53 = vpack.c.bf16 %v6947_v47, %v6946_v39 }
 0x80f   :  { %v2236_v8 = vpop.xlane.xlu0 %2235 }
 0x810   :  { %6684 = vmatpush3.bf16.msra.mxu1 %v6683_v53  ;;  %7120 = vrcp.f32 %v2236_v8 }
 0x811   :  { %6171 = vmatprep.subr.mxu1 %v7300_v6 }
 0x812   :  { %v7119_v23 = vpop.eup %7118 }
 0x813   :  { %v2243_v63 = vmul.f32 %v7119_v23, %v7113_v10 }
 0x81a   :  { %v7121_v52 = vpop.eup %7120 }
 0x81b   :  { %v2244_v60 = vmul.f32 %v7121_v52, %v7115_v13 }
 0x83c   :  { %v2239_v37 = vpop.xlane.xlu0 %2238  ;;  %v2376_v7 = vpop.xlane.xlu1 %2375 }
 0x83d   :  { %7122 = vrcp.f32 %v2239_v37  ;;  %v2389_v51 = vmul.f32 0.03125, %v2376_v7 }
 0x83f   :  { %v8204_v41 = vsub.f32 %v8171_v44, %v2389_v51 }
 0x840   :  { %v2251_v5 = vpop.permute.xlu0 %2250 }
 0x841   :  { %6172 = vmatpush3.msk.msra.mxu1 %vm743_vm7, %v2251_v5 }
 0x842   :  { %6174 = vmatmul.mubr.msk.f32.vlgmr.msra.gmra.mrb[28].mxu1 %vm551_vm8, %v2243_v63  ;;  %6715 = vmatprep.subr.bf16.mxu1 %v7298_v3 }
 0x843   :  { %6176 = vmatprep.mubr.msk.f32.mxu1 %vm7299_vm0, %v7300_v6 }
 0x846   :  { %6177 = vmatmul.mubr.msk.f32.gmra.mrb[30].mxu1 %vm551_vm8, %v2244_v60 }
 0x847   :  { %v7123_v57 = vpop.eup %7122  ;;  %6179 = vmatprep.mubr.msk.f32.mxu1 %vm7299_vm0, %v7300_v6 }
 0x848   :  { %v2245_v50 = vmul.f32 %v7123_v57, %v7117_v21 }
 0x84a   :  { %6180 = vmatmul.mubr.msk.f32.gmra.mrb[32].mxu1 %vm551_vm8, %v2245_v50 }
 0x84b   :  { %6260 = vmatprep.mubr.msk.f32.mxu1 %vm7299_vm0, %v7300_v6 }
 0x871   :  { %v2379_v26 = vpop.xlane.xlu0 %2378 }
 0x872   :  { %v2390_v14 = vmul.f32 0.03125, %v2379_v26 }
 0x874   :  { %v2395_v29 = vsub.f32 %v8180_v20, %v2390_v14 }
 0x876   :  { %v2400_v13 = vmul.f32 %v2395_v29, %v2395_v29 }
 0x915   :  { %v2331_v19 = vpop.f32.mrb[28].mxu1 }
 0x916   :  { %v2351_v56 = vrot.slane %v2331_v19, 7  ;;  %v6175_v16 = vpop.f32.mrb[29].mxu1 }
 0x917   :  { %v2450_v16 = vsub.s32 3, %v7506_v24 }
 0x918   :  { %v2359_v48 = vsel %vm743_vm7, %v8150_v17, %v2351_v56 }
 0x919   :  { %v2362_v2 = vadd.f32 %v2359_v48, %v7430_v28  ;;  %v2336_v9 = vpop.f32.mrb[30].mxu1 }
 0x91a   :  { %v2352_v11 = vrot.slane %v2336_v9, 7  ;;  %v6178_v31 = vpop.f32.mrb[31].mxu1  ;;  %v8269_v9 = vrot.slane %v8163_v43, %v2450_v16 }
 0x91b   :  { %v8200_v36 = vadd.f32 %v8168_v61, %v2362_v2 }
 0x91c   :  { %v2353_v54 = vsel %vm743_vm7, %v2351_v56, %v2352_v11  ;;  %v2441_v56 = vsub.s32 2, %v7506_v24 }
 0x91d   :  { %v2363_v1 = vadd.f32 %v2353_v54, %v7437_v33  ;;  %v2341_v55 = vpop.f32.mrb[32].mxu1  ;;  %v2380_v17 = vsel %vm156_vm2, %v8200_v36, 0.0  ;;  %v2399_v33 = vmul.f32 %v8204_v41, %v8204_v41 }
 0x91e   :  { %v2354_v28 = vrot.slane %v2341_v55, 7  ;;  %2381 = vadd.xlane.f32.xlu1 %v2380_v17  ;;  %v6181_v0 = vpop.f32.mrb[33].mxu1  ;;  %v8263_v48 = vrot.slane %v8163_v43, %v2441_v56  ;;  %v2616_v55 = vld [vmem:[%s9295_s6 + $0x8] sm:$0xff] }
 0x91f   :  { %v8210_v35 = vadd.f32 %v8168_v61, %v2363_v1  ;;  %v2404_v10 = vsel %vm156_vm2, %v2399_v33, 0.0  ;;  %v2615_v1 = vld [vmem:[%s9295_s6] sm:$0xff]  ;;  %v2618_v0 = vld [vmem:[%s9295_s6 + $0x18] sm:$0xff]  ;;  %v2621_v33 = vld [vmem:[%s9295_s6 + $0x30] sm:$0xff] }
 0x920   :  { %v2355_v22 = vsel %vm743_vm7, %v2352_v11, %v2354_v28  ;;  %v6692_v17 = vpack.c.bf16 %v2616_v55, %v2615_v1  ;;  %v2617_v28 = vld [vmem:[%s9295_s6 + $0x10] sm:$0xff] }
 0x921   :  { %v2364_v32 = vadd.f32 %v2355_v22, %v7444_v38  ;;  %v2383_v42 = vsel %vm156_vm2, %v8210_v35, 0.0  ;;  %v2407_v38 = vsel %vm156_vm2, %v2400_v13, 0.0  ;;  %v6695_v22 = vpack.c.bf16 %v2618_v0, %v2617_v28  ;;  %v2623_v13 = vld [vmem:[%s9295_s6 + $0x40] sm:$0xff] }
 0x922   :  { %2384 = vadd.xlane.f32.xlu1 %v2383_v42 }
 0x923   :  { %v8220_v45 = vadd.f32 %v8168_v61, %v2364_v32  ;;  %v6689_v61 = vpack.c.bf16 %v2460_v4, %v2459_v27  ;;  %v2620_v32 = vld [vmem:[%s9295_s6 + $0x28] sm:$0xff]  ;;  %v6707_v27 = vpack.c.bf16 %v2626_v30, %v2625_v59  ;;  %v2627_v4 = vld [vmem:[%s9295_s6 + $0x60] sm:$0xff] }
 0x925   :  { %v2386_v40 = vsel %vm169_vm3, %v8220_v45, 0.0  ;;  %6690 = vmatpush3.bf16.msra.mxu0 %v6689_v61  ;;  %v2628_v61 = vld [vmem:[%s9295_s6 + $0x68] sm:$0xff] }
 0x926   :  { %2405 = vadd.xlane.f32.xlu1 %v2404_v10  ;;  %2387 = vadd.xlane.f32.xlu0 %v2386_v40  ;;  %v2622_v10 = vld [vmem:[%s9295_s6 + $0x38] sm:$0xff] }
 0x927   :  { %6691 = vmatprep.subr.bf16.mxu0 %v7298_v3  ;;  %v6701_v40 = vpack.c.bf16 %v2622_v10, %v2621_v33 }
 0x92a   :  { %2408 = vadd.xlane.f32.xlu0 %v2407_v38  ;;  %v2624_v38 = vld [vmem:[%s9295_s6 + $0x48] sm:$0xff] }
 0x92b   :  { %v6704_v62 = vpack.c.bf16 %v2624_v38, %v2623_v13 }
 0x9ab   :  { %v2382_v21 = vpop.xlane.xlu1 %2381 }
 0x9ac   :  { %v2391_v34 = vmul.f32 0.03125, %v2382_v21  ;;  %v6710_v21 = vpack.c.bf16 %v2628_v61, %v2627_v4 }
 0x9ae   :  { %v8241_v49 = vsub.f32 %v8200_v36, %v2391_v34  ;;  %v2629_v34 = vld [vmem:[%s9295_s6 + $0x70] sm:$0xff] }
 0x9af   :  { %v2385_v18 = vpop.xlane.xlu1 %2384 }
 0x9b0   :  { %v2392_v46 = vmul.f32 0.03125, %v2385_v18  ;;  %v2401_v15 = vmul.f32 %v8241_v49, %v8241_v49  ;;  %v2630_v18 = vld [vmem:[%s9295_s6 + $0x78] sm:$0xff] }
 0x9b2   :  { %v8246_v25 = vsub.f32 %v8210_v35, %v2392_v46  ;;  %v2410_v47 = vsel %vm156_vm2, %v2401_v15, 0.0  ;;  %v6713_v46 = vpack.c.bf16 %v2630_v18, %v2629_v34 }
 0x9b3   :  { %2411 = vadd.xlane.f32.xlu1 %v2410_v47  ;;  %v2406_v39 = vpop.xlane.xlu1 %2405  ;;  %v2388_v53 = vpop.xlane.xlu0 %2387 }
 0x9b4   :  { %v2419_v8 = vmul.f32 0.03125, %v2406_v39  ;;  %v2393_v37 = vmul.f32 0.03125, %v2388_v53  ;;  %v2402_v23 = vmul.f32 %v8246_v25, %v8246_v25 }
 0x9b6   :  { %v2424_v5 = vadd.f32 1e-06, %v2419_v8  ;;  %v8252_v63 = vsub.f32 %v8220_v45, %v2393_v37  ;;  %v2413_v52 = vsel %vm156_vm2, %v2402_v23, 0.0 }
 0x9b7   :  { %2414 = vadd.xlane.f32.xlu0 %v2413_v52  ;;  %v2409_v60 = vpop.xlane.xlu0 %2408 }
 0x9b8   :  { %7124 = vrsqrt.f32 %v2424_v5  ;;  %v2420_v57 = vmul.f32 0.03125, %v2409_v60  ;;  %v2403_v50 = vmul.f32 %v8252_v63, %v8252_v63 }
 0x9ba   :  { %v2425_v19 = vadd.f32 1e-06, %v2420_v57  ;;  %v2416_v7 = vsel %vm169_vm3, %v2403_v50, 0.0 }
 0x9bb   :  { %2417 = vadd.xlane.f32.xlu1 %v2416_v7 }
 0x9bc   :  { %7126 = vrsqrt.f32 %v2425_v19 }
 0x9c2   :  { %v7125_v51 = vpop.eup %7124 }
 0x9c3   :  { %v2434_v2 = vmul.f32 %v7125_v51, %v8204_v41 }
 0x9c5   :  { %v2443_v26 = vmul.f32 %v8263_v48, %v2434_v2 }
 0x9c6   :  { %v7127_v11 = vpop.eup %7126 }
 0x9c7   :  { %v2452_v31 = vadd.f32 %v8269_v9, %v2443_v26  ;;  %v2435_v54 = vmul.f32 %v7127_v11, %v2395_v29  ;;  %v2619_v29 = vld [vmem:[%s9295_s6 + $0x20] sm:$0xff] }
 0x9c8   :  { %v6698_v42 = vpack.c.bf16 %v2620_v32, %v2619_v29 }
 0x9c9   :  { %6191 = vmatmul.mubr.msk.f32.vlgmr.msra.gmra.mrb[66].mxu0 %vm156_vm2, %v2452_v31  ;;  %v2444_v14 = vmul.f32 %v8263_v48, %v2435_v54  ;;  %v2463_v54 = vsub.s32 6, %v7506_v24 }
 0x9ca   :  { %6193 = vmatprep.mubr.msk.f32.mxu0 %vm7299_vm0, %v7300_v6  ;;  %6693 = vmatpush3.bf16.msra.mxu0 %v6692_v17 }
 0x9cb   :  { %v2453_v41 = vadd.f32 %v8269_v9, %v2444_v14  ;;  %6694 = vmatprep.subr.bf16.mxu0 %v7298_v3 }
 0x9cd   :  { %6194 = vmatmul.mubr.msk.f32.gmra.mrb[68].mxu0 %vm156_vm2, %v2453_v41 }
 0x9ce   :  { %6196 = vmatprep.mubr.msk.f32.mxu0 %vm7299_vm0, %v7300_v6  ;;  %6696 = vmatpush3.bf16.msra.mxu0 %v6695_v22 }
 0x9cf   :  { %6697 = vmatprep.subr.bf16.mxu0 %v7298_v3 }
 0x9d2   :  { %6699 = vmatpush3.bf16.msra.mxu0 %v6698_v42 }
 0x9d3   :  { %6700 = vmatprep.subr.bf16.mxu0 %v7298_v3 }
 0x9d6   :  { %6702 = vmatpush3.bf16.msra.mxu0 %v6701_v40 }
 0x9d7   :  { %6703 = vmatprep.subr.bf16.mxu0 %v7298_v3 }
 0x9da   :  { %6705 = vmatpush3.bf16.msra.mxu0 %v6704_v62 }
 0x9db   :  { %6706 = vmatprep.subr.bf16.mxu0 %v7298_v3 }
 0x9de   :  { %6708 = vmatpush3.bf16.msra.mxu0 %v6707_v27 }
 0x9df   :  { %6709 = vmatprep.subr.bf16.mxu0 %v7298_v3 }
 0x9e2   :  { %6711 = vmatpush3.bf16.msra.mxu0 %v6710_v21 }
 0x9e3   :  { %6712 = vmatprep.subr.bf16.mxu0 %v7298_v3 }
 0x9e6   :  { %6714 = vmatpush3.bf16.msra.mxu0 %v6713_v46 }
 0x9e7   :  { %6727 = vmatprep.subr.bf16.mxu0 %v7298_v3 }
 0xa40   :  { %v2412_v15 = vpop.xlane.xlu1 %2411 }
 0xa41   :  { %v2421_v47 = vmul.f32 0.03125, %v2412_v15 }
 0xa43   :  { %v2426_v39 = vadd.f32 1e-06, %v2421_v47 }
 0xa44   :  { %v2415_v53 = vpop.xlane.xlu0 %2414 }
 0xa45   :  { %7128 = vrsqrt.f32 %v2426_v39  ;;  %v2422_v8 = vmul.f32 0.03125, %v2415_v53 }
 0xa47   :  { %v2427_v37 = vadd.f32 1e-06, %v2422_v8 }
 0xa48   :  { %v2418_v23 = vpop.xlane.xlu1 %2417 }
 0xa49   :  { %7130 = vrsqrt.f32 %v2427_v37  ;;  %v2423_v5 = vmul.f32 0.03125, %v2418_v23 }
 0xa4b   :  { %v2428_v52 = vadd.f32 1e-06, %v2423_v5 }
 0xa4d   :  { %7132 = vrsqrt.f32 %v2428_v52 }
 0xa4f   :  { %v7129_v60 = vpop.eup %7128 }
 0xa50   :  { %v2436_v57 = vmul.f32 %v7129_v60, %v8241_v49 }
 0xa52   :  { %v2445_v50 = vmul.f32 %v8263_v48, %v2436_v57 }
 0xa53   :  { %v7131_v19 = vpop.eup %7130 }
 0xa54   :  { %v2454_v7 = vadd.f32 %v8269_v9, %v2445_v50  ;;  %v2437_v51 = vmul.f32 %v7131_v19, %v8246_v25 }
 0xa56   :  { %6197 = vmatmul.mubr.msk.f32.gmra.mrb[70].mxu0 %vm156_vm2, %v2454_v7  ;;  %v2446_v2 = vmul.f32 %v8263_v48, %v2437_v51 }
 0xa57   :  { %v7133_v26 = vpop.eup %7132  ;;  %6199 = vmatprep.mubr.msk.f32.mxu0 %vm7299_vm0, %v7300_v6 }
 0xa58   :  { %v2455_v11 = vadd.f32 %v8269_v9, %v2446_v2  ;;  %v2438_v31 = vmul.f32 %v7133_v26, %v8252_v63  ;;  %v2464_v63 = vrot.slane %v8163_v43, %v2463_v54 }
 0xa5a   :  { %6200 = vmatmul.mubr.msk.f32.gmra.mrb[72].mxu0 %vm156_vm2, %v2455_v11  ;;  %v2447_v49 = vmul.f32 %v8263_v48, %v2438_v31 }
 0xa5b   :  { %6202 = vmatprep.mubr.msk.f32.mxu0 %vm7299_vm0, %v7300_v6 }
 0xa5c   :  { %v2456_v25 = vadd.f32 %v8269_v9, %v2447_v49 }
 0xa5e   :  { %6203 = vmatmul.mubr.msk.f32.gmra.mrb[74].mxu0 %vm156_vm2, %v2456_v25 }
 0xa5f   :  { %6237 = vmatprep.mubr.msk.f32.mxu0 %vm7299_vm0, %v7300_v6 }
 0xa9c   :  { %v2546_v14 = vpop.f32.mrb[66].mxu0 }
 0xa9d   :  { %v2547_v41 = vadd.f32 %v2546_v14, %v2464_v63  ;;  %v6192_v1 = vpop.f32.mrb[67].mxu0 }
 0xa9f   :  { %v2570_v48 = vmul.f32 %v2547_v41, %v2547_v41 }
 0xaa0   :  { %v2551_v55 = vpop.f32.mrb[68].mxu0 }
 0xaa1   :  { %v2575_v17 = vmul.f32 %v2570_v48, %v2547_v41  ;;  %v2552_v28 = vadd.f32 %v2551_v55, %v2464_v63  ;;  %v6195_v0 = vpop.f32.mrb[69].mxu0 }
 0xaa3   :  { %v2580_v9 = vmul.f32 0.044715, %v2575_v17  ;;  %v2571_v22 = vmul.f32 %v2552_v28, %v2552_v28 }
 0xaa5   :  { %v2585_v29 = vadd.f32 %v2580_v9, %v2547_v41  ;;  %v2576_v32 = vmul.f32 %v2571_v22, %v2552_v28 }
 0xaa7   :  { %v2590_v42 = vmul.f32 0.7978846, %v2585_v29  ;;  %v2581_v33 = vmul.f32 0.044715, %v2576_v32  ;;  %v2728_v29 = vsub.s32 7, %v7506_v24 }
 0xaa9   :  { %7134 = vtanh.f32 %v2590_v42  ;;  %v2586_v10 = vadd.f32 %v2581_v33, %v2552_v28  ;;  %v2729_v32 = vrot.slane %v8163_v43, %v2728_v29 }
 0xaab   :  { %v2591_v40 = vmul.f32 0.7978846, %v2586_v10 }
 0xaad   :  { %7136 = vtanh.f32 %v2591_v40 }
 0xab3   :  { %v7135_v13 = vpop.eup %7134 }
 0xab4   :  { %v2600_v38 = vadd.f32 1.0, %v7135_v13 }
 0xab6   :  { %v2605_v62 = vmul.f32 0.5, %v2600_v38 }
 0xab7   :  { %v7137_v59 = vpop.eup %7136 }
 0xab8   :  { %v2610_v30 = vmul.f32 %v2605_v62, %v2547_v41  ;;  %v2601_v27 = vadd.f32 1.0, %v7137_v59 }
 0xaba   :  { %6238 = vmatmul.mubr.f32.vlgmr.msra.gmra.mrb[76].mxu0 %v2610_v30  ;;  %v2606_v4 = vmul.f32 0.5, %v2601_v27 }
 0xabb   :  { %6240 = vmatprep.mubr.msk.f32.mxu0 %vm7299_vm0, %v7300_v6 }
 0xabc   :  { %v2611_v61 = vmul.f32 %v2606_v4, %v2552_v28 }
 0xabe   :  { %6241 = vmatmul.mubr.f32.gmra.mrb[78].mxu0 %v2611_v61 }
 0xabf   :  { %6243 = vmatprep.mubr.msk.f32.mxu0 %vm7299_vm0, %v7300_v6 }
 0xb29   :  { %v2556_v21 = vpop.f32.mrb[70].mxu0 }
 0xb2a   :  { %v2557_v34 = vadd.f32 %v2556_v21, %v2464_v63  ;;  %v6198_v18 = vpop.f32.mrb[71].mxu0 }
 0xb2c   :  { %v2572_v46 = vmul.f32 %v2557_v34, %v2557_v34 }
 0xb2d   :  { %v2561_v15 = vpop.f32.mrb[72].mxu0 }
 0xb2e   :  { %v2577_v47 = vmul.f32 %v2572_v46, %v2557_v34  ;;  %v2562_v39 = vadd.f32 %v2561_v15, %v2464_v63  ;;  %v6201_v53 = vpop.f32.mrb[73].mxu0 }
 0xb30   :  { %v2582_v8 = vmul.f32 0.044715, %v2577_v47  ;;  %v2573_v37 = vmul.f32 %v2562_v39, %v2562_v39 }
 0xb31   :  { %v2566_v23 = vpop.f32.mrb[74].mxu0 }
 0xb32   :  { %v2587_v5 = vadd.f32 %v2582_v8, %v2557_v34  ;;  %v2578_v52 = vmul.f32 %v2573_v37, %v2562_v39  ;;  %v2567_v60 = vadd.f32 %v2566_v23, %v2464_v63  ;;  %v6204_v57 = vpop.f32.mrb[75].mxu0 }
 0xb34   :  { %v2592_v50 = vmul.f32 0.7978846, %v2587_v5  ;;  %v2583_v19 = vmul.f32 0.044715, %v2578_v52  ;;  %v2574_v7 = vmul.f32 %v2567_v60, %v2567_v60 }
 0xb36   :  { %v2588_v51 = vadd.f32 %v2583_v19, %v2562_v39  ;;  %v2579_v2 = vmul.f32 %v2574_v7, %v2567_v60  ;;  %7138 = vtanh.f32 %v2592_v50  ;;  %v5445_v7 = vld [vmem:[%s9292_s3 + $0x20] sm:$0xff] }
 0xb38   :  { %v2593_v26 = vmul.f32 0.7978846, %v2588_v51  ;;  %v2584_v11 = vmul.f32 0.044715, %v2579_v2  ;;  %v5446_v51 = vld [vmem:[%s9292_s3 + $0x28] sm:$0xff] }
 0xb39   :  { %v6716_v2 = vpack.c.bf16 %v5446_v51, %v5445_v7 }
 0xb3a   :  { %v2589_v31 = vadd.f32 %v2584_v11, %v2567_v60  ;;  %7140 = vtanh.f32 %v2593_v26  ;;  %v5447_v26 = vld [vmem:[%s9292_s3 + $0x30] sm:$0xff]  ;;  %v5448_v11 = vld [vmem:[%s9292_s3 + $0x38] sm:$0xff]  ;;  %s5336_s3 = sshll.u32 %s7310_s24, 4  ;;  %s5337_s3 = int_to_ptr.vmem [resolvable:$true] %s5336_s3 }
 0xb3b   :  { %6717 = vmatpush3.bf16.msra.mxu1 %v6716_v2  ;;  %s7274_s1 = scalar_lea.vmem %s5337_s3, 32  ;;  %p7279_p1 = scmp.lt.s32.totalorder %s5337_s3, %s5337_s3 }
 0xb3c   :  { %v2594_v49 = vmul.f32 0.7978846, %v2589_v31  ;;  %6718 = vmatprep.subr.bf16.mxu1 %v7298_v3  ;;  %v6719_v31 = vpack.c.bf16 %v5448_v11, %v5447_v26  ;;  %p7275_p0 = scmp.ne.s32.totalorder %s5337_s3, %s7274_s1  ;;  %p7280_p2 = scmp.lt.s32.totalorder %s7274_s1, %s7274_s1 }
 0xb3e   :  { %7142 = vtanh.f32 %v2594_v49  ;;  %p7281_p3 = por %p7280_p2, %p7279_p1 }
 0xb3f   :  { %6720 = vmatpush3.bf16.msra.mxu1 %v6719_v31 }
 0xb40   :  { %v7139_v25 = vpop.eup %7138  ;;  %6721 = vmatprep.subr.bf16.mxu1 %v7298_v3  ;;  %p7282_p4 = pnand %p7281_p3, %p7275_p0 }
 0xb41   :  { %v2602_v14 = vadd.f32 1.0, %v7139_v25 }
 0xb43   :  { %v2607_v41 = vmul.f32 0.5, %v2602_v14 }
 0xb44   :  { %v7141_v1 = vpop.eup %7140 }
 0xb45   :  { %v2612_v48 = vmul.f32 %v2607_v41, %v2557_v34  ;;  %v2603_v55 = vadd.f32 1.0, %v7141_v1 }
 0xb47   :  { %6244 = vmatmul.mubr.f32.gmra.mrb[80].mxu0 %v2612_v48  ;;  %v2608_v63 = vmul.f32 0.5, %v2603_v55 }
 0xb48   :  { %v7143_v17 = vpop.eup %7142  ;;  %6246 = vmatprep.mubr.msk.f32.mxu0 %vm7299_vm0, %v7300_v6 }
 0xb49   :  { %v2613_v28 = vmul.f32 %v2608_v63, %v2562_v39  ;;  %v2604_v0 = vadd.f32 1.0, %v7143_v17 }
 0xb4b   :  { %6247 = vmatmul.mubr.f32.gmra.mrb[82].mxu0 %v2613_v28  ;;  %v2609_v9 = vmul.f32 0.5, %v2604_v0 }
 0xb4c   :  { %6249 = vmatprep.mubr.msk.f32.mxu0 %vm7299_vm0, %v7300_v6 }
 0xb4d   :  { %v2614_v22 = vmul.f32 %v2609_v9, %v2567_v60 }
 0xb4f   :  { %6250 = vmatmul.mubr.f32.gmra.mrb[84].mxu0 %v2614_v22 }
 0xb50   :  { %6304 = vmatprep.mubr.msk.f32.mxu0 %vm7299_vm0, %v7300_v6 }
 0xb8d   :  { %v2697_v42 = vpop.f32.mrb[76].mxu0 }
 0xb8e   :  { %v2721_v33 = vadd.f32 %v2697_v42, %v8171_v44  ;;  %v6239_v10 = vpop.f32.mrb[77].mxu0 }
 0xb90   :  { %v8374_v40 = vadd.f32 %v2729_v32, %v2721_v33 }
 0xb91   :  { %v2702_v13 = vpop.f32.mrb[78].mxu0 }
 0xb92   :  { %v2722_v38 = vadd.f32 %v2702_v13, %v8180_v20  ;;  %v6242_v62 = vpop.f32.mrb[79].mxu0  ;;  %v2737_v59 = vsel %vm156_vm2, %v8374_v40, 0.0 }
 0xb93   :  { %2738 = vadd.xlane.f32.xlu0 %v2737_v59 }
 0xb94   :  { %v8379_v30 = vadd.f32 %v2729_v32, %v2722_v38 }
 0xb96   :  { %v2740_v27 = vsel %vm156_vm2, %v8379_v30, 0.0 }
 0xb97   :  { %2741 = vadd.xlane.f32.xlu1 %v2740_v27  ;;  %v8425_v27 = vld [vmem:[%s9296_s7 + $0x8] sm:$0xff] }
 0xc1a   :  { %v2707_v43 = vpop.f32.mrb[80].mxu0 }
 0xc1b   :  { %v2723_v44 = vadd.f32 %v2707_v43, %v8200_v36  ;;  %v6245_v4 = vpop.f32.mrb[81].mxu0  ;;  %v9304_v43 = vsub.s32 0, %v7506_v24 }
 0xc1d   :  { %v8384_v61 = vadd.f32 %v2729_v32, %v2723_v44  ;;  %v2805_v44 = vrot.slane %v8425_v27, %v9304_v43 }
 0xc1e   :  { %v2712_v21 = vpop.f32.mrb[82].mxu0 }
 0xc1f   :  { %v2724_v20 = vadd.f32 %v2712_v21, %v8210_v35  ;;  %v6248_v34 = vpop.f32.mrb[83].mxu0  ;;  %v2743_v18 = vsel %vm156_vm2, %v8384_v61, 0.0 }
 0xc20   :  { %v2739_v46 = vpop.xlane.xlu0 %2738  ;;  %2744 = vadd.xlane.f32.xlu0 %v2743_v18 }
 0xc21   :  { %v8389_v15 = vadd.f32 %v2729_v32, %v2724_v20  ;;  %v2752_v47 = vmul.f32 0.03125, %v2739_v46  ;;  %v9305_v20 = vsub.s32 1, %v7506_v24 }
 0xc22   :  { %v2717_v39 = vpop.f32.mrb[84].mxu0 }
 0xc23   :  { %v2757_v53 = vsub.f32 %v8374_v40, %v2752_v47  ;;  %v2725_v36 = vadd.f32 %v2717_v39, %v8220_v45  ;;  %v6251_v8 = vpop.f32.mrb[85].mxu0  ;;  %v2746_v37 = vsel %vm156_vm2, %v8389_v15, 0.0  ;;  %v2814_v34 = vrot.slane %v8425_v27, %v9305_v20 }
 0xc24   :  { %v2742_v23 = vpop.xlane.xlu1 %2741  ;;  %2747 = vadd.xlane.f32.xlu1 %v2746_v37  ;;  %v5455_v37 = vld [vmem:[%s9293_s4 + $0x28] sm:$0xff] }
 0xc25   :  { %v8395_v35 = vadd.f32 %v2729_v32, %v2725_v36  ;;  %v2753_v5 = vmul.f32 0.03125, %v2742_v23  ;;  %v2762_v52 = vmul.f32 %v2757_v53, %v2757_v53 }
 0xc27   :  { %v2758_v60 = vsub.f32 %v8379_v30, %v2753_v5  ;;  %v2767_v57 = vsel %vm156_vm2, %v2762_v52, 0.0  ;;  %v2749_v50 = vsel %vm169_vm3, %v8395_v35, 0.0  ;;  %v5456_v5 = vld [vmem:[%s9293_s4 + $0x30] sm:$0xff]  ;;  %v5457_v52 = vld [vmem:[%s9293_s4 + $0x38] sm:$0xff] }
 0xc28   :  { %2768 = vadd.xlane.f32.xlu1 %v2767_v57  ;;  %2750 = vadd.xlane.f32.xlu0 %v2749_v50 }
 0xc29   :  { %v2763_v45 = vmul.f32 %v2758_v60, %v2758_v60 }
 0xc2b   :  { %v2770_v19 = vsel %vm156_vm2, %v2763_v45, 0.0 }
 0xc2c   :  { %2771 = vadd.xlane.f32.xlu0 %v2770_v19 }
 0xcad   :  { %v2745_v49 = vpop.xlane.xlu0 %2744 }
 0xcae   :  { %v2754_v25 = vmul.f32 0.03125, %v2745_v49 }
 0xcb0   :  { %v2759_v14 = vsub.f32 %v8384_v61, %v2754_v25 }
 0xcb1   :  { %v2748_v41 = vpop.xlane.xlu1 %2747 }
 0xcb2   :  { %v2755_v1 = vmul.f32 0.03125, %v2748_v41  ;;  %v2764_v48 = vmul.f32 %v2759_v14, %v2759_v14 }
 0xcb4   :  { %v2760_v55 = vsub.f32 %v8389_v15, %v2755_v1  ;;  %v2773_v63 = vsel %vm156_vm2, %v2764_v48, 0.0 }
 0xcb5   :  { %2774 = vadd.xlane.f32.xlu1 %v2773_v63  ;;  %v2769_v17 = vpop.xlane.xlu1 %2768  ;;  %v2751_v28 = vpop.xlane.xlu0 %2750 }
 0xcb6   :  { %v2782_v0 = vmul.f32 0.03125, %v2769_v17  ;;  %v2756_v9 = vmul.f32 0.03125, %v2751_v28  ;;  %v2765_v22 = vmul.f32 %v2760_v55, %v2760_v55 }
 0xcb8   :  { %v2787_v32 = vadd.f32 1e-06, %v2782_v0  ;;  %v2761_v42 = vsub.f32 %v8395_v35, %v2756_v9  ;;  %v2776_v33 = vsel %vm156_vm2, %v2765_v22, 0.0  ;;  %v9306_v22 = vsub.s32 4, %v7506_v24 }
 0xcb9   :  { %2777 = vadd.xlane.f32.xlu0 %v2776_v33  ;;  %v2772_v10 = vpop.xlane.xlu0 %2771 }
 0xcba   :  { %7144 = vrsqrt.f32 %v2787_v32  ;;  %v2783_v13 = vmul.f32 0.03125, %v2772_v10  ;;  %v2766_v38 = vmul.f32 %v2761_v42, %v2761_v42  ;;  %v2828_v32 = vrot.slane %v8425_v27, %v9306_v22 }
 0xcbc   :  { %v2788_v62 = vadd.f32 1e-06, %v2783_v13  ;;  %v2779_v59 = vsel %vm169_vm3, %v2766_v38, 0.0 }
 0xcbd   :  { %2780 = vadd.xlane.f32.xlu1 %v2779_v59 }
 0xcbe   :  { %7146 = vrsqrt.f32 %v2788_v62 }
 0xcc4   :  { %v7145_v4 = vpop.eup %7144 }
 0xcc5   :  { %v2797_v21 = vmul.f32 %v7145_v4, %v2757_v53  ;;  %v5454_v53 = vld [vmem:[%s9293_s4 + $0x20] sm:$0xff] }
 0xcc6   :  { %v6722_v23 = vpack.c.bf16 %v5455_v37, %v5454_v53 }
 0xcc7   :  { %v2806_v18 = vmul.f32 %v2805_v44, %v2797_v21 }
 0xcc8   :  { %v7147_v46 = vpop.eup %7146 }
 0xcc9   :  { %v2815_v47 = vadd.f32 %v2814_v34, %v2806_v18  ;;  %v2798_v39 = vmul.f32 %v7147_v46, %v2758_v60  ;;  %v6725_v60 = vpack.c.bf16 %v5457_v52, %v5456_v5 }
 0xccb   :  { %6261 = vmatmul.mubr.msk.f32.vlgmr.msra.gmra.mrb[36].mxu1 %vm156_vm2, %v2815_v47  ;;  %v2807_v36 = vmul.f32 %v2805_v44, %v2798_v39 }
 0xccc   :  { %6263 = vmatprep.mubr.msk.f32.mxu1 %vm7299_vm0, %v7300_v6  ;;  %6723 = vmatpush3.bf16.msra.mxu1 %v6722_v23 }
 0xccd   :  { %v2816_v8 = vadd.f32 %v2814_v34, %v2807_v36  ;;  %6724 = vmatprep.subr.bf16.mxu1 %v7298_v3 }
 0xccf   :  { %6264 = vmatmul.mubr.msk.f32.gmra.mrb[38].mxu1 %vm156_vm2, %v2816_v8 }
 0xcd0   :  { %6266 = vmatprep.mubr.msk.f32.mxu1 %vm7299_vm0, %v7300_v6  ;;  %6726 = vmatpush3.bf16.msra.mxu1 %v6725_v60 }
 0xcd1   :  { %6731 = vmatprep.subr.bf16.mxu1 %v7298_v3 }
 0xd42   :  { %v2775_v57 = vpop.xlane.xlu1 %2774 }
 0xd43   :  { %v2784_v50 = vmul.f32 0.03125, %v2775_v57 }
 0xd45   :  { %v2789_v45 = vadd.f32 1e-06, %v2784_v50 }
 0xd46   :  { %v2778_v19 = vpop.xlane.xlu0 %2777 }
 0xd47   :  { %7148 = vrsqrt.f32 %v2789_v45  ;;  %v2785_v7 = vmul.f32 0.03125, %v2778_v19 }
 0xd49   :  { %v2790_v51 = vadd.f32 1e-06, %v2785_v7 }
 0xd4a   :  { %v2781_v2 = vpop.xlane.xlu1 %2780 }
 0xd4b   :  { %7150 = vrsqrt.f32 %v2790_v51  ;;  %v2786_v26 = vmul.f32 0.03125, %v2781_v2 }
 0xd4d   :  { %v2791_v11 = vadd.f32 1e-06, %v2786_v26 }
 0xd4f   :  { %7152 = vrsqrt.f32 %v2791_v11 }
 0xd51   :  { %v7149_v31 = vpop.eup %7148 }
 0xd52   :  { %v2799_v49 = vmul.f32 %v7149_v31, %v2759_v14 }
 0xd54   :  { %v2808_v25 = vmul.f32 %v2805_v44, %v2799_v49 }
 0xd55   :  { %v7151_v41 = vpop.eup %7150 }
 0xd56   :  { %v2817_v1 = vadd.f32 %v2814_v34, %v2808_v25  ;;  %v2800_v48 = vmul.f32 %v7151_v41, %v2760_v55 }
 0xd58   :  { %6267 = vmatmul.mubr.msk.f32.gmra.mrb[40].mxu1 %vm156_vm2, %v2817_v1  ;;  %v2809_v63 = vmul.f32 %v2805_v44, %v2800_v48 }
 0xd59   :  { %v7153_v17 = vpop.eup %7152  ;;  %6269 = vmatprep.mubr.msk.f32.mxu1 %vm7299_vm0, %v7300_v6 }
 0xd5a   :  { %v2818_v28 = vadd.f32 %v2814_v34, %v2809_v63  ;;  %v2801_v0 = vmul.f32 %v7153_v17, %v2761_v42 }
 0xd5c   :  { %6270 = vmatmul.mubr.msk.f32.gmra.mrb[42].mxu1 %vm156_vm2, %v2818_v28  ;;  %v2810_v9 = vmul.f32 %v2805_v44, %v2801_v0 }
 0xd5d   :  { %6272 = vmatprep.mubr.msk.f32.mxu1 %vm7299_vm0, %v7300_v6 }
 0xd5e   :  { %v2819_v14 = vadd.f32 %v2814_v34, %v2810_v9 }
 0xd60   :  { %6273 = vmatmul.mubr.msk.f32.gmra.mrb[44].mxu1 %vm156_vm2, %v2819_v14 }
 0xd61   :  { %6283 = vmatprep.mubr.msk.f32.mxu1 %vm7299_vm0, %v7300_v6 }
 0xd64   :  { %6284 = vmatmul.mubr.msk.f32.vlgmr.msra.gmra.mrb[46].mxu1 %vm156_vm2, %v2815_v47 }
 0xd65   :  { %6286 = vmatprep.mubr.msk.f32.mxu1 %vm7299_vm0, %v7300_v6 }
 0xd68   :  { %6287 = vmatmul.mubr.msk.f32.gmra.mrb[48].mxu1 %vm156_vm2, %v2816_v8 }
 0xd69   :  { %6289 = vmatprep.mubr.msk.f32.mxu1 %vm7299_vm0, %v7300_v6 }
 0xd6c   :  { %6290 = vmatmul.mubr.msk.f32.gmra.mrb[50].mxu1 %vm156_vm2, %v2817_v1 }
 0xd6d   :  { %6292 = vmatprep.mubr.msk.f32.mxu1 %vm7299_vm0, %v7300_v6 }
 0xd70   :  { %6293 = vmatmul.mubr.msk.f32.gmra.mrb[52].mxu1 %vm156_vm2, %v2818_v28 }
 0xd71   :  { %6295 = vmatprep.mubr.msk.f32.mxu1 %vm7299_vm0, %v7300_v6 }
 0xd74   :  { %6296 = vmatmul.mubr.msk.f32.gmra.mrb[54].mxu1 %vm156_vm2, %v2819_v14 }
 0xd75   :  { %6319 = vmatprep.mubr.msk.f32.mxu1 %vm7299_vm0, %v7300_v6 }
 0xd9e   :  { %v2910_v55 = vpop.f32.mrb[36].mxu1 }
 0xd9f   :  { %v6262_v42 = vpop.f32.mrb[37].mxu1  ;;  %v8480_v10 = vadd.f32 %v2910_v55, %v2828_v32 }
 0xda2   :  { %v2915_v33 = vpop.f32.mrb[38].mxu1 }
 0xda3   :  { %v8482_v13 = vadd.f32 %v2915_v33, %v2828_v32  ;;  %v6265_v38 = vpop.f32.mrb[39].mxu1 }
 0xda5   :  { %v6953_v62 = vpack.i.bf16 %v8482_v13, %v8480_v10 }
 0xda7   :  { %6954 = vrot.lane.b32.xlu1 %v6953_v62, %s7301_s0  ;;  %6949 = vrot.lane.b32.xlu0 %v6953_v62, %s7303_s14 }
 0xdab   :  { %3163 = vrot.lane.b32.xlu0 %v8480_v10, %s7304_s15 }
 0xe19   :  { %v6955_v59 = vpop.permute.xlu1 %6954  ;;  %v6950_v43 = vpop.permute.xlu0 %6949 }
 0xe1a   :  { %v6957_v27 = vunpack.i.h.bf16 %v6955_v59  ;;  %v6956_v44 = vunpack.i.l.bf16 %v6955_v59  ;;  %v6952_v4 = vunpack.i.h.bf16 %v6950_v43  ;;  %v6951_v21 = vunpack.i.l.bf16 %v6950_v43 }
 0xe1c   :  { %v6728_v20 = vpack.c.bf16 %v6957_v27, %v6956_v44  ;;  %v6732_v34 = vpack.c.bf16 %v6952_v4, %v6951_v21 }
 0xe1d   :  { %v3164_v22 = vpop.permute.xlu0 %3163 }
 0xe1e   :  { %6730 = vmatpush3.bf16.xpose.msk.msra.mxu0 %vm7669_vm6, %v6728_v20  ;;  %6734 = vmatpush3.bf16.xpose.msk.msra.mxu1 %vm7669_vm6, %v6732_v34 }
 0xe1f   :  { %6317 = vmatprep.subr.mxu1 %v7300_v6  ;;  %6302 = vmatprep.subr.mxu0 %v7300_v6 }
 0xe2b   :  { %v2920_v18 = vpop.f32.mrb[40].mxu1 }
 0xe2c   :  { %v8496_v46 = vadd.f32 %v2920_v18, %v2828_v32  ;;  %v6268_v47 = vpop.f32.mrb[41].mxu1 }
 0xe2e   :  { %3167 = vrot.lane.b32.xlu0 %v8496_v46, %s7304_s15  ;;  %3173 = vrot.lane.b32.xlu1 %v8496_v46, %s7303_s14  ;;  %v3973_v57 = vrot.slane %v8496_v46, 1 }
 0xe2f   :  { %v2925_v39 = vpop.f32.mrb[42].mxu1 }
 0xe30   :  { %v6271_v36 = vpop.f32.mrb[43].mxu1  ;;  %v2926_v8 = vadd.f32 %v2925_v39, %v2828_v32 }
 0xe32   :  { %3503 = vrot.lane.b32.xlu0 %v8496_v46, %s7302_s13  ;;  %6959 = vrot.lane.b32.xlu1 %v6953_v62, %s7302_s13  ;;  %v3974_v5 = vrot.slane %v2926_v8, 1 }
 0xe33   :  { %v2930_v53 = vpop.f32.mrb[44].mxu1 }
 0xe34   :  { %v2931_v37 = vadd.f32 %v2930_v53, %v2828_v32  ;;  %v6274_v23 = vpop.f32.mrb[45].mxu1  ;;  %v8519_v19 = vsel %vm1397_vm4, %v3973_v57, %v3974_v5 }
 0xe36   :  { %v8505_v52 = vrot.slane %v2931_v37, 1  ;;  %3493 = vrot.lane.b32.xlu0 %v8480_v10, %s7305_s16  ;;  %3165 = vrot.lane.b32.xlu1 %v8482_v13, %s7304_s15 }
 0xe37   :  { %v8511_v60 = vpop.f32.mrb[46].mxu1 }
 0xe38   :  { %v6285_v50 = vpop.f32.mrb[47].mxu1  ;;  %v8516_v45 = vsel %vm1397_vm4, %v3974_v5, %v8505_v52 }
 0xe39   :  { %v6968_v51 = vpack.i.bf16 %v8516_v45, %v8519_v19 }
 0xe3a   :  { %3497 = vrot.lane.b32.xlu0 %v8496_v46, %s7305_s16  ;;  %3036 = vrot.lane.b32.xlu1 %v8496_v46, %s7301_s0 }
 0xe3b   :  { %v8525_v7 = vpop.f32.mrb[48].mxu1 }
 0xe3c   :  { %v6998_v2 = vpack.i.bf16 %v8525_v7, %v8511_v60  ;;  %v6739_v26 = vpack.c.bf16 %v8525_v7, %v8511_v60  ;;  %v6288_v11 = vpop.f32.mrb[49].mxu1 }
 0xe3e   :  { %6964 = vrot.lane.b32.xlu1 %v6953_v62, %s7306_s17  ;;  %6969 = vrot.lane.b32.xlu0 %v6968_v51, %s7301_s0 }
 0xe3f   :  { %v8535_v31 = vpop.f32.mrb[50].mxu1 }
 0xe40   :  { %v6291_v49 = vpop.f32.mrb[51].mxu1  ;;  %v4248_v41 = vrot.slane %v8535_v31, 1 }
 0xe42   :  { %3495 = vrot.lane.b32.xlu1 %v8482_v13, %s7305_s16  ;;  %3734 = vrot.lane.b32.xlu0 %v8482_v13, %s7307_s2 }
 0xe43   :  { %v3020_v25 = vpop.f32.mrb[52].mxu1 }
 0xe44   :  { %v4249_v1 = vrot.slane %v3020_v25, 1  ;;  %v6294_v48 = vpop.f32.mrb[53].mxu1 }
 0xe46   :  { %v8543_v63 = vsel %vm1397_vm4, %v4248_v41, %v4249_v1  ;;  %3742 = vrot.lane.b32.xlu1 %v8496_v46, %s7306_s17  ;;  %3982 = vrot.lane.b32.xlu0 %v8505_v52, %s7301_s0 }
 0xe47   :  { %v3025_v17 = vpop.f32.mrb[54].mxu1 }
 0xe48   :  { %v8549_v28 = vrot.slane %v3025_v17, 1  ;;  %v6297_v0 = vpop.f32.mrb[55].mxu1 }
 0xe4a   :  { %3732 = vrot.lane.b32.xlu1 %v8480_v10, %s7307_s2  ;;  %4119 = vrot.lane.b32.xlu0 %v8505_v52, %s7303_s14  ;;  %v8557_v9 = vsel %vm1397_vm4, %v4249_v1, %v8549_v28 }
 0xe4b   :  { %v8561_v14 = vpack.i.bf16 %v8557_v9, %v8543_v63  ;;  %v6767_v55 = vpack.c.bf16 %v8557_v9, %v8543_v63 }
 0xe4e   :  { %3736 = vrot.lane.b32.xlu1 %v8496_v46, %s7307_s2  ;;  %4111 = vrot.lane.b32.xlu0 %v8516_v45, %s7304_s15 }
 0xe52   :  { %6974 = vrot.lane.b32.xlu1 %v6968_v51, %s7303_s14  ;;  %6979 = vrot.lane.b32.xlu0 %v6968_v51, %s7302_s13 }
 0xe56   :  { %4109 = vrot.lane.b32.xlu1 %v8519_v19, %s7304_s15  ;;  %6984 = vrot.lane.b32.xlu0 %v6968_v51, %s7306_s17 }
 0xe5a   :  { %4113 = vrot.lane.b32.xlu1 %v8505_v52, %s7304_s15  ;;  %4447 = vrot.lane.b32.xlu0 %v8516_v45, %s7305_s16 }
 0xe5e   :  { %4455 = vrot.lane.b32.xlu1 %v8505_v52, %s7302_s13  ;;  %4694 = vrot.lane.b32.xlu0 %v8505_v52, %s7306_s17 }
 0xe62   :  { %4445 = vrot.lane.b32.xlu1 %v8519_v19, %s7305_s16  ;;  %4686 = vrot.lane.b32.xlu0 %v8516_v45, %s7307_s2 }
 0xe66   :  { %4449 = vrot.lane.b32.xlu1 %v8505_v52, %s7305_s16  ;;  %6989 = vrot.lane.b32.xlu0 %v6998_v2, %s7301_s0 }
 0xe6a   :  { %4684 = vrot.lane.b32.xlu1 %v8519_v19, %s7307_s2  ;;  %6999 = vrot.lane.b32.xlu0 %v6998_v2, %s7309_s19 }
 0xe6e   :  { %4688 = vrot.lane.b32.xlu1 %v8505_v52, %s7307_s2  ;;  %3634 = vrot.lane.b32.xlu0 %v8535_v31, %s7308_s18 }
 0xe72   :  { %6994 = vrot.lane.b32.xlu1 %v6998_v2, %s7308_s18 }
 0xe76   :  { %3307 = vrot.lane.b32.xlu1 %v8535_v31, %s7301_s0 }
 0xe7a   :  { %3873 = vrot.lane.b32.xlu1 %v8535_v31, %s7309_s19 }
 0xea0   :  { %v3174_v32 = vpop.permute.xlu1 %3173  ;;  %v3168_v42 = vpop.permute.xlu0 %3167 }
 0xea1   :  { %6318 = vmatpush3.xpose.msk.msra.mxu1 %vm458_vm5, %v3174_v32 }
 0xea2   :  { %6741 = vmatprep.subr.bf16.mxu1 %v7298_v3 }
 0xea4   :  { %v6960_v33 = vpop.permute.xlu1 %6959  ;;  %v3504_v38 = vpop.permute.xlu0 %3503  ;;  %6320 = vmatmul.mubr.msk.f32.vlgmr.msra.gmra.mrb[56].mxu1 %vm458_vm5, %v3164_v22 }
 0xea5   :  { %v6962_v62 = vunpack.i.h.bf16 %v6960_v33  ;;  %v6961_v59 = vunpack.i.l.bf16 %v6960_v33  ;;  %6322 = vmatprep.mubr.msk.f32.mxu1 %vm7299_vm0, %v7300_v6 }
 0xea7   :  { %v6742_v43 = vpack.c.bf16 %v6962_v62, %v6961_v59 }
 0xea8   :  { %v3166_v27 = vpop.permute.xlu1 %3165  ;;  %v3494_v44 = vpop.permute.xlu0 %3493 }
 0xea9   :  { %6323 = vmatmul.mubr.msk.f32.gmra.mrb[58].mxu1 %vm458_vm5, %v3166_v27 }
 0xeaa   :  { %6744 = vmatpush3.bf16.xpose.msk.msra.mxu1 %vm7669_vm6, %v6742_v43  ;;  %6325 = vmatprep.mubr.msk.f32.mxu1 %vm7299_vm0, %v7300_v6 }
 0xeab   :  { %6362 = vmatprep.subr.mxu1 %v7300_v6 }
 0xeac   :  { %v3037_v4 = vpop.permute.xlu1 %3036  ;;  %v3498_v21 = vpop.permute.xlu0 %3497 }
 0xead   :  { %6303 = vmatpush3.xpose.msk.msra.mxu0 %vm458_vm5, %v3037_v4  ;;  %6326 = vmatmul.mubr.msk.f32.gmra.mrb[60].mxu1 %vm458_vm5, %v3168_v42 }
 0xeae   :  { %6364 = vmatprep.mubr.msk.f32.mxu1 %vm7299_vm0, %v7300_v6  ;;  %6735 = vmatprep.subr.bf16.mxu0 %v7298_v3 }
 0xeb0   :  { %6305 = vmatmul.mubr.msk.f32.vlgmr.msra.gmra.mrb[86].mxu0 %vm458_vm5, %v8480_v10  ;;  %v6965_v20 = vpop.permute.xlu1 %6964  ;;  %v6970_v34 = vpop.permute.xlu0 %6969 }
 0xeb1   :  { %v6967_v18 = vunpack.i.h.bf16 %v6965_v20  ;;  %v6966_v47 = vunpack.i.l.bf16 %v6965_v20  ;;  %6307 = vmatprep.mubr.msk.f32.mxu0 %vm7299_vm0, %v7300_v6  ;;  %v6972_v53 = vunpack.i.h.bf16 %v6970_v34  ;;  %v6971_v37 = vunpack.i.l.bf16 %v6970_v34 }
 0xeb2   :  { %6363 = vmatpush3.xpose.msk.msra.mxu1 %vm458_vm5, %v3504_v38 }
 0xeb3   :  { %v6749_v39 = vpack.c.bf16 %v6967_v18, %v6966_v47  ;;  %6748 = vmatprep.subr.bf16.mxu1 %v7298_v3 }
 0xeb4   :  { %6308 = vmatmul.mubr.msk.f32.gmra.mrb[88].mxu0 %vm458_vm5, %v8482_v13  ;;  %v3496_v36 = vpop.permute.xlu1 %3495  ;;  %v3735_v8 = vpop.permute.xlu0 %3734 }
 0xeb5   :  { %6365 = vmatmul.mubr.msk.f32.vlgmr.msra.gmra.mrb[62].mxu1 %vm458_vm5, %v3494_v44  ;;  %6310 = vmatprep.mubr.msk.f32.mxu0 %vm7299_vm0, %v7300_v6 }
 0xeb6   :  { %6751 = vmatpush3.bf16.xpose.msk.msra.mxu1 %vm7669_vm6, %v6749_v39  ;;  %6367 = vmatprep.mubr.msk.f32.mxu1 %vm7299_vm0, %v7300_v6 }
 0xeb7   :  { %6392 = vmatprep.subr.mxu1 %v7300_v6 }
 0xeb8   :  { %6311 = vmatmul.mubr.msk.f32.gmra.mrb[90].mxu0 %vm458_vm5, %v8496_v46  ;;  %v3743_v10 = vpop.permute.xlu1 %3742  ;;  %v3983_v13 = vpop.permute.xlu0 %3982  ;;  %v6756_v46 = vpack.c.bf16 %v6972_v53, %v6971_v37 }
 0xeb9   :  { %6368 = vmatmul.mubr.msk.f32.gmra.mrb[64].mxu1 %vm458_vm5, %v3496_v36  ;;  %6334 = vmatprep.mubr.msk.f32.mxu0 %vm7299_vm0, %v7300_v6 }
 0xeba   :  { %6370 = vmatprep.mubr.msk.f32.mxu1 %vm7299_vm0, %v7300_v6 }
 0xebc   :  { %v3733_v23 = vpop.permute.xlu1 %3732  ;;  %v4120_v5 = vpop.permute.xlu0 %4119 }
 0xebd   :  { %6371 = vmatmul.mubr.msk.f32.gmra.mrb[66].mxu1 %vm458_vm5, %v3498_v21 }
 0xebe   :  { %6393 = vmatpush3.xpose.msk.msra.mxu1 %vm458_vm5, %v3743_v10  ;;  %6394 = vmatprep.mubr.msk.f32.mxu1 %vm7299_vm0, %v7300_v6 }
 0xebf   :  { %6755 = vmatprep.subr.bf16.mxu1 %v7298_v3 }
 0xec0   :  { %v3737_v57 = vpop.permute.xlu1 %3736  ;;  %v4112_v50 = vpop.permute.xlu0 %4111 }
 0xec1   :  { %6395 = vmatmul.mubr.msk.f32.vlgmr.msra.gmra.mrb[68].mxu1 %vm458_vm5, %v3733_v23 }
 0xec2   :  { %6758 = vmatpush3.bf16.xpose.msk.msra.mxu1 %vm7669_vm6, %v6756_v46  ;;  %6397 = vmatprep.mubr.msk.f32.mxu1 %vm7299_vm0, %v7300_v6 }
 0xec3   :  { %6422 = vmatprep.subr.mxu1 %v7300_v6 }
 0xec4   :  { %v6975_v51 = vpop.permute.xlu1 %6974  ;;  %v6980_v2 = vpop.permute.xlu0 %6979 }
 0xec5   :  { %6398 = vmatmul.mubr.msk.f32.gmra.mrb[70].mxu1 %vm458_vm5, %v3735_v8  ;;  %v6977_v11 = vunpack.i.h.bf16 %v6975_v51  ;;  %v6976_v49 = vunpack.i.l.bf16 %v6975_v51  ;;  %v6982_v32 = vunpack.i.h.bf16 %v6980_v2  ;;  %v6981_v42 = vunpack.i.l.bf16 %v6980_v2 }
 0xec6   :  { %6400 = vmatprep.mubr.msk.f32.mxu1 %vm7299_vm0, %v7300_v6 }
 0xec7   :  { %v6760_v1 = vpack.c.bf16 %v6977_v11, %v6976_v49  ;;  %v6770_v38 = vpack.c.bf16 %v6982_v32, %v6981_v42 }
 0xec8   :  { %v4110_v25 = vpop.permute.xlu1 %4109  ;;  %v6985_v41 = vpop.permute.xlu0 %6984 }
 0xec9   :  { %6401 = vmatmul.mubr.msk.f32.gmra.mrb[72].mxu1 %vm458_vm5, %v3737_v57  ;;  %v6987_v44 = vunpack.i.h.bf16 %v6985_v41  ;;  %v6986_v4 = vunpack.i.l.bf16 %v6985_v41 }
 0xeca   :  { %6423 = vmatpush3.xpose.msk.msra.mxu1 %vm458_vm5, %v3983_v13  ;;  %6424 = vmatprep.mubr.msk.f32.mxu1 %vm7299_vm0, %v7300_v6 }
 0xecb   :  { %6759 = vmatprep.subr.bf16.mxu1 %v7298_v3  ;;  %v6777_v20 = vpack.c.bf16 %v6987_v44, %v6986_v4 }
 0xecc   :  { %v4114_v48 = vpop.permute.xlu1 %4113  ;;  %v4448_v17 = vpop.permute.xlu0 %4447 }
 0xecd   :  { %6425 = vmatmul.mubr.msk.f32.vlgmr.msra.gmra.mrb[74].mxu1 %vm458_vm5, %v8519_v19 }
 0xece   :  { %6762 = vmatpush3.bf16.xpose.msk.msra.mxu1 %vm7669_vm6, %v6760_v1  ;;  %6427 = vmatprep.mubr.msk.f32.mxu1 %vm7299_vm0, %v7300_v6 }
 0xecf   :  { %6437 = vmatprep.subr.mxu1 %v7300_v6 }
 0xed0   :  { %v4456_v0 = vpop.permute.xlu1 %4455  ;;  %v4695_v22 = vpop.permute.xlu0 %4694 }
 0xed1   :  { %6428 = vmatmul.mubr.msk.f32.gmra.mrb[76].mxu1 %vm458_vm5, %v8516_v45 }
 0xed2   :  { %6430 = vmatprep.mubr.msk.f32.mxu1 %vm7299_vm0, %v7300_v6 }
 0xed4   :  { %v4446_v33 = vpop.permute.xlu1 %4445  ;;  %v4687_v19 = vpop.permute.xlu0 %4686 }
 0xed5   :  { %6431 = vmatmul.mubr.msk.f32.gmra.mrb[78].mxu1 %vm458_vm5, %v8505_v52 }
 0xed6   :  { %6438 = vmatpush3.xpose.msk.msra.mxu1 %vm458_vm5, %v4120_v5  ;;  %6439 = vmatprep.mubr.msk.f32.mxu1 %vm7299_vm0, %v7300_v6 }
 0xed7   :  { %6769 = vmatprep.subr.bf16.mxu1 %v7298_v3 }
 0xed8   :  { %v4450_v62 = vpop.permute.xlu1 %4449  ;;  %v6990_v45 = vpop.permute.xlu0 %6989 }
 0xed9   :  { %v6992_v59 = vunpack.i.h.bf16 %v6990_v45  ;;  %v6991_v43 = vunpack.i.l.bf16 %v6990_v45  ;;  %6440 = vmatmul.mubr.msk.f32.vlgmr.msra.gmra.mrb[80].mxu1 %vm458_vm5, %v4110_v25 }
 0xeda   :  { %6772 = vmatpush3.bf16.xpose.msk.msra.mxu1 %vm7669_vm6, %v6770_v38  ;;  %6442 = vmatprep.mubr.msk.f32.mxu1 %vm7299_vm0, %v7300_v6 }
 0xedb   :  { %v6736_v52 = vpack.c.bf16 %v6992_v59, %v6991_v43  ;;  %6482 = vmatprep.subr.mxu1 %v7300_v6 }
 0xedc   :  { %v4685_v27 = vpop.permute.xlu1 %4684 }
 0xedd   :  { %6443 = vmatmul.mubr.msk.f32.gmra.mrb[82].mxu1 %vm458_vm5, %v4112_v50  ;;  %6737 = vmatpush3.bf16.msra.mxu0 %v6736_v52 }
 0xede   :  { %6445 = vmatprep.mubr.msk.f32.mxu1 %vm7299_vm0, %v7300_v6  ;;  %6332 = vmatprep.subr.mxu0 %v7300_v6 }
 0xee0   :  { %v4689_v21 = vpop.permute.xlu1 %4688 }
 0xee1   :  { %6446 = vmatmul.mubr.msk.f32.gmra.mrb[84].mxu1 %vm458_vm5, %v4114_v48 }
 0xee2   :  { %6483 = vmatpush3.xpose.msk.msra.mxu1 %vm458_vm5, %v4456_v0  ;;  %6484 = vmatprep.mubr.msk.f32.mxu1 %vm7299_vm0, %v7300_v6 }
 0xee3   :  { %6776 = vmatprep.subr.bf16.mxu1 %v7298_v3 }
 0xee4   :  { %v8691_v34 = vpop.permute.xlu1 %6994 }
 0xee5   :  { %6485 = vmatmul.mubr.msk.f32.vlgmr.msra.gmra.mrb[86].mxu1 %vm458_vm5, %v4446_v33 }
 0xee6   :  { %6779 = vmatpush3.bf16.xpose.msk.msra.mxu1 %vm7669_vm6, %v6777_v20  ;;  %6487 = vmatprep.mubr.msk.f32.mxu1 %vm7299_vm0, %v7300_v6 }
 0xee7   :  { %6512 = vmatprep.subr.mxu1 %v7300_v6 }
 0xee8   :  { %v3308_v18 = vpop.permute.xlu1 %3307 }
 0xee9   :  { %6488 = vmatmul.mubr.msk.f32.gmra.mrb[88].mxu1 %vm458_vm5, %v4448_v17  ;;  %6333 = vmatpush3.msk.msra.mxu0 %vm743_vm7, %v3308_v18 }
 0xeea   :  { %6490 = vmatprep.mubr.msk.f32.mxu1 %vm7299_vm0, %v7300_v6  ;;  %6738 = vmatprep.subr.bf16.mxu0 %v7298_v3 }
 0xeed   :  { %6491 = vmatmul.mubr.msk.f32.gmra.mrb[90].mxu1 %vm458_vm5, %v4450_v62 }
 0xeee   :  { %6513 = vmatpush3.xpose.msk.msra.mxu1 %vm458_vm5, %v4695_v22  ;;  %6514 = vmatprep.mubr.msk.f32.mxu1 %vm7299_vm0, %v7300_v6 }
 0xeef   :  { %6783 = vmatprep.subr.bf16.mxu1 %v7298_v3 }
 0xef1   :  { %6515 = vmatmul.mubr.msk.f32.vlgmr.msra.gmra.mrb[92].mxu1 %vm458_vm5, %v4685_v27 }
 0xef2   :  { %6517 = vmatprep.mubr.msk.f32.mxu1 %vm7299_vm0, %v7300_v6 }
 0xef5   :  { %6518 = vmatmul.mubr.msk.f32.gmra.mrb[94].mxu1 %vm458_vm5, %v4687_v19 }
 0xef6   :  { %6520 = vmatprep.mubr.msk.f32.mxu1 %vm7299_vm0, %v7300_v6 }
 0xef9   :  { %6521 = vmatmul.mubr.msk.f32.gmra.mrb[96].mxu1 %vm458_vm5, %v4689_v21 }
 0xefa   :  { %6546 = vmatprep.mubr.msk.f32.mxu1 %vm7299_vm0, %v7300_v6 }
 0xf77   :  { %v8718_v58 = vpop.f32.mrb[56].mxu1 }
 0xf78   :  { %v6321_v47 = vpop.f32.mrb[57].mxu1  ;;  %v3267_v39 = vsel %vm551_vm8, %v8718_v58, -inf }
 0xf79   :  { %3268 = vmax.xlane.f32.xlu0 %v3267_v39 }
 0xf7c   :  { %v8722_v36 = vpop.f32.mrb[58].mxu1 }
 0xf7d   :  { %v6324_v8 = vpop.f32.mrb[59].mxu1  ;;  %v3270_v10 = vsel %vm551_vm8, %v8722_v36, -inf }
 0xf7e   :  { %3271 = vmax.xlane.f32.xlu1 %v3270_v10 }
 0xf80   :  { %v8726_v13 = vpop.f32.mrb[60].mxu1 }
 0xf81   :  { %v6327_v53 = vpop.f32.mrb[61].mxu1  ;;  %v3273_v41 = vsel %vm558_vm9, %v8726_v13, -inf }
 0xf83   :  { %v8728_v37 = vpop.f32.mrb[86].mxu0 }
 0xf84   :  { %v6306_v23 = vpop.f32.mrb[87].mxu0  ;;  %v3130_v5 = vsel %vm551_vm8, %v8728_v37, -inf }
 0xf85   :  { %3131 = vmax.xlane.f32.xlu0 %v3130_v5 }
 0xf87   :  { %v8732_v46 = vpop.f32.mrb[88].mxu0 }
 0xf88   :  { %v8734_v57 = vpop.f32.mrb[62].mxu1  ;;  %v6309_v50 = vpop.f32.mrb[89].mxu0  ;;  %v3133_v51 = vsel %vm551_vm8, %v8732_v46, -inf }
 0xf89   :  { %v6366_v2 = vpop.f32.mrb[63].mxu1  ;;  %3134 = vmax.xlane.f32.xlu0 %v3133_v51  ;;  %v3597_v0 = vsel %vm551_vm8, %v8734_v57, -inf }
 0xf8b   :  { %v8738_v11 = vpop.f32.mrb[90].mxu0 }
 0xf8c   :  { %v8740_v49 = vpop.f32.mrb[64].mxu1  ;;  %v6312_v25 = vpop.f32.mrb[91].mxu0  ;;  %v3136_v1 = vsel %vm558_vm9, %v8738_v11, -inf }
 0xf8d   :  { %v6369_v48 = vpop.f32.mrb[65].mxu1  ;;  %3274 = vmax.xlane.f32.xlu0 %v3273_v41  ;;  %3137 = vmax.xlane.f32.xlu1 %v3136_v1  ;;  %v3600_v22 = vsel %vm551_vm8, %v8740_v49, -inf }
 0xf90   :  { %v8746_v17 = vpop.f32.mrb[66].mxu1 }
 0xf91   :  { %v6372_v32 = vpop.f32.mrb[67].mxu1  ;;  %3598 = vmax.xlane.f32.xlu0 %v3597_v0  ;;  %3601 = vmax.xlane.f32.xlu1 %v3600_v22  ;;  %v3603_v33 = vsel %vm558_vm9, %v8746_v17, -inf }
 0xf94   :  { %v8752_v42 = vpop.f32.mrb[68].mxu1 }
 0xf95   :  { %v6396_v19 = vpop.f32.mrb[69].mxu1  ;;  %3604 = vmax.xlane.f32.xlu0 %v3603_v33  ;;  %v3836_v38 = vsel %vm551_vm8, %v8752_v42, -inf }
 0xf96   :  { %3837 = vmax.xlane.f32.xlu1 %v3836_v38  ;;  %v8790_v38 = vpop.permute.xlu0 %6999 }
 0xf98   :  { %v8758_v62 = vpop.f32.mrb[70].mxu1 }
 0xf99   :  { %v6399_v45 = vpop.f32.mrb[71].mxu1  ;;  %v3839_v59 = vsel %vm551_vm8, %v8758_v62, -inf }
 0xf9a   :  { %3840 = vmax.xlane.f32.xlu0 %v3839_v59  ;;  %v8792_v45 = vpop.permute.xlu0 %3634 }
 0xf9c   :  { %v8762_v43 = vpop.f32.mrb[72].mxu1 }
 0xf9d   :  { %v6402_v52 = vpop.f32.mrb[73].mxu1  ;;  %v3842_v27 = vsel %vm558_vm9, %v8762_v43, -inf }
 0xf9e   :  { %3843 = vmax.xlane.f32.xlu1 %v3842_v27 }
 0xfa0   :  { %v8766_v44 = vpop.f32.mrb[74].mxu1 }
 0xfa1   :  { %v6426_v4 = vpop.f32.mrb[75].mxu1 }
 0xfa2   :  { %v8795_v4 = vpop.permute.xlu1 %3873 }
 0xfa4   :  { %v8768_v21 = vpop.f32.mrb[76].mxu1 }
 0xfa5   :  { %v6429_v20 = vpop.f32.mrb[77].mxu1 }
 0xfa8   :  { %v8770_v18 = vpop.f32.mrb[78].mxu1 }
 0xfa9   :  { %v6432_v47 = vpop.f32.mrb[79].mxu1 }
 0xfac   :  { %v8772_v39 = vpop.f32.mrb[80].mxu1 }
 0xfad   :  { %v6441_v8 = vpop.f32.mrb[81].mxu1 }
 0xfb0   :  { %v8774_v10 = vpop.f32.mrb[82].mxu1 }
 0xfb1   :  { %v6444_v53 = vpop.f32.mrb[83].mxu1 }
 0xfb4   :  { %v8776_v23 = vpop.f32.mrb[84].mxu1 }
 0xfb5   :  { %v6447_v5 = vpop.f32.mrb[85].mxu1 }
 0xfb8   :  { %v8778_v50 = vpop.f32.mrb[86].mxu1 }
 0xfb9   :  { %v6486_v51 = vpop.f32.mrb[87].mxu1 }
 0xfbc   :  { %v8780_v2 = vpop.f32.mrb[88].mxu1 }
 0xfbd   :  { %v6489_v25 = vpop.f32.mrb[89].mxu1 }
 0xfc0   :  { %v8782_v41 = vpop.f32.mrb[90].mxu1 }
 0xfc1   :  { %v6492_v1 = vpop.f32.mrb[91].mxu1 }
 0xfc4   :  { %v8784_v48 = vpop.f32.mrb[92].mxu1 }
 0xfc5   :  { %v6516_v0 = vpop.f32.mrb[93].mxu1 }
 0xfc8   :  { %v8786_v22 = vpop.f32.mrb[94].mxu1 }
 0xfc9   :  { %v6519_v32 = vpop.f32.mrb[95].mxu1  ;;  %v4791_v63 = vsel %vm551_vm8, %v8786_v22, -inf }
 0xfcc   :  { %v8788_v33 = vpop.f32.mrb[96].mxu1 }
 0xfcd   :  { %v6522_v19 = vpop.f32.mrb[97].mxu1 }
0x1006   :  { %v3269_v59 = vpop.xlane.xlu0 %3268 }
0x1007   :  { %v3276_v52 = vsub.f32 %v8718_v58, %v3269_v59 }
0x1009   :  { %v3279_v27 = vmul.f32 1.442695, %v3276_v52 }
0x100b   :  { %7154 = vpow2.f32 %v3279_v27  ;;  %v3272_v20 = vpop.xlane.xlu1 %3271 }
0x100c   :  { %v3277_v47 = vsub.f32 %v8722_v36, %v3272_v20 }
0x100e   :  { %v3281_v51 = vmul.f32 1.442695, %v3277_v47 }
0x1012   :  { %v3132_v8 = vpop.xlane.xlu0 %3131 }
0x1013   :  { %v3139_v53 = vsub.f32 %v8728_v37, %v3132_v8 }
0x1015   :  { %v8799_v5 = vpop.eup %7154  ;;  %v3142_v25 = vmul.f32 1.442695, %v3139_v53 }
0x1016   :  { %v3135_v1 = vpop.xlane.xlu0 %3134  ;;  %v3285_v0 = vsel %vm551_vm8, %v8799_v5, 0.0 }
0x1017   :  { %7156 = vpow2.f32 %v3142_v25  ;;  %v3140_v58 = vsub.f32 %v8732_v46, %v3135_v1  ;;  %3286 = vadd.xlane.f32.xlu0 %v3285_v0 }
0x1018   :  { %7158 = vpow2.f32 %v3281_v51 }
0x1019   :  { %v3144_v32 = vmul.f32 1.442695, %v3140_v58 }
0x101a   :  { %v3275_v19 = vpop.xlane.xlu0 %3274  ;;  %v3138_v59 = vpop.xlane.xlu1 %3137 }
0x101b   :  { %7160 = vpow2.f32 %v3144_v32  ;;  %v3278_v36 = vsub.f32 %v8726_v13, %v3275_v19  ;;  %v3141_v37 = vsub.f32 %v8738_v11, %v3138_v59 }
0x101d   :  { %v3283_v52 = vmul.f32 1.442695, %v3278_v36  ;;  %v3146_v27 = vmul.f32 1.442695, %v3141_v37 }
0x101e   :  { %v3599_v20 = vpop.xlane.xlu0 %3598  ;;  %v3602_v47 = vpop.xlane.xlu1 %3601 }
0x101f   :  { %7162 = vpow2.f32 %v3283_v52  ;;  %v3606_v8 = vsub.f32 %v8734_v57, %v3599_v20  ;;  %v3607_v53 = vsub.f32 %v8740_v49, %v3602_v47 }
0x1020   :  { %7164 = vpow2.f32 %v3146_v27 }
0x1021   :  { %v8808_v46 = vpop.eup %7156  ;;  %v3609_v51 = vmul.f32 1.442695, %v3606_v8  ;;  %v3611_v25 = vmul.f32 1.442695, %v3607_v53 }
0x1022   :  { %v3605_v1 = vpop.xlane.xlu0 %3604  ;;  %v3148_v13 = vsel %vm551_vm8, %v8808_v46, 0.0  ;;  %v8812_v0 = vpop.eup %7158 }
0x1023   :  { %7166 = vpow2.f32 %v3609_v51  ;;  %v3608_v11 = vsub.f32 %v8746_v17, %v3605_v1  ;;  %v3838_v58 = vpop.xlane.xlu1 %3837  ;;  %3149 = vadd.xlane.f32.xlu1 %v3148_v13  ;;  %v3288_v36 = vsel %vm551_vm8, %v8812_v0, 0.0 }
0x1024   :  { %v3845_v57 = vsub.f32 %v8752_v42, %v3838_v58  ;;  %7168 = vpow2.f32 %v3611_v25 }
0x1025   :  { %v8816_v32 = vpop.eup %7160  ;;  %v3613_v49 = vmul.f32 1.442695, %v3608_v11 }
0x1026   :  { %v3848_v19 = vmul.f32 1.442695, %v3845_v57  ;;  %v3151_v59 = vsel %vm551_vm8, %v8816_v32, 0.0 }
0x1027   :  { %7170 = vpow2.f32 %v3613_v49  ;;  %v3841_v37 = vpop.xlane.xlu0 %3840  ;;  %3152 = vadd.xlane.f32.xlu0 %v3151_v59  ;;  %3289 = vadd.xlane.f32.xlu1 %v3288_v36 }
0x1028   :  { %v3846_v17 = vsub.f32 %v8758_v62, %v3841_v37  ;;  %7172 = vpow2.f32 %v3848_v19  ;;  %v4076_v19 = vsel %vm551_vm8, %v8766_v44, -inf  ;;  %v4082_v37 = vsel %vm558_vm9, %v8770_v18, -inf }
0x1029   :  { %v8823_v52 = vpop.eup %7162 }
0x102a   :  { %v8825_v42 = vpop.eup %7164  ;;  %v3850_v27 = vmul.f32 1.442695, %v3846_v17  ;;  %v3291_v20 = vsel %vm558_vm9, %v8823_v52, 0.0 }
0x102b   :  { %v3844_v47 = vpop.xlane.xlu1 %3843  ;;  %3292 = vadd.xlane.f32.xlu0 %v3291_v20  ;;  %v3154_v8 = vsel %vm558_vm9, %v8825_v42, 0.0  ;;  %v4079_v20 = vsel %vm551_vm8, %v8768_v21, -inf }
0x102c   :  { %v3847_v53 = vsub.f32 %v8762_v43, %v3844_v47  ;;  %3155 = vadd.xlane.f32.xlu1 %v3154_v8  ;;  %7174 = vpow2.f32 %v3850_v27  ;;  %v4216_v27 = vsel %vm551_vm8, %v8774_v10, -inf  ;;  %v4552_v47 = vsel %vm551_vm8, %v8780_v2, -inf }
0x102d   :  { %v8832_v51 = vpop.eup %7166  ;;  %v4213_v8 = vsel %vm551_vm8, %v8772_v39, -inf }
0x102e   :  { %v3852_v62 = vmul.f32 1.442695, %v3847_v53  ;;  %v3615_v25 = vsel %vm551_vm8, %v8832_v51, 0.0  ;;  %v8836_v1 = vpop.eup %7168  ;;  %v4788_v53 = vsel %vm551_vm8, %v8784_v48, -inf }
0x102f   :  { %v3618_v43 = vsel %vm551_vm8, %v8836_v1, 0.0 }
0x1030   :  { %3616 = vadd.xlane.f32.xlu1 %v3615_v25  ;;  %7176 = vpow2.f32 %v3852_v62  ;;  %v4219_v62 = vsel %vm558_vm9, %v8776_v23, -inf  ;;  %v4549_v25 = vsel %vm551_vm8, %v8778_v50, -inf }
0x1031   :  { %v8838_v13 = vpop.eup %7170 }
0x1032   :  { %v3621_v11 = vsel %vm558_vm9, %v8838_v13, 0.0  ;;  %v8842_v58 = vpop.eup %7172 }
0x1033   :  { %3622 = vadd.xlane.f32.xlu0 %v3621_v11  ;;  %v3854_v57 = vsel %vm551_vm8, %v8842_v58, 0.0  ;;  %v4555_v11 = vsel %vm558_vm9, %v8782_v41, -inf }
0x1034   :  { %3619 = vadd.xlane.f32.xlu1 %v3618_v43 }
0x1036   :  { %v8848_v49 = vpop.eup %7174 }
0x1037   :  { %3855 = vadd.xlane.f32.xlu0 %v3854_v57  ;;  %v3857_v59 = vsel %vm551_vm8, %v8848_v49, 0.0 }
0x1038   :  { %4077 = vmax.xlane.f32.xlu1 %v4076_v19 }
0x103a   :  { %v8854_v36 = vpop.eup %7176 }
0x103b   :  { %3858 = vadd.xlane.f32.xlu0 %v3857_v59  ;;  %v3860_v17 = vsel %vm558_vm9, %v8854_v36, 0.0 }
0x103c   :  { %4083 = vmax.xlane.f32.xlu1 %v4082_v37 }
0x103f   :  { %3861 = vadd.xlane.f32.xlu0 %v3860_v17 }
0x1040   :  { %4217 = vmax.xlane.f32.xlu1 %v4216_v27 }
0x1043   :  { %4080 = vmax.xlane.f32.xlu0 %v4079_v20 }
0x1044   :  { %4553 = vmax.xlane.f32.xlu1 %v4552_v47 }
0x1047   :  { %4214 = vmax.xlane.f32.xlu0 %v4213_v8 }
0x1048   :  { %4789 = vmax.xlane.f32.xlu1 %v4788_v53 }
0x104b   :  { %4220 = vmax.xlane.f32.xlu0 %v4219_v62 }
0x104f   :  { %4550 = vmax.xlane.f32.xlu0 %v4549_v25 }
0x1053   :  { %4556 = vmax.xlane.f32.xlu0 %v4555_v11  ;;  %v6997_v11 = vunpack.i.h.bf16 %v8691_v34 }
0x1059   :  { %7004 = vrot.lane.b32.xlu1 %v8561_v14, %s7301_s0 }
0x10a4   :  { %v3287_v43 = vpop.xlane.xlu0 %3286 }
0x10a5   :  { %7178 = vrcp.f32 %v3287_v43  ;;  %v6996_v43 = vunpack.i.l.bf16 %v8691_v34 }
0x10af   :  { %v7179_v57 = vpop.eup %7178 }
0x10b0   :  { %v3297_v19 = vmul.f32 %v7179_v57, %v8799_v5  ;;  %v3150_v59 = vpop.xlane.xlu1 %3149 }
0x10b2   :  { %6335 = vmatmul.mubr.msk.f32.vlgmr.msra.gmra.mrb[92].mxu0 %vm551_vm8, %v3297_v19 }
0x10b3   :  { %6740 = vmatpush3.bf16.msra.mxu0 %v6739_v26  ;;  %6337 = vmatprep.mubr.msk.f32.mxu0 %vm7299_vm0, %v7300_v6 }
0x10b4   :  { %v3153_v37 = vpop.xlane.xlu0 %3152  ;;  %v3290_v17 = vpop.xlane.xlu1 %3289  ;;  %6347 = vmatprep.subr.mxu0 %v7300_v6 }
0x10b5   :  { %7180 = vrcp.f32 %v3290_v17  ;;  %v6746_v17 = vpack.c.bf16 %v6997_v11, %v6996_v43 }
0x10b7   :  { %6348 = vmatpush3.msk.msra.mxu0 %vm743_vm7, %v8535_v31 }
0x10b8   :  { %v3293_v27 = vpop.xlane.xlu0 %3292  ;;  %6745 = vmatprep.subr.bf16.mxu0 %v7298_v3 }
0x10b9   :  { %7182 = vrcp.f32 %v3293_v27  ;;  %v3156_v5 = vpop.xlane.xlu1 %3155 }
0x10ba   :  { %7184 = vrcp.f32 %v3150_v59 }
0x10bb   :  { %7186 = vrcp.f32 %v3153_v37 }
0x10bc   :  { %7188 = vrcp.f32 %v3156_v5 }
0x10bd   :  { %v3617_v20 = vpop.xlane.xlu1 %3616 }
0x10be   :  { %7190 = vrcp.f32 %v3617_v20 }
0x10bf   :  { %v7181_v60 = vpop.eup %7180 }
0x10c0   :  { %v3623_v7 = vpop.xlane.xlu0 %3622  ;;  %v3298_v47 = vmul.f32 %v7181_v60, %v8812_v0 }
0x10c1   :  { %v3620_v26 = vpop.xlane.xlu1 %3619 }
0x10c2   :  { %6338 = vmatmul.mubr.msk.f32.gmra.mrb[94].mxu0 %vm551_vm8, %v3298_v47 }
0x10c3   :  { %v7183_v8 = vpop.eup %7182  ;;  %6340 = vmatprep.mubr.msk.f32.mxu0 %vm7299_vm0, %v7300_v6 }
0x10c4   :  { %v3856_v53 = vpop.xlane.xlu0 %3855  ;;  %v3299_v31 = vmul.f32 %v7183_v8, %v8823_v52  ;;  %v7185_v25 = vpop.eup %7184 }
0x10c5   :  { %v4078_v62 = vpop.xlane.xlu1 %4077  ;;  %v3160_v59 = vmul.f32 %v7185_v25, %v8808_v46  ;;  %v7187_v52 = vpop.eup %7186 }
0x10c6   :  { %v4085_v57 = vsub.f32 %v8766_v44, %v4078_v62  ;;  %6341 = vmatmul.mubr.msk.f32.gmra.mrb[96].mxu0 %vm551_vm8, %v3299_v31  ;;  %v3161_v27 = vmul.f32 %v7187_v52, %v8816_v32  ;;  %v7189_v5 = vpop.eup %7188 }
0x10c7   :  { %6349 = vmatprep.mubr.msk.f32.mxu0 %vm7299_vm0, %v7300_v6  ;;  %v3162_v32 = vmul.f32 %v7189_v5, %v8825_v42 }
0x10c8   :  { %v4088_v0 = vmul.f32 1.442695, %v4085_v57  ;;  %v3859_v19 = vpop.xlane.xlu0 %3858 }
0x10c9   :  { %v4084_v37 = vpop.xlane.xlu1 %4083 }
0x10ca   :  { %7192 = vpow2.f32 %v4088_v0  ;;  %6350 = vmatmul.mubr.msk.f32.vlgmr.msra.gmra.mrb[98].mxu0 %vm551_vm8, %v3160_v59  ;;  %v4087_v20 = vsub.f32 %v8770_v18, %v4084_v37  ;;  %v7191_v18 = vpop.eup %7190 }
0x10cb   :  { %7194 = vrcp.f32 %v3620_v26  ;;  %6747 = vmatpush3.bf16.msra.mxu0 %v6746_v17  ;;  %6352 = vmatprep.mubr.msk.f32.mxu0 %vm7299_vm0, %v7300_v6  ;;  %v3627_v42 = vmul.f32 %v7191_v18, %v8832_v51 }
0x10cc   :  { %v3862_v34 = vpop.xlane.xlu0 %3861  ;;  %6377 = vmatprep.subr.mxu0 %v7300_v6  ;;  %7196 = vrcp.f32 %v3623_v7  ;;  %v7001_v7 = vunpack.i.l.bf16 %v8790_v38  ;;  %v4092_v31 = vmul.f32 1.442695, %v4087_v20 }
0x10cd   :  { %v4218_v44 = vpop.xlane.xlu1 %4217 }
0x10ce   :  { %v4223_v46 = vsub.f32 %v8774_v10, %v4218_v44  ;;  %6353 = vmatmul.mubr.msk.f32.gmra.mrb[100].mxu0 %vm551_vm8, %v3161_v27  ;;  %v7002_v10 = vunpack.i.h.bf16 %v8790_v38 }
0x10cf   :  { %6378 = vmatpush3.msk.msra.mxu0 %vm743_vm7, %v8792_v45  ;;  %6355 = vmatprep.mubr.msk.f32.mxu0 %vm7299_vm0, %v7300_v6 }
0x10d0   :  { %v4227_v60 = vmul.f32 1.442695, %v4223_v46  ;;  %v4081_v26 = vpop.xlane.xlu0 %4080  ;;  %6752 = vmatprep.subr.bf16.mxu0 %v7298_v3  ;;  %v6753_v0 = vpack.c.bf16 %v7002_v10, %v7001_v7 }
0x10d1   :  { %v4086_v47 = vsub.f32 %v8768_v21, %v4081_v26  ;;  %v8914_v8 = vpop.xlane.xlu1 %4553 }
0x10d2   :  { %7198 = vpow2.f32 %v4227_v60  ;;  %v4559_v45 = vsub.f32 %v8780_v2, %v8914_v8  ;;  %6356 = vmatmul.mubr.msk.f32.gmra.mrb[96].mxu0 %vm551_vm8, %v3162_v32 }
0x10d3   :  { %v4090_v62 = vmul.f32 1.442695, %v4086_v47  ;;  %7200 = vrcp.f32 %v3856_v53  ;;  %6379 = vmatprep.mubr.msk.f32.mxu0 %vm7299_vm0, %v7300_v6 }
0x10d4   :  { %v8923_v21 = vpop.eup %7192  ;;  %v4215_v25 = vpop.xlane.xlu0 %4214 }
0x10d5   :  { %7202 = vpow2.f32 %v4090_v62  ;;  %v4222_v38 = vsub.f32 %v8772_v39, %v4215_v25  ;;  %v8929_v11 = vpop.xlane.xlu1 %4789  ;;  %v4094_v43 = vsel %vm551_vm8, %v8923_v21, 0.0  ;;  %v7195_v57 = vpop.eup %7194 }
0x10d6   :  { %v4797_v59 = vsub.f32 %v8784_v48, %v8929_v11  ;;  %4095 = vadd.xlane.f32.xlu1 %v4094_v43  ;;  %7204 = vpow2.f32 %v4092_v31  ;;  %6380 = vmatmul.mubr.msk.f32.vlgmr.msra.gmra.mrb[102].mxu0 %vm551_vm8, %v3627_v42  ;;  %v3628_v39 = vmul.f32 %v7195_v57, %v8836_v1  ;;  %v7197_v37 = vpop.eup %7196  ;;  %v4563_v57 = vmul.f32 1.442695, %v4559_v45 }
0x10d7   :  { %v4225_v53 = vmul.f32 1.442695, %v4222_v38  ;;  %7206 = vrcp.f32 %v3859_v19  ;;  %6754 = vmatpush3.bf16.msra.mxu0 %v6753_v0  ;;  %6382 = vmatprep.mubr.msk.f32.mxu0 %vm7299_vm0, %v7300_v6  ;;  %v3629_v27 = vmul.f32 %v7197_v37, %v8838_v13  ;;  %v4794_v0 = vsel %vm558_vm9, %v8788_v33, -inf }
0x10d8   :  { %v4221_v51 = vpop.xlane.xlu0 %4220  ;;  %6407 = vmatprep.subr.mxu0 %v7300_v6 }
0x10d9   :  { %7208 = vpow2.f32 %v4225_v53  ;;  %v7005_v52 = vpop.permute.xlu1 %7004  ;;  %v4224_v25 = vsub.f32 %v8776_v23, %v4221_v51  ;;  %v4800_v53 = vmul.f32 1.442695, %v4797_v59 }
0x10da   :  { %6383 = vmatmul.mubr.msk.f32.gmra.mrb[104].mxu0 %vm551_vm8, %v3628_v39  ;;  %7210 = vrcp.f32 %v3862_v34  ;;  %v7007_v46 = vunpack.i.h.bf16 %v7005_v52  ;;  %v7006_v20 = vunpack.i.l.bf16 %v7005_v52 }
0x10db   :  { %6408 = vmatpush3.msk.msra.mxu0 %vm743_vm7, %v8795_v4  ;;  %6385 = vmatprep.mubr.msk.f32.mxu0 %vm7299_vm0, %v7300_v6  ;;  %v4229_v42 = vmul.f32 1.442695, %v4224_v25 }
0x10dc   :  { %v8941_v17 = vpop.eup %7198  ;;  %v4551_v19 = vpop.xlane.xlu0 %4550  ;;  %6763 = vmatprep.subr.bf16.mxu0 %v7298_v3  ;;  %v6764_v26 = vpack.c.bf16 %v7007_v46, %v7006_v20 }
0x10dd   :  { %v4558_v44 = vsub.f32 %v8778_v50, %v4551_v19  ;;  %v4234_v1 = vsel %vm551_vm8, %v8941_v17, 0.0  ;;  %v7201_v5 = vpop.eup %7200 }
0x10de   :  { %4235 = vadd.xlane.f32.xlu1 %v4234_v1  ;;  %6386 = vmatmul.mubr.msk.f32.gmra.mrb[96].mxu0 %vm551_vm8, %v3629_v27  ;;  %v3866_v13 = vmul.f32 %v7201_v5, %v8842_v58 }
0x10df   :  { %v8952_v34 = vpop.eup %7202  ;;  %6409 = vmatprep.mubr.msk.f32.mxu0 %vm7299_vm0, %v7300_v6  ;;  %v4561_v23 = vmul.f32 1.442695, %v4558_v44 }
0x10e0   :  { %v4097_v4 = vsel %vm551_vm8, %v8952_v34, 0.0  ;;  %v8959_v50 = vpop.eup %7204 }
0x10e1   :  { %4098 = vadd.xlane.f32.xlu0 %v4097_v4  ;;  %v7207_v60 = vpop.eup %7206  ;;  %v4100_v47 = vsel %vm558_vm9, %v8959_v50, 0.0 }
0x10e2   :  { %6410 = vmatmul.mubr.msk.f32.vlgmr.msra.gmra.mrb[106].mxu0 %vm551_vm8, %v3866_v13  ;;  %v3867_v18 = vmul.f32 %v7207_v60, %v8848_v49  ;;  %v4557_v49 = vpop.xlane.xlu0 %4556 }
0x10e3   :  { %6765 = vmatpush3.bf16.msra.mxu0 %v6764_v26  ;;  %6412 = vmatprep.mubr.msk.f32.mxu0 %vm7299_vm0, %v7300_v6  ;;  %v7209_v32 = vpop.eup %7208  ;;  %v4560_v31 = vsub.f32 %v8782_v41, %v4557_v49 }
0x10e4   :  { %6452 = vmatprep.subr.mxu0 %v7300_v6  ;;  %v7211_v10 = vpop.eup %7210  ;;  %v4231_v58 = vsel %vm551_vm8, %v7209_v32, 0.0 }
0x10e5   :  { %4101 = vadd.xlane.f32.xlu0 %v4100_v47  ;;  %v3868_v7 = vmul.f32 %v7211_v10, %v8854_v36  ;;  %v4565_v62 = vmul.f32 1.442695, %v4560_v31 }
0x10e6   :  { %6413 = vmatmul.mubr.msk.f32.gmra.mrb[108].mxu0 %vm551_vm8, %v3867_v18 }
0x10e7   :  { %6415 = vmatprep.mubr.msk.f32.mxu0 %vm7299_vm0, %v7300_v6  ;;  %7212 = vpow2.f32 %v4565_v62 }
0x10e8   :  { %7214 = vpow2.f32 %v4229_v42 }
0x10e9   :  { %4232 = vadd.xlane.f32.xlu0 %v4231_v58  ;;  %7216 = vpow2.f32 %v4561_v23 }
0x10ea   :  { %6416 = vmatmul.mubr.msk.f32.gmra.mrb[96].mxu0 %vm551_vm8, %v3868_v7  ;;  %7218 = vpow2.f32 %v4563_v57 }
0x10eb   :  { %6454 = vmatprep.mubr.msk.f32.mxu0 %vm7299_vm0, %v7300_v6  ;;  %7220 = vpow2.f32 %v4800_v53 }
0x10ef   :  { %4257 = vrot.lane.b32.xlu1 %v8549_v28, %s7301_s0 }
0x10f1   :  { %v8983_v36 = vpop.eup %7212 }
0x10f2   :  { %v4573_v38 = vsel %vm558_vm9, %v8983_v36, 0.0  ;;  %v8987_v43 = vpop.eup %7214 }
0x10f3   :  { %v4237_v41 = vsel %vm558_vm9, %v8987_v43, 0.0  ;;  %v9003_v51 = vpop.eup %7216 }
0x10f4   :  { %v4567_v39 = vsel %vm551_vm8, %v9003_v51, 0.0  ;;  %v9007_v37 = vpop.eup %7218 }
0x10f5   :  { %v4570_v2 = vsel %vm551_vm8, %v9007_v37, 0.0  ;;  %v9011_v8 = vpop.eup %7220 }
0x10f6   :  { %v4806_v45 = vsel %vm551_vm8, %v9011_v8, 0.0 }
0x10ff   :  { %7009 = vrot.lane.b32.xlu0 %v8561_v14, %s7308_s18 }
0x1113   :  { %4574 = vadd.xlane.f32.xlu1 %v4573_v38 }
0x111e   :  { %4238 = vadd.xlane.f32.xlu0 %v4237_v41 }
0x1124   :  { %4825 = vrot.lane.b32.xlu1 %v8549_v28, %s7309_s19 }
0x1134   :  { %4586 = vrot.lane.b32.xlu0 %v8549_v28, %s7308_s18 }
0x1148   :  { %4795 = vmax.xlane.f32.xlu1 %v4794_v0 }
0x1153   :  { %4568 = vadd.xlane.f32.xlu0 %v4567_v39 }
0x1157   :  { %4571 = vadd.xlane.f32.xlu0 %v4570_v2 }
0x115b   :  { %4807 = vadd.xlane.f32.xlu0 %v4806_v45 }
0x1163   :  { %v4096_v48 = vpop.xlane.xlu1 %4095 }
0x116b   :  { %v4236_v11 = vpop.xlane.xlu1 %4235 }
0x116e   :  { %v4099_v59 = vpop.xlane.xlu0 %4098 }
0x116f   :  { %v4258_v52 = vpop.permute.xlu1 %4257 }
0x1170   :  { %6453 = vmatpush3.msk.msra.mxu0 %vm743_vm7, %v4258_v52 }
0x1171   :  { %7014 = vrot.lane.b32.xlu0 %v8561_v14, %s7309_s19  ;;  %6766 = vmatprep.subr.bf16.mxu0 %v7298_v3 }
0x1172   :  { %v4102_v19 = vpop.xlane.xlu0 %4101 }
0x1176   :  { %v4233_v44 = vpop.xlane.xlu0 %4232 }
0x1177   :  { %7222 = vrcp.f32 %v4233_v44 }
0x1178   :  { %7224 = vrcp.f32 %v4236_v11 }
0x1181   :  { %v7223_v1 = vpop.eup %7222 }
0x1182   :  { %v4243_v27 = vmul.f32 %v7223_v1, %v7209_v32  ;;  %v7225_v5 = vpop.eup %7224  ;;  %v7010_v32 = vpop.permute.xlu0 %7009 }
0x1183   :  { %v4244_v20 = vmul.f32 %v7225_v5, %v8941_v17  ;;  %v7012_v57 = vunpack.i.h.bf16 %v7010_v32  ;;  %v7011_v0 = vunpack.i.l.bf16 %v7010_v32 }
0x1184   :  { %6455 = vmatmul.mubr.msk.f32.vlgmr.msra.gmra.mrb[110].mxu0 %vm551_vm8, %v4243_v27 }
0x1185   :  { %6768 = vmatpush3.bf16.msra.mxu0 %v6767_v55  ;;  %v3388_v46 = vpop.f32.mrb[92].mxu0  ;;  %6457 = vmatprep.mubr.msk.f32.mxu0 %vm7299_vm0, %v7300_v6  ;;  %v6774_v11 = vpack.c.bf16 %v7012_v57, %v7011_v0 }
0x1186   :  { %v6336_v14 = vpop.f32.mrb[93].mxu0  ;;  %6467 = vmatprep.subr.mxu0 %v7300_v6 }
0x1188   :  { %6458 = vmatmul.mubr.msk.f32.gmra.mrb[112].mxu0 %vm551_vm8, %v4244_v20 }
0x1189   :  { %6468 = vmatpush3.msk.msra.mxu0 %vm743_vm7, %v8549_v28  ;;  %6460 = vmatprep.mubr.msk.f32.mxu0 %vm7299_vm0, %v7300_v6 }
0x118a   :  { %6773 = vmatprep.subr.bf16.mxu0 %v7298_v3 }
0x1190   :  { %4792 = vmax.xlane.f32.xlu0 %v4791_v63 }
0x1195   :  { %v3393_v9 = vpop.f32.mrb[94].mxu0 }
0x1196   :  { %v6339_v55 = vpop.f32.mrb[95].mxu0 }
0x119d   :  { %v3479_v4 = vpop.f32.mrb[98].mxu0 }
0x119e   :  { %v3480_v13 = vadd.f32 %v3479_v4, %v3388_v46  ;;  %v6351_v60 = vpop.f32.mrb[99].mxu0 }
0x11a1   :  { %v3484_v17 = vpop.f32.mrb[100].mxu0 }
0x11a2   :  { %v3485_v26 = vadd.f32 %v3484_v17, %v3393_v9  ;;  %v6354_v47 = vpop.f32.mrb[101].mxu0 }
0x11a9   :  { %v3715_v18 = vpop.f32.mrb[102].mxu0 }
0x11aa   :  { %v3729_v28 = vadd.f32 %v3715_v18, %v3480_v13  ;;  %v6381_v10 = vpop.f32.mrb[103].mxu0 }
0x11ab   :  { %v4239_v58 = vpop.xlane.xlu0 %4238 }
0x11ac   :  { %7226 = vrcp.f32 %v4239_v58 }
0x11ad   :  { %7228 = vrcp.f32 %v4096_v48  ;;  %v3720_v7 = vpop.f32.mrb[104].mxu0 }
0x11ae   :  { %v3730_v49 = vadd.f32 %v3720_v7, %v3485_v26  ;;  %v6384_v31 = vpop.f32.mrb[105].mxu0  ;;  %7230 = vrcp.f32 %v4099_v59 }
0x11af   :  { %7232 = vrcp.f32 %v4102_v19 }
0x11b5   :  { %v3954_v25 = vpop.f32.mrb[106].mxu0 }
0x11b6   :  { %v7227_v62 = vpop.eup %7226  ;;  %v9035_v42 = vadd.f32 %v3954_v25, %v3729_v28  ;;  %v6411_v38 = vpop.f32.mrb[107].mxu0 }
0x11b7   :  { %v4245_v41 = vmul.f32 %v7227_v62, %v8987_v43  ;;  %v7229_v23 = vpop.eup %7228 }
0x11b8   :  { %v4106_v39 = vmul.f32 %v7229_v23, %v8923_v21  ;;  %v7231_v48 = vpop.eup %7230  ;;  %v4587_v21 = vpop.permute.xlu0 %4586  ;;  %v4935_v58 = vadd.f32 %v9035_v42, %v8374_v40 }
0x11b9   :  { %6461 = vmatmul.mubr.msk.f32.gmra.mrb[114].mxu0 %vm551_vm8, %v4245_v41  ;;  %v3959_v53 = vpop.f32.mrb[108].mxu0  ;;  %v4107_v52 = vmul.f32 %v7231_v48, %v8952_v34  ;;  %v7233_v19 = vpop.eup %7232 }
0x11ba   :  { %6469 = vmatprep.mubr.msk.f32.mxu0 %vm7299_vm0, %v7300_v6  ;;  %v9042_v2 = vadd.f32 %v3959_v53, %v3730_v49  ;;  %v6414_v45 = vpop.f32.mrb[109].mxu0  ;;  %v4108_v44 = vmul.f32 %v7233_v19, %v8959_v50  ;;  %v4575_v34 = vpop.xlane.xlu1 %4574 }
0x11bc   :  { %v4936_v40 = vadd.f32 %v9042_v2, %v8379_v30 }
0x11bd   :  { %6470 = vmatmul.mubr.msk.f32.vlgmr.msra.gmra.mrb[110].mxu0 %vm551_vm8, %v4106_v39  ;;  %v9045_v59 = vpop.f32.mrb[96].mxu0 }
0x11be   :  { %6775 = vmatpush3.bf16.msra.mxu0 %v6774_v11  ;;  %6472 = vmatprep.mubr.msk.f32.mxu0 %vm7299_vm0, %v7300_v6  ;;  %v6417_v43 = vpop.f32.mrb[97].mxu0 }
0x11bf   :  { %6497 = vmatprep.subr.mxu0 %v7300_v6 }
0x11c1   :  { %6473 = vmatmul.mubr.msk.f32.gmra.mrb[112].mxu0 %vm551_vm8, %v4107_v52 }
0x11c2   :  { %6498 = vmatpush3.msk.msra.mxu0 %vm743_vm7, %v4587_v21  ;;  %6475 = vmatprep.mubr.msk.f32.mxu0 %vm7299_vm0, %v7300_v6 }
0x11c3   :  { %6780 = vmatprep.subr.bf16.mxu0 %v7298_v3 }
0x11c5   :  { %6476 = vmatmul.mubr.msk.f32.gmra.mrb[114].mxu0 %vm551_vm8, %v4108_v44 }
0x11c6   :  { %6499 = vmatprep.mubr.msk.f32.mxu0 %vm7299_vm0, %v7300_v6 }
0x11e0   :  { %v4569_v1 = vpop.xlane.xlu0 %4568 }
0x11e1   :  { %7234 = vrcp.f32 %v4569_v1 }
0x11e4   :  { %v4572_v27 = vpop.xlane.xlu0 %4571 }
0x11e5   :  { %7236 = vrcp.f32 %v4572_v27 }
0x11e6   :  { %7238 = vrcp.f32 %v4575_v34 }
0x11e8   :  { %v4808_v5 = vpop.xlane.xlu0 %4807 }
0x11e9   :  { %7240 = vrcp.f32 %v4808_v5 }
0x11eb   :  { %v7235_v46 = vpop.eup %7234 }
0x11ec   :  { %v4579_v14 = vmul.f32 %v7235_v46, %v9003_v51  ;;  %v7015_v20 = vpop.permute.xlu0 %7014  ;;  %v4826_v51 = vpop.permute.xlu1 %4825 }
0x11ed   :  { %v7017_v50 = vunpack.i.h.bf16 %v7015_v20  ;;  %v7016_v63 = vunpack.i.l.bf16 %v7015_v20  ;;  %v5545_v20 = vld [vmem:[%s9294_s5 + $0x30] sm:$0xff] }
0x11ee   :  { %6500 = vmatmul.mubr.msk.f32.vlgmr.msra.gmra.mrb[110].mxu0 %vm551_vm8, %v4579_v14  ;;  %v5543_v14 = vld [vmem:[%s9294_s5 + $0x20] sm:$0xff] }
0x11ef   :  { %v7237_v9 = vpop.eup %7236  ;;  %v6781_v55 = vpack.c.bf16 %v7017_v50, %v7016_v63  ;;  %6502 = vmatprep.mubr.msk.f32.mxu0 %vm7299_vm0, %v7300_v6  ;;  %v5546_v50 = vld [vmem:[%s9294_s5 + $0x38] sm:$0xff] }
0x11f0   :  { %v4580_v4 = vmul.f32 %v7237_v9, %v9007_v37  ;;  %v7239_v13 = vpop.eup %7238  ;;  %v4796_v26 = vpop.xlane.xlu1 %4795  ;;  %v6787_v63 = vpack.c.bf16 %v5546_v50, %v5545_v20 }
0x11f1   :  { %6782 = vmatpush3.bf16.msra.mxu0 %v6781_v55  ;;  %v4581_v60 = vmul.f32 %v7239_v13, %v8983_v36  ;;  %v4799_v47 = vsub.f32 %v8788_v33, %v4796_v26 }
0x11f2   :  { %6503 = vmatmul.mubr.msk.f32.gmra.mrb[112].mxu0 %vm551_vm8, %v4580_v4  ;;  %6527 = vmatprep.subr.mxu0 %v7300_v6 }
0x11f3   :  { %6505 = vmatprep.mubr.msk.f32.mxu0 %vm7299_vm0, %v7300_v6  ;;  %v7241_v17 = vpop.eup %7240  ;;  %v4804_v18 = vmul.f32 1.442695, %v4799_v47 }
0x11f4   :  { %v4818_v37 = vmul.f32 %v7241_v17, %v9011_v8  ;;  %v9085_v8 = vld [vmem:[%s9296_s7 + $0x8] sm:$0xff] }
0x11f5   :  { %6528 = vmatpush3.msk.msra.mxu0 %vm743_vm7, %v4826_v51  ;;  %v9090_v33 = vrot.slane %v9085_v8, %v2367_v12 }
0x11f6   :  { %6506 = vmatmul.mubr.msk.f32.gmra.mrb[114].mxu0 %vm551_vm8, %v4581_v60 }
0x11f7   :  { %6529 = vmatprep.mubr.msk.f32.mxu0 %vm7299_vm0, %v7300_v6  ;;  %v9094_v49 = vadd.f32 %v9090_v33, %v4935_v58  ;;  %v4945_v25 = vadd.f32 %v9090_v33, %v4936_v40 }
0x11f9   :  { %v4949_v62 = vsel %vm156_vm2, %v9094_v49, 0.0  ;;  %v4952_v12 = vsel %vm156_vm2, %v4945_v25, 0.0 }
0x11fa   :  { %6530 = vmatmul.mubr.msk.f32.vlgmr.msra.gmra.mrb[110].mxu0 %vm551_vm8, %v4818_v37 }
0x11fb   :  { %6532 = vmatprep.mubr.msk.f32.mxu0 %vm7299_vm0, %v7300_v6 }
0x121d   :  { %v4793_v32 = vpop.xlane.xlu0 %4792 }
0x121e   :  { %v4798_v36 = vsub.f32 %v8786_v22, %v4793_v32 }
0x1220   :  { %v4802_v28 = vmul.f32 1.442695, %v4798_v36 }
0x1222   :  { %7242 = vpow2.f32 %v4802_v28  ;;  %v9137_v28 = vrot.slane %v9085_v8, %v2441_v56 }
0x1223   :  { %7244 = vpow2.f32 %v4804_v18 }
0x122c   :  { %v7243_v10 = vpop.eup %7242 }
0x122d   :  { %v4809_v22 = vsel %vm551_vm8, %v7243_v10, 0.0  ;;  %v7245_v7 = vpop.eup %7244 }
0x122e   :  { %4810 = vadd.xlane.f32.xlu0 %v4809_v22  ;;  %v4812_v31 = vsel %vm558_vm9, %v7245_v7, 0.0  ;;  %v9142_v22 = vrot.slane %v9085_v8, %v2450_v16 }
0x1232   :  { %4813 = vadd.xlane.f32.xlu0 %v4812_v31 }
0x1236   :  { %4950 = vadd.xlane.f32.xlu0 %v4949_v62 }
0x123a   :  { %4953 = vadd.xlane.f32.xlu0 %v4952_v12 }
0x12bb   :  { %v4811_v42 = vpop.xlane.xlu0 %4810 }
0x12bc   :  { %7246 = vrcp.f32 %v4811_v42 }
0x12bf   :  { %v4814_v38 = vpop.xlane.xlu0 %4813 }
0x12c0   :  { %7248 = vrcp.f32 %v4814_v38 }
0x12c3   :  { %v4951_v41 = vpop.xlane.xlu0 %4950 }
0x12c4   :  { %v4964_v48 = vmul.f32 0.03125, %v4951_v41 }
0x12c6   :  { %v7247_v23 = vpop.eup %7246  ;;  %v4969_v44 = vsub.f32 %v9094_v49, %v4964_v48 }
0x12c7   :  { %v4954_v57 = vpop.xlane.xlu0 %4953  ;;  %v4819_v30 = vmul.f32 %v7247_v23, %v7243_v10 }
0x12c8   :  { %v4965_v0 = vmul.f32 0.03125, %v4954_v57  ;;  %v4974_v5 = vmul.f32 %v4969_v44, %v4969_v44 }
0x12c9   :  { %6533 = vmatmul.mubr.msk.f32.gmra.mrb[112].mxu0 %vm551_vm8, %v4819_v30 }
0x12ca   :  { %v7249_v53 = vpop.eup %7248  ;;  %v4970_v39 = vsub.f32 %v4945_v25, %v4965_v0  ;;  %6535 = vmatprep.mubr.msk.f32.mxu0 %vm7299_vm0, %v7300_v6  ;;  %v4979_v46 = vsel %vm156_vm2, %v4974_v5, 0.0 }
0x12cb   :  { %v4820_v2 = vmul.f32 %v7249_v53, %v7245_v7 }
0x12cc   :  { %v4975_v45 = vmul.f32 %v4970_v39, %v4970_v39 }
0x12cd   :  { %v4906_v11 = vpop.f32.mrb[110].mxu0  ;;  %6536 = vmatmul.mubr.msk.f32.gmra.mrb[114].mxu0 %vm551_vm8, %v4820_v2 }
0x12ce   :  { %v4926_v43 = vrot.slane %v4906_v11, 7  ;;  %v6531_v52 = vpop.f32.mrb[111].mxu0  ;;  %v4982_v19 = vsel %vm156_vm2, %v4975_v45, 0.0  ;;  %v5553_v45 = vld [vmem:[%s9295_s6 + $0x88] sm:$0xff] }
0x12cf   :  { %4983 = vadd.xlane.f32.xlu1 %v4982_v19 }
0x12d0   :  { %v4934_v21 = vsel %vm743_vm7, %v9045_v59, %v4926_v43  ;;  %v5544_v59 = vld [vmem:[%s9294_s5 + $0x28] sm:$0xff] }
0x12d1   :  { %v4937_v1 = vadd.f32 %v4934_v21, %v8384_v61  ;;  %v6784_v61 = vpack.c.bf16 %v5544_v59, %v5543_v14 }
0x12d3   :  { %v9113_v34 = vadd.f32 %v9090_v33, %v4937_v1  ;;  %6785 = vmatpush3.bf16.msra.mxu1 %v6784_v61 }
0x12d4   :  { %6786 = vmatprep.subr.bf16.mxu1 %v7298_v3 }
0x12d5   :  { %v4955_v27 = vsel %vm156_vm2, %v9113_v34, 0.0 }
0x12d6   :  { %4956 = vadd.xlane.f32.xlu0 %v4955_v27 }
0x12d7   :  { %6788 = vmatpush3.bf16.msra.mxu1 %v6787_v63  ;;  %v5554_v63 = vld [vmem:[%s9295_s6 + $0x90] sm:$0xff] }
0x12d8   :  { %6789 = vmatprep.subr.bf16.mxu1 %v7298_v3 }
0x12da   :  { %4980 = vadd.xlane.f32.xlu0 %v4979_v46 }
0x135c   :  { %v4984_v9 = vpop.xlane.xlu1 %4983 }
0x135d   :  { %v4995_v55 = vmul.f32 0.03125, %v4984_v9  ;;  %v5555_v9 = vld [vmem:[%s9295_s6 + $0x98] sm:$0xff] }
0x135f   :  { %v5000_v51 = vadd.f32 1e-06, %v4995_v55  ;;  %v6793_v55 = vpack.c.bf16 %v5555_v9, %v5554_v63 }
0x1361   :  { %7250 = vrsqrt.f32 %v5000_v51 }
0x1363   :  { %v4957_v4 = vpop.xlane.xlu0 %4956 }
0x1364   :  { %v4966_v13 = vmul.f32 0.03125, %v4957_v4  ;;  %v5556_v4 = vld [vmem:[%s9295_s6 + $0xa0] sm:$0xff] }
0x1366   :  { %v4971_v60 = vsub.f32 %v9113_v34, %v4966_v13  ;;  %v5557_v13 = vld [vmem:[%s9295_s6 + $0xa8] sm:$0xff] }
0x1367   :  { %v4981_v17 = vpop.xlane.xlu0 %4980  ;;  %v6796_v51 = vpack.c.bf16 %v5557_v13, %v5556_v4 }
0x1368   :  { %v4994_v37 = vmul.f32 0.03125, %v4981_v17  ;;  %v4976_v26 = vmul.f32 %v4971_v60, %v4971_v60  ;;  %v5558_v17 = vld [vmem:[%s9295_s6 + $0xb0] sm:$0xff] }
0x136a   :  { %v4999_v47 = vadd.f32 1e-06, %v4994_v37  ;;  %v4985_v32 = vsel %vm156_vm2, %v4976_v26, 0.0  ;;  %v5559_v37 = vld [vmem:[%s9295_s6 + $0xb8] sm:$0xff] }
0x136b   :  { %4986 = vadd.xlane.f32.xlu0 %v4985_v32  ;;  %v7251_v36 = vpop.eup %7250  ;;  %v5560_v32 = vld [vmem:[%s9295_s6 + $0xc0] sm:$0xff] }
0x136c   :  { %7252 = vrsqrt.f32 %v4999_v47  ;;  %v5010_v58 = vmul.f32 %v7251_v36, %v4970_v39  ;;  %v6799_v47 = vpack.c.bf16 %v5559_v37, %v5558_v17  ;;  %v5561_v36 = vld [vmem:[%s9295_s6 + $0xc8] sm:$0xff] }
0x136e   :  { %v5019_v31 = vmul.f32 %v9137_v28, %v5010_v58 }
0x1370   :  { %v5028_v56 = vadd.f32 %v9142_v22, %v5019_v31 }
0x1376   :  { %v7253_v18 = vpop.eup %7252 }
0x1377   :  { %v5009_v10 = vmul.f32 %v7253_v18, %v4969_v44 }
0x1379   :  { %v5018_v7 = vmul.f32 %v9137_v28, %v5009_v10  ;;  %v6802_v10 = vpack.c.bf16 %v5561_v36, %v5560_v32 }
0x137b   :  { %v5027_v40 = vadd.f32 %v9142_v22, %v5018_v7  ;;  %v5562_v7 = vld [vmem:[%s9295_s6 + $0xd0] sm:$0xff] }
0x137d   :  { %6547 = vmatmul.mubr.msk.f32.vlgmr.msra.gmra.mrb[98].mxu1 %vm156_vm2, %v5027_v40  ;;  %v5563_v40 = vld [vmem:[%s9295_s6 + $0xd8] sm:$0xff] }
0x137e   :  { %6549 = vmatprep.mubr.msk.f32.mxu1 %vm7299_vm0, %v7300_v6  ;;  %v6805_v31 = vpack.c.bf16 %v5563_v40, %v5562_v7 }
0x1381   :  { %6550 = vmatmul.mubr.msk.f32.gmra.mrb[100].mxu1 %vm156_vm2, %v5028_v56  ;;  %v5564_v56 = vld [vmem:[%s9295_s6 + $0xe0] sm:$0xff] }
0x1382   :  { %6552 = vmatprep.mubr.msk.f32.mxu1 %vm7299_vm0, %v7300_v6 }
0x139c   :  { %v4911_v16 = vpop.f32.mrb[112].mxu0 }
0x139d   :  { %v4927_v62 = vrot.slane %v4911_v16, 7  ;;  %v6534_v25 = vpop.f32.mrb[113].mxu0  ;;  %v5565_v16 = vld [vmem:[%s9295_s6 + $0xe8] sm:$0xff] }
0x139e   :  { %v5566_v25 = vld [vmem:[%s9295_s6 + $0xf0] sm:$0xff] }
0x139f   :  { %v4928_v12 = vsel %vm743_vm7, %v4926_v43, %v4927_v62 }
0x13a0   :  { %v4916_v42 = vpop.f32.mrb[114].mxu0  ;;  %v4938_v38 = vadd.f32 %v4928_v12, %v8389_v15  ;;  %v5552_v15 = vld [vmem:[%s9295_s6 + $0x80] sm:$0xff]  ;;  %v5567_v12 = vld [vmem:[%s9295_s6 + $0xf8] sm:$0xff] }
0x13a1   :  { %v4929_v41 = vrot.slane %v4916_v42, 7  ;;  %v6537_v23 = vpop.f32.mrb[115].mxu0  ;;  %v6790_v48 = vpack.c.bf16 %v5553_v45, %v5552_v15  ;;  %v6811_v42 = vpack.c.bf16 %v5567_v12, %v5566_v25 }
0x13a2   :  { %v4947_v57 = vadd.f32 %v9090_v33, %v4938_v38  ;;  %v9235_v38 = vrot.slane %v9085_v8, %v2463_v54 }
0x13a3   :  { %v4930_v30 = vsel %vm743_vm7, %v4927_v62, %v4929_v41  ;;  %6791 = vmatpush3.bf16.msra.mxu1 %v6790_v48  ;;  %v6808_v62 = vpack.c.bf16 %v5565_v16, %v5564_v56 }
0x13a4   :  { %v4958_v0 = vsel %vm156_vm2, %v4947_v57, 0.0  ;;  %v4939_v53 = vadd.f32 %v4930_v30, %v8395_v35  ;;  %6792 = vmatprep.subr.bf16.mxu1 %v7298_v3 }
0x13a5   :  { %4959 = vadd.xlane.f32.xlu1 %v4958_v0 }
0x13a6   :  { %v4948_v39 = vadd.f32 %v9090_v33, %v4939_v53 }
0x13a7   :  { %6794 = vmatpush3.bf16.msra.mxu1 %v6793_v55 }
0x13a8   :  { %v4961_v2 = vsel %vm169_vm3, %v4948_v39, 0.0  ;;  %6795 = vmatprep.subr.bf16.mxu1 %v7298_v3 }
0x13a9   :  { %4962 = vadd.xlane.f32.xlu0 %v4961_v2 }
0x13ab   :  { %6797 = vmatpush3.bf16.msra.mxu1 %v6796_v51 }
0x13ac   :  { %6798 = vmatprep.subr.bf16.mxu1 %v7298_v3 }
0x13af   :  { %6800 = vmatpush3.bf16.msra.mxu1 %v6799_v47 }
0x13b0   :  { %6801 = vmatprep.subr.bf16.mxu1 %v7298_v3 }
0x13b3   :  { %6803 = vmatpush3.bf16.msra.mxu1 %v6802_v10 }
0x13b4   :  { %6804 = vmatprep.subr.bf16.mxu1 %v7298_v3 }
0x13b7   :  { %6806 = vmatpush3.bf16.msra.mxu1 %v6805_v31 }
0x13b8   :  { %6807 = vmatprep.subr.bf16.mxu1 %v7298_v3 }
0x13bb   :  { %6809 = vmatpush3.bf16.msra.mxu1 %v6808_v62 }
0x13bc   :  { %6810 = vmatprep.subr.bf16.mxu1 %v7298_v3 }
0x13bf   :  { %6812 = vmatpush3.bf16.msra.mxu1 %v6811_v42 }
0x13f8   :  { %v4987_v11 = vpop.xlane.xlu0 %4986 }
0x13f9   :  { %v4996_v35 = vmul.f32 0.03125, %v4987_v11 }
0x13fb   :  { %v5001_v43 = vadd.f32 1e-06, %v4996_v35 }
0x13fd   :  { %7254 = vrsqrt.f32 %v5001_v43 }
0x1407   :  { %v7255_v33 = vpop.eup %7254 }
0x1408   :  { %v5011_v52 = vmul.f32 %v7255_v33, %v4971_v60 }
0x140a   :  { %v5020_v19 = vmul.f32 %v9137_v28, %v5011_v52 }
0x140c   :  { %v5029_v21 = vadd.f32 %v9142_v22, %v5020_v19 }
0x140e   :  { %6553 = vmatmul.mubr.msk.f32.gmra.mrb[102].mxu1 %vm156_vm2, %v5029_v21 }
0x140f   :  { %6555 = vmatprep.mubr.msk.f32.mxu1 %vm7299_vm0, %v7300_v6 }
0x1432   :  { %v4960_v44 = vpop.xlane.xlu1 %4959 }
0x1433   :  { %v4967_v1 = vmul.f32 0.03125, %v4960_v44 }
0x1435   :  { %v9174_v27 = vsub.f32 %v4947_v57, %v4967_v1 }
0x1436   :  { %v4963_v5 = vpop.xlane.xlu0 %4962 }
0x1437   :  { %v4968_v46 = vmul.f32 0.03125, %v4963_v5  ;;  %v4977_v14 = vmul.f32 %v9174_v27, %v9174_v27 }
0x1439   :  { %v9178_v59 = vsub.f32 %v4948_v39, %v4968_v46  ;;  %v4988_v61 = vsel %vm156_vm2, %v4977_v14, 0.0 }
0x143a   :  { %4989 = vadd.xlane.f32.xlu1 %v4988_v61 }
0x143b   :  { %v4978_v20 = vmul.f32 %v9178_v59, %v9178_v59 }
0x143d   :  { %v4991_v50 = vsel %vm169_vm3, %v4978_v20, 0.0 }
0x143e   :  { %4992 = vadd.xlane.f32.xlu0 %v4991_v50 }
0x1450   :  { %v5122_v60 = vpop.f32.mrb[98].mxu1 }
0x1451   :  { %v6548_v26 = vpop.f32.mrb[99].mxu1  ;;  %v5123_v41 = vadd.f32 %v5122_v60, %v9235_v38 }
0x1453   :  { %v5146_v23 = vmul.f32 %v5123_v41, %v5123_v41 }
0x1454   :  { %v5127_v18 = vpop.f32.mrb[100].mxu1 }
0x1455   :  { %v6551_v58 = vpop.f32.mrb[101].mxu1  ;;  %v5128_v3 = vadd.f32 %v5127_v18, %v9235_v38  ;;  %v5151_v57 = vmul.f32 %v5146_v23, %v5123_v41 }
0x1457   :  { %v5147_v30 = vmul.f32 %v5128_v3, %v5128_v3  ;;  %v5156_v0 = vmul.f32 0.044715, %v5151_v57 }
0x1459   :  { %v5152_v53 = vmul.f32 %v5147_v30, %v5128_v3  ;;  %v5161_v39 = vadd.f32 %v5156_v0, %v5123_v41 }
0x145b   :  { %v5157_v2 = vmul.f32 0.044715, %v5152_v53  ;;  %v5166_v48 = vmul.f32 0.7978846, %v5161_v39 }
0x145d   :  { %v5162_v11 = vadd.f32 %v5157_v2, %v5128_v3 }
0x145f   :  { %v5167_v33 = vmul.f32 0.7978846, %v5162_v11 }
0x14c7   :  { %v4990_v15 = vpop.xlane.xlu1 %4989 }
0x14c8   :  { %v4997_v45 = vmul.f32 0.03125, %v4990_v15 }
0x14ca   :  { %v5002_v35 = vadd.f32 1e-06, %v4997_v45 }
0x14cb   :  { %v4993_v43 = vpop.xlane.xlu0 %4992 }
0x14cc   :  { %7256 = vrsqrt.f32 %v5002_v35  ;;  %v4998_v54 = vmul.f32 0.03125, %v4993_v43 }
0x14cd   :  { %7258 = vtanh.f32 %v5166_v48 }
0x14ce   :  { %v5003_v52 = vadd.f32 1e-06, %v4998_v54 }
0x14d0   :  { %7260 = vrsqrt.f32 %v5003_v52  ;;  %v5300_v52 = vrot.slane %v9085_v8, %v2728_v29 }
0x14d1   :  { %7262 = vtanh.f32 %v5167_v33 }
0x14d6   :  { %v7257_v19 = vpop.eup %7256 }
0x14d7   :  { %v5012_v21 = vmul.f32 %v7257_v19, %v9174_v27  ;;  %v7259_v44 = vpop.eup %7258 }
0x14d8   :  { %v5176_v46 = vadd.f32 1.0, %v7259_v44 }
0x14d9   :  { %v5021_v1 = vmul.f32 %v9137_v28, %v5012_v21 }
0x14da   :  { %v7261_v5 = vpop.eup %7260  ;;  %v5181_v63 = vmul.f32 0.5, %v5176_v46 }
0x14db   :  { %v5030_v14 = vadd.f32 %v9142_v22, %v5021_v1  ;;  %v5013_v61 = vmul.f32 %v7261_v5, %v9178_v59  ;;  %v7263_v20 = vpop.eup %7262 }
0x14dc   :  { %v5177_v9 = vadd.f32 1.0, %v7263_v20  ;;  %v5186_v59 = vmul.f32 %v5181_v63, %v5123_v41 }
0x14dd   :  { %6556 = vmatmul.mubr.msk.f32.gmra.mrb[104].mxu1 %vm156_vm2, %v5030_v14  ;;  %v5022_v50 = vmul.f32 %v9137_v28, %v5013_v61 }
0x14de   :  { %6558 = vmatprep.mubr.msk.f32.mxu1 %vm7299_vm0, %v7300_v6  ;;  %v5182_v51 = vmul.f32 0.5, %v5177_v9 }
0x14df   :  { %v5031_v27 = vadd.f32 %v9142_v22, %v5022_v50 }
0x14e0   :  { %v5187_v17 = vmul.f32 %v5182_v51, %v5128_v3 }
0x14e1   :  { %v5132_v55 = vpop.f32.mrb[102].mxu1  ;;  %6559 = vmatmul.mubr.msk.f32.gmra.mrb[106].mxu1 %vm156_vm2, %v5031_v27 }
0x14e2   :  { %v5133_v4 = vadd.f32 %v5132_v55, %v9235_v38  ;;  %v6554_v13 = vpop.f32.mrb[103].mxu1  ;;  %6593 = vmatprep.mubr.msk.f32.mxu1 %vm7299_vm0, %v7300_v6 }
0x14e4   :  { %v5148_v60 = vmul.f32 %v5133_v4, %v5133_v4 }
0x14e5   :  { %6594 = vmatmul.mubr.f32.vlgmr.msra.gmra.mrb[108].mxu1 %v5186_v59  ;;  %v5569_v59 = vld [vmem:[%s9297_s8 + $0x1] ss:$0 sm:$0xff] }
0x14e6   :  { %v5153_v28 = vmul.f32 %v5148_v60, %v5133_v4  ;;  %6596 = vmatprep.mubr.msk.f32.mxu1 %vm7299_vm0, %v7300_v6 }
0x14e8   :  { %v5158_v22 = vmul.f32 0.044715, %v5153_v28 }
0x14e9   :  { %6597 = vmatmul.mubr.f32.gmra.mrb[110].mxu1 %v5187_v17 }
0x14ea   :  { %v5163_v37 = vadd.f32 %v5158_v22, %v5133_v4  ;;  %6599 = vmatprep.mubr.msk.f32.mxu1 %vm7299_vm0, %v7300_v6 }
0x14ec   :  { %v5168_v26 = vmul.f32 0.7978846, %v5163_v37 }
0x14ee   :  { %7264 = vtanh.f32 %v5168_v26 }
0x14f8   :  { %v7265_v47 = vpop.eup %7264 }
0x14f9   :  { %v5178_v32 = vadd.f32 1.0, %v7265_v47 }
0x14fb   :  { %v5183_v36 = vmul.f32 0.5, %v5178_v32 }
0x14fd   :  { %v5188_v18 = vmul.f32 %v5183_v36, %v5133_v4  ;;  %v5568_v4 = vld [vmem:[%s9297_s8] ss:$0 sm:$0xff] }
0x14ff   :  { %6600 = vmatmul.mubr.f32.gmra.mrb[112].mxu1 %v5188_v18 }
0x1500   :  { %6602 = vmatprep.mubr.msk.f32.mxu1 %vm7299_vm0, %v7300_v6 }
0x15b0   :  { %v5137_v10 = vpop.f32.mrb[104].mxu1 }
0x15b1   :  { %v5138_v58 = vadd.f32 %v5137_v10, %v9235_v38  ;;  %v6557_v7 = vpop.f32.mrb[105].mxu1 }
0x15b3   :  { %v5149_v40 = vmul.f32 %v5138_v58, %v5138_v58 }
0x15b4   :  { %v5142_v31 = vpop.f32.mrb[106].mxu1 }
0x15b5   :  { %v5154_v56 = vmul.f32 %v5149_v40, %v5138_v58  ;;  %v5143_v16 = vadd.f32 %v5142_v31, %v9235_v38  ;;  %v6560_v62 = vpop.f32.mrb[107].mxu1 }
0x15b7   :  { %v5159_v25 = vmul.f32 0.044715, %v5154_v56  ;;  %v5150_v12 = vmul.f32 %v5143_v16, %v5143_v16 }
0x15b8   :  { %v5274_v42 = vpop.f32.mrb[108].mxu1 }
0x15b9   :  { %v5164_v41 = vadd.f32 %v5159_v25, %v5138_v58  ;;  %v5155_v23 = vmul.f32 %v5150_v12, %v5143_v16  ;;  %v6595_v3 = vpop.f32.mrb[109].mxu1  ;;  %v5295_v33 = vadd.f32 %v5274_v42, %v9094_v49 }
0x15bb   :  { %v5169_v57 = vmul.f32 0.7978846, %v5164_v41  ;;  %v5160_v30 = vmul.f32 0.044715, %v5155_v23  ;;  %v5301_v1 = vadd.f32 %v5300_v52, %v5295_v33 }
0x15bc   :  { %v5279_v0 = vpop.f32.mrb[110].mxu1 }
0x15bd   :  { %v5165_v53 = vadd.f32 %v5160_v30, %v5143_v16  ;;  %v6598_v39 = vpop.f32.mrb[111].mxu1  ;;  %7266 = vtanh.f32 %v5169_v57 }
0x15bf   :  { %v5170_v2 = vmul.f32 0.7978846, %v5165_v53 }
0x15c1   :  { %7268 = vtanh.f32 %v5170_v2 }
0x15c7   :  { %v7267_v15 = vpop.eup %7266 }
0x15c8   :  { %v5179_v45 = vadd.f32 1.0, %v7267_v15 }
0x15ca   :  { %v5184_v48 = vmul.f32 0.5, %v5179_v45 }
0x15cb   :  { %v7269_v11 = vpop.eup %7268 }
0x15cc   :  { %v5189_v38 = vmul.f32 %v5184_v48, %v5138_v58  ;;  %v5180_v35 = vadd.f32 1.0, %v7269_v11 }
0x15ce   :  { %6603 = vmatmul.mubr.f32.gmra.mrb[114].mxu1 %v5189_v38  ;;  %v5185_v43 = vmul.f32 0.5, %v5180_v35 }
0x15cf   :  { %6605 = vmatprep.mubr.msk.f32.mxu1 %vm7299_vm0, %v7300_v6 }
0x15d0   :  { %v5190_v54 = vmul.f32 %v5185_v43, %v5143_v16 }
0x15d2   :  { %v5283_v19 = vpop.f32.mrb[112].mxu1  ;;  %6606 = vmatmul.mubr.f32.gmra.mrb[116].mxu1 %v5190_v54 }
0x15d3   :  { %v5296_v21 = vadd.f32 %v5283_v19, %v9113_v34  ;;  %v6601_v44 = vpop.f32.mrb[113].mxu1 }
0x15d5   :  { %v5302_v5 = vadd.f32 %v5300_v52, %v5296_v21 }
0x15d7   :  { %v5303_v46 = vsel %vm743_vm7, %v5301_v1, %v5302_v5 }
0x15d8   :  { %v5306_v14 = vsel %vm169_vm3, %v5303_v46, 0.0 }
0x15d9   :  { %5307 = vadd.xlane.f32.xlu1 %v5306_v14 }
0x1666   :  { %v5308_v6 = vpop.xlane.xlu1 %5307 }
0x1667   :  { %v5309_v61 = vmul.f32 0.03125, %v5308_v6 }
0x1669   :  { %v5310_v20 = vsub.f32 %v5303_v46, %v5309_v61 }
0x166b   :  { %v5311_v49 = vmul.f32 %v5310_v20, %v5310_v20 }
0x166d   :  { %v5312_v24 = vsel %vm169_vm3, %v5311_v49, 0.0 }
0x166e   :  { %5313 = vadd.xlane.f32.xlu0 %v5312_v24 }
0x16a1   :  { %v5288_v29 = vpop.f32.mrb[114].mxu1 }
0x16a2   :  { %v6604_v8 = vpop.f32.mrb[115].mxu1 }
0x16a5   :  { %v5292_v50 = vpop.f32.mrb[116].mxu1 }
0x16a6   :  { %v6607_v63 = vpop.f32.mrb[117].mxu1 }
0x16fb   :  { %v5314_v34 = vpop.xlane.xlu0 %5313 }
0x16fc   :  { %v5315_v27 = vmul.f32 0.03125, %v5314_v34 }
0x16fe   :  { %v5316_v9 = vadd.f32 1e-06, %v5315_v27 }
0x1700   :  { %7270 = vrsqrt.f32 %v5316_v9 }
0x170a   :  { %v7271_v55 = vpop.eup %7270 }
0x170b   :  { %v5318_v13 = vmul.f32 %v7271_v55, %v5310_v20 }
0x170d   :  { %v5323_v51 = vmul.f32 %v5568_v4, %v5318_v13 }
0x170f   :  { %v5328_v60 = vadd.f32 %v5569_v59, %v5323_v51 }
0x1711   :  { %5329 = vst.msk [vmem:[#allocation2] sm:$0x3] %vm169_vm3, %v5328_v60 }
0x1712   :  { %7285 = shalt.err (!%p7282_p4)
}
0x1713   :  { %s7286_s27 = scalar_lea.hbm %s9298_s9, 32 }
0x1714   :  { %p7287_p5 = scmp.ne.s32.totalorder %s9298_s9, %s7286_s27  ;;  %p7290_p6 = scmp.lt.u32.totalorder %s7286_s27, %s9298_s9 }
0x1716   :  { %p7292_p7 = pnand %p7290_p6, %p7287_p5 }
0x1718   :  { %7295 = shalt.err (!%p7292_p7)
}
0x1719   :  { %5339 = dma.vmem_to_hbm [thread:$0]  %s5337_s3, 32, %s9298_s9, [#allocation3]  }
0x171a   :  { %7296 = dma.done.wait [#allocation3], 32  }
0x171b   :  { %7297 = vsyncadd [#allocation3], 4294967264 }
0x171c   :  { %5343 = vsyncpa [#allocation3], 1 }

</bundles_post_ra>
